<compile_context>
chip_gen: v7x
topology: tpu7x:2x2x1
jax: 0.10.0
libtpu: 0.0.40
codegen_flags: <defaults>
</compile_context>

<pallas_src>
import functools

import numpy as np
import jax
import jax.numpy as jnp
from jax import lax
from jax.experimental import pallas as pl
from jax.experimental.pallas import tpu as pltpu

HIDDEN = 300            # ForwardNet input/hidden width (Linear(300, 300))
OUT = 128               # ForwardNet output width (Linear(300, 128))
F_PAD = 384             # 300 padded up to 3 * 128 lanes
LANES = 128


def _round_up(v, m):
    return (v + m - 1) // m * m


# ----------------------------------------------------------------------------
# Pallas kernel: docNet + queryNet (tanh MLPs) + cosine similarity.
#   doc_ref : (K, TILE_B, F_PAD) bf16   candidate-major doc features
#   qry_ref : (TILE_B, F_PAD)    bf16   one row per query (NOT repeated)
#   weights : bf16 (resident across the grid), biases f32
#   sim_ref : (TILE_B, K_PAD)    f32    cosine per (query row, candidate),
#                                       columns >= K are padding
# ----------------------------------------------------------------------------
def _dssm_kernel(doc_ref, qry_ref,
                 w1d_ref, b1d_ref, w2d_ref, b2d_ref,
                 w1q_ref, b1q_ref, w2q_ref, b2q_ref,
                 sim_ref, *, num_docs):
    w1d = w1d_ref[...]; b1d = b1d_ref[...]
    w2d = w2d_ref[...]; b2d = b2d_ref[...]
    w1q = w1q_ref[...]; b1q = b1q_ref[...]
    w2q = w2q_ref[...]; b2q = b2q_ref[...]

    # queryNet: one pass per query row (no per-candidate repeat).
    hq = jnp.tanh(jnp.dot(qry_ref[...], w1q,
                          preferred_element_type=jnp.float32) + b1q)
    q = jnp.tanh(jnp.dot(hq.astype(jnp.bfloat16), w2q,
                         preferred_element_type=jnp.float32) + b2q)       # (T, 128) f32
    nq = jnp.sqrt(jnp.sum(q * q, axis=-1, keepdims=True))                 # (T, 1)

    rows, kpad = sim_ref.shape
    lane = lax.broadcasted_iota(jnp.int32, (rows, kpad), 1)
    sim = jnp.zeros((rows, kpad), jnp.float32)

    # docNet per candidate: each matmul has M = TILE_B rows (fills the MXU).
    for k in range(num_docs):                                             # static unroll, K is small
        hd = jnp.tanh(jnp.dot(doc_ref[k], w1d,
                              preferred_element_type=jnp.float32) + b1d)
        d = jnp.tanh(jnp.dot(hd.astype(jnp.bfloat16), w2d,
                             preferred_element_type=jnp.float32) + b2d)   # (T, 128) f32
        # CosineSimilarity(dim=-1), eps=1e-8 (torch documented formula).
        dq = jnp.sum(d * q, axis=-1, keepdims=True)
        nd = jnp.sqrt(jnp.sum(d * d, axis=-1, keepdims=True))
        cos_k = dq / jnp.maximum(nd * nq, 1e-8)                           # (T, 1)
        sim = jnp.where(lane == k, cos_k, sim)                            # place into lane k
    sim_ref[...] = sim


# ----------------------------------------------------------------------------
# Glue: token slicing, embedding lookups, mean pooling, param prep, kernel call.
# ----------------------------------------------------------------------------
def _pool_features(x, embed, *, neg_num, his_len, word_len):
    """Embedding gather + mean pooling (plain JAX glue).
    Returns candidate-major doc features (K, B, 300) and query features (B, 300)."""
    # TODO(synk): fuse gather + mean-pool into the kernel via scalar-prefetched
    # token ids to avoid materializing the (K, B, word_len, 300) intermediate.
    K = neg_num + 1
    B = x.shape[0]
    title = x[:, K + his_len:]
    doc_tok = title[:, :word_len * K].reshape(B, K, word_len).transpose(1, 0, 2)
    qry_tok = title[:, word_len * K:]
    doc_feat = embed[doc_tok].mean(axis=-2)       # (K, B, 300)
    qry_feat = embed[qry_tok].mean(axis=-2)       # (B, 300)
    return doc_feat, qry_feat


def _prepare_weights(params):
    """Zero-pad Linear params to the 384-lane layout; weights -> bf16 for the
    MXU, biases stay f32 (added to the f32 accumulator)."""
    def pad_w(w, rows, cols):
        r, c = w.shape
        return jnp.pad(w, ((0, rows - r), (0, cols - c))).astype(jnp.bfloat16)

    def pad_b(b, cols):
        return jnp.pad(b, ((0, 0), (0, cols - b.shape[1]))).astype(jnp.float32)

    return dict(
        w1d=pad_w(params["w1d"], F_PAD, F_PAD), b1d=pad_b(params["b1d"], F_PAD),
        w2d=pad_w(params["w2d"], F_PAD, OUT),   b2d=pad_b(params["b2d"], OUT),
        w1q=pad_w(params["w1q"], F_PAD, F_PAD), b1q=pad_b(params["b1q"], F_PAD),
        w2q=pad_w(params["w2q"], F_PAD, OUT),   b2q=pad_b(params["b2q"], OUT),
    )


def dssm_forward(x, params, *, neg_num, his_len, word_len, max_tile_b=256):
    # NOTE: docidNet/queryidNet -> similarity_id is computed but discarded by the
    # torch forward; that dead branch is intentionally not reproduced.
    K = neg_num + 1
    K_PAD = _round_up(K, LANES)                   # lane-dense output stores
    B = x.shape[0]
    doc_feat, qry_feat = _pool_features(x, params["embed"], neg_num=neg_num,
                                        his_len=his_len, word_len=word_len)

    # Row tile: multiple of 16 (bf16 sublane packing); 256 fills the MXU M dim
    # on v6e/v7x and keeps double-buffered tiles small on v7x's 64 MiB VMEM.
    tile_b = min(max_tile_b, _round_up(B, 16))
    b_pad = _round_up(B, tile_b)
    grid = (b_pad // tile_b,)

    # Pad rows to the grid and features 300 -> 384; bf16 for MXU operands.
    doc_p = jnp.pad(doc_feat, ((0, 0), (0, b_pad - B), (0, F_PAD - HIDDEN))
                    ).astype(jnp.bfloat16)                        # (K, b_pad, 384)
    qry_p = jnp.pad(qry_feat, ((0, b_pad - B), (0, F_PAD - HIDDEN))
                    ).astype(jnp.bfloat16)                        # (b_pad, 384)
    kp = _prepare_weights(params)

    def resident(shape):                      # same block every step -> stays in VMEM
        return pl.BlockSpec(shape, lambda i: (0,) * len(shape))

    in_specs = [
        pl.BlockSpec((K, tile_b, F_PAD), lambda i: (0, i, 0)),    # doc tile
        pl.BlockSpec((tile_b, F_PAD), lambda i: (i, 0)),          # query tile
        resident((F_PAD, F_PAD)), resident((1, F_PAD)),           # w1d, b1d
        resident((F_PAD, OUT)),   resident((1, OUT)),             # w2d, b2d
        resident((F_PAD, F_PAD)), resident((1, F_PAD)),           # w1q, b1q
        resident((F_PAD, OUT)),   resident((1, OUT)),             # w2q, b2q
    ]
    out_spec = pl.BlockSpec((tile_b, K_PAD), lambda i: (i, 0))

    rows_d, rows_q = b_pad * K, b_pad
    flops = 2 * (rows_d + rows_q) * (F_PAD * F_PAD + F_PAD * OUT) + 6 * rows_d * OUT
    transcendentals = (rows_d + rows_q) * (F_PAD + OUT)
    bytes_accessed = ((doc_p.size + qry_p.size) * 2
                      + 2 * 2 * (F_PAD * F_PAD + F_PAD * OUT)     # bf16 weights, 2 nets
                      + 2 * 4 * (F_PAD + OUT)                     # f32 biases, 2 nets
                      + b_pad * K_PAD * 4)                        # f32 output

    sim = pl.pallas_call(
        functools.partial(_dssm_kernel, num_docs=K),
        out_shape=jax.ShapeDtypeStruct((b_pad, K_PAD), jnp.float32),
        grid=grid,
        in_specs=in_specs,
        out_specs=out_spec,
        compiler_params=pltpu.CompilerParams(
            dimension_semantics=("parallel",),
            vmem_limit_bytes=32 * 1024 * 1024),
        cost_estimate=pl.CostEstimate(flops=flops,
                                      transcendentals=transcendentals,
                                      bytes_accessed=bytes_accessed),
    )(doc_p, qry_p,
      kp["w1d"], kp["b1d"], kp["w2d"], kp["b2d"],
      kp["w1q"], kp["b1q"], kp["w2q"], kp["b2q"])
    return sim[:B, :K]                                            # (B, K)


# ----------------------------------------------------------------------------
# Pure-JAX f32 reference (mirrors the torch forward for the returned `similarity`).
# ----------------------------------------------------------------------------
def dssm_reference(x, params, *, neg_num, his_len, word_len):
    K = neg_num + 1
    B = x.shape[0]
    embed = params["embed"]
    title = x[:, K + his_len:]
    doc_tok = title[:, :word_len * K]
    qry_tok = title[:, word_len * K:]
    doc = embed[doc_tok].reshape(B, K, word_len, HIDDEN).mean(axis=-2)    # (B,K,300)
    qry = embed[qry_tok].mean(axis=-2)                                    # (B,300)

    def fwdnet(v, w1, b1, w2, b2):
        return jnp.tanh(jnp.tanh(v @ w1 + b1) @ w2 + b2)

    d = fwdnet(doc.reshape(B * K, HIDDEN), params["w1d"], params["b1d"],
               params["w2d"], params["b2d"]).reshape(B, K, OUT)
    q = fwdnet(qry, params["w1q"], params["b1q"],
               params["w2q"], params["b2q"])[:, None, :]                  # (B,1,128)
    dot = jnp.sum(d * q, axis=-1)
    nd = jnp.sqrt(jnp.sum(d * d, axis=-1))
    nq = jnp.sqrt(jnp.sum(q * q, axis=-1))
    return dot / jnp.maximum(nd * nq, 1e-8)


# ----------------------------------------------------------------------------
# Deterministic parameter init (xavier-uniform weights, torch-style biases,
# N(0,1) embeddings), shapes taken from the module __init__.
# ----------------------------------------------------------------------------
def init_params(key, word_num, news_num):
    ks = jax.random.split(key, 10)

    def xavier(k, fi, fo):
        lim = float(np.sqrt(6.0 / (fi + fo)))
        return jax.random.uniform(k, (fi, fo), jnp.float32, -lim, lim)

    def bias(k, fi, fo):
        lim = float(1.0 / np.sqrt(fi))
        return jax.random.uniform(k, (1, fo), jnp.float32, -lim, lim)

    return {
        "w1q": xavier(ks[0], HIDDEN, HIDDEN), "b1q": bias(ks[1], HIDDEN, HIDDEN),
        "w2q": xavier(ks[2], HIDDEN, OUT),    "b2q": bias(ks[3], HIDDEN, OUT),
        "w1d": xavier(ks[4], HIDDEN, HIDDEN), "b1d": bias(ks[5], HIDDEN, HIDDEN),
        "w2d": xavier(ks[6], HIDDEN, OUT),    "b2d": bias(ks[7], HIDDEN, OUT),
        "embed": jax.random.normal(ks[8], (word_num, HIDDEN), jnp.float32),
        "news_embed": jax.random.normal(ks[9], (news_num, HIDDEN), jnp.float32),
    }


if __name__ == "__main__":
    # Small args consistent with the module's forward.
    B, neg_num, his_len, word_len = 2, 4, 3, 6
    word_num, news_num = 50, 20
    K = neg_num + 1
    total_len = (K + his_len) + word_len * K + word_len * his_len   # 56

    key = jax.random.PRNGKey(0)
    kp_, kn, kt = jax.random.split(key, 3)
    params = init_params(kp_, word_num, news_num)

    news_ids = jax.random.randint(kn, (B, K + his_len), 0, news_num)
    word_ids = jax.random.randint(kt, (B, word_len * K + word_len * his_len), 0, word_num)
    x = jnp.concatenate([news_ids, word_ids], axis=1).astype(jnp.int32)
    assert x.shape == (B, total_len)

    sim = dssm_forward(x, params, neg_num=neg_num, his_len=his_len, word_len=word_len)
    sim = jax.block_until_ready(sim)

    ref = dssm_reference(x, params, neg_num=neg_num, his_len=his_len, word_len=word_len)
    ref = jax.block_until_ready(ref)

    assert sim.shape == (B, K)
    # bf16 MXU operands vs f32 reference -> loose-ish tolerance.
    np.testing.assert_allclose(np.asarray(sim), np.asarray(ref), atol=4e-2, rtol=0)
    print("KERNEL_OK")
</pallas_src>

<mosaic_0001>
module attributes {stable_mosaic.version = 11 : i64} {
  func.func @_dssm_kernel(%arg0: i32, %arg1: memref<5x16x384xbf16, #tpu.memory_space<vmem>>, %arg2: memref<16x384xbf16, #tpu.memory_space<vmem>>, %arg3: memref<384x384xbf16, #tpu.memory_space<vmem>>, %arg4: memref<1x384xf32, #tpu.memory_space<vmem>>, %arg5: memref<384x128xbf16, #tpu.memory_space<vmem>>, %arg6: memref<1x128xf32, #tpu.memory_space<vmem>>, %arg7: memref<384x384xbf16, #tpu.memory_space<vmem>>, %arg8: memref<1x384xf32, #tpu.memory_space<vmem>>, %arg9: memref<384x128xbf16, #tpu.memory_space<vmem>>, %arg10: memref<1x128xf32, #tpu.memory_space<vmem>>, %arg11: memref<16x128xf32, #tpu.memory_space<vmem>>) attributes {dimension_semantics = [#tpu.dimension_semantics<parallel>], iteration_bounds = array<i64: 1>, scalar_prefetch = 0 : i64, scratch_operands = 0 : i64, tpu.core_type = #tpu.core_type<tc>, window_params = [{transform_indices = @transform_0, window_bounds = array<i64: 5, 16, 384>}, {transform_indices = @transform_1, window_bounds = array<i64: 16, 384>}, {pipeline_mode = #tpu.pipeline_mode<synchronous>, transform_indices = @transform_2, window_bounds = array<i64: 384, 384>}, {pipeline_mode = #tpu.pipeline_mode<synchronous>, transform_indices = @transform_3, window_bounds = array<i64: 1, 384>}, {pipeline_mode = #tpu.pipeline_mode<synchronous>, transform_indices = @transform_4, window_bounds = array<i64: 384, 128>}, {pipeline_mode = #tpu.pipeline_mode<synchronous>, transform_indices = @transform_5, window_bounds = array<i64: 1, 128>}, {pipeline_mode = #tpu.pipeline_mode<synchronous>, transform_indices = @transform_6, window_bounds = array<i64: 384, 384>}, {pipeline_mode = #tpu.pipeline_mode<synchronous>, transform_indices = @transform_7, window_bounds = array<i64: 1, 384>}, {pipeline_mode = #tpu.pipeline_mode<synchronous>, transform_indices = @transform_8, window_bounds = array<i64: 384, 128>}, {pipeline_mode = #tpu.pipeline_mode<synchronous>, transform_indices = @transform_9, window_bounds = array<i64: 1, 128>}, {transform_indices = @transform_10, window_bounds = array<i64: 16, 128>}]} {
    %c0 = arith.constant 0 : index
    %c0_0 = arith.constant 0 : index
    %0 = vector.load %arg3[%c0, %c0_0] : memref<384x384xbf16, #tpu.memory_space<vmem>>, vector<384x384xbf16>
    %c0_1 = arith.constant 0 : index
    %c0_2 = arith.constant 0 : index
    %1 = vector.load %arg4[%c0_1, %c0_2] : memref<1x384xf32, #tpu.memory_space<vmem>>, vector<1x384xf32>
    %c0_3 = arith.constant 0 : index
    %c0_4 = arith.constant 0 : index
    %2 = vector.load %arg5[%c0_3, %c0_4] : memref<384x128xbf16, #tpu.memory_space<vmem>>, vector<384x128xbf16>
    %c0_5 = arith.constant 0 : index
    %c0_6 = arith.constant 0 : index
    %3 = vector.load %arg6[%c0_5, %c0_6] : memref<1x128xf32, #tpu.memory_space<vmem>>, vector<1x128xf32>
    %c0_7 = arith.constant 0 : index
    %c0_8 = arith.constant 0 : index
    %4 = vector.load %arg7[%c0_7, %c0_8] : memref<384x384xbf16, #tpu.memory_space<vmem>>, vector<384x384xbf16>
    %c0_9 = arith.constant 0 : index
    %c0_10 = arith.constant 0 : index
    %5 = vector.load %arg8[%c0_9, %c0_10] : memref<1x384xf32, #tpu.memory_space<vmem>>, vector<1x384xf32>
    %c0_11 = arith.constant 0 : index
    %c0_12 = arith.constant 0 : index
    %6 = vector.load %arg9[%c0_11, %c0_12] : memref<384x128xbf16, #tpu.memory_space<vmem>>, vector<384x128xbf16>
    %c0_13 = arith.constant 0 : index
    %c0_14 = arith.constant 0 : index
    %7 = vector.load %arg10[%c0_13, %c0_14] : memref<1x128xf32, #tpu.memory_space<vmem>>, vector<1x128xf32>
    %c0_15 = arith.constant 0 : index
    %c0_16 = arith.constant 0 : index
    %8 = vector.load %arg2[%c0_15, %c0_16] : memref<16x384xbf16, #tpu.memory_space<vmem>>, vector<16x384xbf16>
    %cst = arith.constant dense<0.000000e+00> : vector<16x384xf32>
    %9 = tpu.matmul %8, %4, %cst {dimension_numbers = #tpu.dot_dimension_numbers<[1], [0], [0], [1], [0, 0, 1, 1], [], []>} : vector<16x384xbf16>, vector<384x384xbf16>, vector<16x384xf32> -> vector<16x384xf32>
    %10 = vector.broadcast %5 : vector<1x384xf32> to vector<16x384xf32>
    %11 = arith.addf %9, %10 : vector<16x384xf32>
    %12 = math.tanh %11 : vector<16x384xf32>
    %13 = arith.truncf %12 : vector<16x384xf32> to vector<16x384xbf16>
    %cst_17 = arith.constant dense<0.000000e+00> : vector<16x128xf32>
    %14 = tpu.matmul %13, %6, %cst_17 {dimension_numbers = #tpu.dot_dimension_numbers<[1], [0], [0], [1], [0, 0, 1, 1], [], []>} : vector<16x384xbf16>, vector<384x128xbf16>, vector<16x128xf32> -> vector<16x128xf32>
    %15 = vector.broadcast %7 : vector<1x128xf32> to vector<16x128xf32>
    %16 = arith.addf %14, %15 : vector<16x128xf32>
    %17 = math.tanh %16 : vector<16x128xf32>
    %18 = arith.mulf %17, %17 : vector<16x128xf32>
    %cst_18 = arith.constant dense<0.000000e+00> : vector<16xf32>
    %19 = vector.multi_reduction <add>, %18, %cst_18 [1] : vector<16x128xf32> to vector<16xf32>
    %20 = vector.shape_cast %19 : vector<16xf32> to vector<16x1xf32>
    %21 = math.sqrt %20 : vector<16x1xf32>
    %22 = tpu.iota {dimensions = array<i32: 1>} : vector<16x128xi32>
    %cst_19 = arith.constant 0.000000e+00 : f32
    %23 = vector.broadcast %cst_19 : f32 to vector<16x128xf32>
    %c0_20 = arith.constant 0 : index
    %c0_21 = arith.constant 0 : index
    %c0_22 = arith.constant 0 : index
    %24 = vector.load %arg1[%c0_20, %c0_21, %c0_22] : memref<5x16x384xbf16, #tpu.memory_space<vmem>>, vector<1x16x384xbf16>
    %25 = vector.shape_cast %24 : vector<1x16x384xbf16> to vector<16x384xbf16>
    %cst_23 = arith.constant dense<0.000000e+00> : vector<16x384xf32>
    %26 = tpu.matmul %25, %0, %cst_23 {dimension_numbers = #tpu.dot_dimension_numbers<[1], [0], [0], [1], [0, 0, 1, 1], [], []>} : vector<16x384xbf16>, vector<384x384xbf16>, vector<16x384xf32> -> vector<16x384xf32>
    %27 = vector.broadcast %1 : vector<1x384xf32> to vector<16x384xf32>
    %28 = arith.addf %26, %27 : vector<16x384xf32>
    %29 = math.tanh %28 : vector<16x384xf32>
    %30 = arith.truncf %29 : vector<16x384xf32> to vector<16x384xbf16>
    %cst_24 = arith.constant dense<0.000000e+00> : vector<16x128xf32>
    %31 = tpu.matmul %30, %2, %cst_24 {dimension_numbers = #tpu.dot_dimension_numbers<[1], [0], [0], [1], [0, 0, 1, 1], [], []>} : vector<16x384xbf16>, vector<384x128xbf16>, vector<16x128xf32> -> vector<16x128xf32>
    %32 = vector.broadcast %3 : vector<1x128xf32> to vector<16x128xf32>
    %33 = arith.addf %31, %32 : vector<16x128xf32>
    %34 = math.tanh %33 : vector<16x128xf32>
    %35 = arith.mulf %34, %17 : vector<16x128xf32>
    %cst_25 = arith.constant dense<0.000000e+00> : vector<16xf32>
    %36 = vector.multi_reduction <add>, %35, %cst_25 [1] : vector<16x128xf32> to vector<16xf32>
    %37 = vector.shape_cast %36 : vector<16xf32> to vector<16x1xf32>
    %38 = arith.mulf %34, %34 : vector<16x128xf32>
    %cst_26 = arith.constant dense<0.000000e+00> : vector<16xf32>
    %39 = vector.multi_reduction <add>, %38, %cst_26 [1] : vector<16x128xf32> to vector<16xf32>
    %40 = vector.shape_cast %39 : vector<16xf32> to vector<16x1xf32>
    %41 = math.sqrt %40 : vector<16x1xf32>
    %42 = arith.mulf %41, %21 : vector<16x1xf32>
    %cst_27 = arith.constant 9.99999993E-9 : f32
    %43 = vector.broadcast %cst_27 : f32 to vector<16x1xf32>
    %44 = arith.maximumf %42, %43 : vector<16x1xf32>
    %45 = arith.divf %37, %44 : vector<16x1xf32>
    %c0_i32 = arith.constant 0 : i32
    %46 = vector.broadcast %c0_i32 : i32 to vector<16x128xi32>
    %47 = arith.cmpi eq, %22, %46 : vector<16x128xi32>
    %48 = vector.shape_cast %45 : vector<16x1xf32> to vector<16x1xf32>
    %49 = vector.broadcast %48 : vector<16x1xf32> to vector<16x128xf32>
    %50 = arith.select %47, %49, %23 : vector<16x128xi1>, vector<16x128xf32>
    %c1 = arith.constant 1 : index
    %c0_28 = arith.constant 0 : index
    %c0_29 = arith.constant 0 : index
    %51 = vector.load %arg1[%c1, %c0_28, %c0_29] : memref<5x16x384xbf16, #tpu.memory_space<vmem>>, vector<1x16x384xbf16>
    %52 = vector.shape_cast %51 : vector<1x16x384xbf16> to vector<16x384xbf16>
    %cst_30 = arith.constant dense<0.000000e+00> : vector<16x384xf32>
    %53 = tpu.matmul %52, %0, %cst_30 {dimension_numbers = #tpu.dot_dimension_numbers<[1], [0], [0], [1], [0, 0, 1, 1], [], []>} : vector<16x384xbf16>, vector<384x384xbf16>, vector<16x384xf32> -> vector<16x384xf32>
    %54 = vector.broadcast %1 : vector<1x384xf32> to vector<16x384xf32>
    %55 = arith.addf %53, %54 : vector<16x384xf32>
    %56 = math.tanh %55 : vector<16x384xf32>
    %57 = arith.truncf %56 : vector<16x384xf32> to vector<16x384xbf16>
    %cst_31 = arith.constant dense<0.000000e+00> : vector<16x128xf32>
    %58 = tpu.matmul %57, %2, %cst_31 {dimension_numbers = #tpu.dot_dimension_numbers<[1], [0], [0], [1], [0, 0, 1, 1], [], []>} : vector<16x384xbf16>, vector<384x128xbf16>, vector<16x128xf32> -> vector<16x128xf32>
    %59 = vector.broadcast %3 : vector<1x128xf32> to vector<16x128xf32>
    %60 = arith.addf %58, %59 : vector<16x128xf32>
    %61 = math.tanh %60 : vector<16x128xf32>
    %62 = arith.mulf %61, %17 : vector<16x128xf32>
    %cst_32 = arith.constant dense<0.000000e+00> : vector<16xf32>
    %63 = vector.multi_reduction <add>, %62, %cst_32 [1] : vector<16x128xf32> to vector<16xf32>
    %64 = vector.shape_cast %63 : vector<16xf32> to vector<16x1xf32>
    %65 = arith.mulf %61, %61 : vector<16x128xf32>
    %cst_33 = arith.constant dense<0.000000e+00> : vector<16xf32>
    %66 = vector.multi_reduction <add>, %65, %cst_33 [1] : vector<16x128xf32> to vector<16xf32>
    %67 = vector.shape_cast %66 : vector<16xf32> to vector<16x1xf32>
    %68 = math.sqrt %67 : vector<16x1xf32>
    %69 = arith.mulf %68, %21 : vector<16x1xf32>
    %cst_34 = arith.constant 9.99999993E-9 : f32
    %70 = vector.broadcast %cst_34 : f32 to vector<16x1xf32>
    %71 = arith.maximumf %69, %70 : vector<16x1xf32>
    %72 = arith.divf %64, %71 : vector<16x1xf32>
    %c1_i32 = arith.constant 1 : i32
    %73 = vector.broadcast %c1_i32 : i32 to vector<16x128xi32>
    %74 = arith.cmpi eq, %22, %73 : vector<16x128xi32>
    %75 = vector.shape_cast %72 : vector<16x1xf32> to vector<16x1xf32>
    %76 = vector.broadcast %75 : vector<16x1xf32> to vector<16x128xf32>
    %77 = arith.select %74, %76, %50 : vector<16x128xi1>, vector<16x128xf32>
    %c2 = arith.constant 2 : index
    %c0_35 = arith.constant 0 : index
    %c0_36 = arith.constant 0 : index
    %78 = vector.load %arg1[%c2, %c0_35, %c0_36] : memref<5x16x384xbf16, #tpu.memory_space<vmem>>, vector<1x16x384xbf16>
    %79 = vector.shape_cast %78 : vector<1x16x384xbf16> to vector<16x384xbf16>
    %cst_37 = arith.constant dense<0.000000e+00> : vector<16x384xf32>
    %80 = tpu.matmul %79, %0, %cst_37 {dimension_numbers = #tpu.dot_dimension_numbers<[1], [0], [0], [1], [0, 0, 1, 1], [], []>} : vector<16x384xbf16>, vector<384x384xbf16>, vector<16x384xf32> -> vector<16x384xf32>
    %81 = vector.broadcast %1 : vector<1x384xf32> to vector<16x384xf32>
    %82 = arith.addf %80, %81 : vector<16x384xf32>
    %83 = math.tanh %82 : vector<16x384xf32>
    %84 = arith.truncf %83 : vector<16x384xf32> to vector<16x384xbf16>
    %cst_38 = arith.constant dense<0.000000e+00> : vector<16x128xf32>
    %85 = tpu.matmul %84, %2, %cst_38 {dimension_numbers = #tpu.dot_dimension_numbers<[1], [0], [0], [1], [0, 0, 1, 1], [], []>} : vector<16x384xbf16>, vector<384x128xbf16>, vector<16x128xf32> -> vector<16x128xf32>
    %86 = vector.broadcast %3 : vector<1x128xf32> to vector<16x128xf32>
    %87 = arith.addf %85, %86 : vector<16x128xf32>
    %88 = math.tanh %87 : vector<16x128xf32>
    %89 = arith.mulf %88, %17 : vector<16x128xf32>
    %cst_39 = arith.constant dense<0.000000e+00> : vector<16xf32>
    %90 = vector.multi_reduction <add>, %89, %cst_39 [1] : vector<16x128xf32> to vector<16xf32>
    %91 = vector.shape_cast %90 : vector<16xf32> to vector<16x1xf32>
    %92 = arith.mulf %88, %88 : vector<16x128xf32>
    %cst_40 = arith.constant dense<0.000000e+00> : vector<16xf32>
    %93 = vector.multi_reduction <add>, %92, %cst_40 [1] : vector<16x128xf32> to vector<16xf32>
    %94 = vector.shape_cast %93 : vector<16xf32> to vector<16x1xf32>
    %95 = math.sqrt %94 : vector<16x1xf32>
    %96 = arith.mulf %95, %21 : vector<16x1xf32>
    %cst_41 = arith.constant 9.99999993E-9 : f32
    %97 = vector.broadcast %cst_41 : f32 to vector<16x1xf32>
    %98 = arith.maximumf %96, %97 : vector<16x1xf32>
    %99 = arith.divf %91, %98 : vector<16x1xf32>
    %c2_i32 = arith.constant 2 : i32
    %100 = vector.broadcast %c2_i32 : i32 to vector<16x128xi32>
    %101 = arith.cmpi eq, %22, %100 : vector<16x128xi32>
    %102 = vector.shape_cast %99 : vector<16x1xf32> to vector<16x1xf32>
    %103 = vector.broadcast %102 : vector<16x1xf32> to vector<16x128xf32>
    %104 = arith.select %101, %103, %77 : vector<16x128xi1>, vector<16x128xf32>
    %c3 = arith.constant 3 : index
    %c0_42 = arith.constant 0 : index
    %c0_43 = arith.constant 0 : index
    %105 = vector.load %arg1[%c3, %c0_42, %c0_43] : memref<5x16x384xbf16, #tpu.memory_space<vmem>>, vector<1x16x384xbf16>
    %106 = vector.shape_cast %105 : vector<1x16x384xbf16> to vector<16x384xbf16>
    %cst_44 = arith.constant dense<0.000000e+00> : vector<16x384xf32>
    %107 = tpu.matmul %106, %0, %cst_44 {dimension_numbers = #tpu.dot_dimension_numbers<[1], [0], [0], [1], [0, 0, 1, 1], [], []>} : vector<16x384xbf16>, vector<384x384xbf16>, vector<16x384xf32> -> vector<16x384xf32>
    %108 = vector.broadcast %1 : vector<1x384xf32> to vector<16x384xf32>
    %109 = arith.addf %107, %108 : vector<16x384xf32>
    %110 = math.tanh %109 : vector<16x384xf32>
    %111 = arith.truncf %110 : vector<16x384xf32> to vector<16x384xbf16>
    %cst_45 = arith.constant dense<0.000000e+00> : vector<16x128xf32>
    %112 = tpu.matmul %111, %2, %cst_45 {dimension_numbers = #tpu.dot_dimension_numbers<[1], [0], [0], [1], [0, 0, 1, 1], [], []>} : vector<16x384xbf16>, vector<384x128xbf16>, vector<16x128xf32> -> vector<16x128xf32>
    %113 = vector.broadcast %3 : vector<1x128xf32> to vector<16x128xf32>
    %114 = arith.addf %112, %113 : vector<16x128xf32>
    %115 = math.tanh %114 : vector<16x128xf32>
    %116 = arith.mulf %115, %17 : vector<16x128xf32>
    %cst_46 = arith.constant dense<0.000000e+00> : vector<16xf32>
    %117 = vector.multi_reduction <add>, %116, %cst_46 [1] : vector<16x128xf32> to vector<16xf32>
    %118 = vector.shape_cast %117 : vector<16xf32> to vector<16x1xf32>
    %119 = arith.mulf %115, %115 : vector<16x128xf32>
    %cst_47 = arith.constant dense<0.000000e+00> : vector<16xf32>
    %120 = vector.multi_reduction <add>, %119, %cst_47 [1] : vector<16x128xf32> to vector<16xf32>
    %121 = vector.shape_cast %120 : vector<16xf32> to vector<16x1xf32>
    %122 = math.sqrt %121 : vector<16x1xf32>
    %123 = arith.mulf %122, %21 : vector<16x1xf32>
    %cst_48 = arith.constant 9.99999993E-9 : f32
    %124 = vector.broadcast %cst_48 : f32 to vector<16x1xf32>
    %125 = arith.maximumf %123, %124 : vector<16x1xf32>
    %126 = arith.divf %118, %125 : vector<16x1xf32>
    %c3_i32 = arith.constant 3 : i32
    %127 = vector.broadcast %c3_i32 : i32 to vector<16x128xi32>
    %128 = arith.cmpi eq, %22, %127 : vector<16x128xi32>
    %129 = vector.shape_cast %126 : vector<16x1xf32> to vector<16x1xf32>
    %130 = vector.broadcast %129 : vector<16x1xf32> to vector<16x128xf32>
    %131 = arith.select %128, %130, %104 : vector<16x128xi1>, vector<16x128xf32>
    %c4 = arith.constant 4 : index
    %c0_49 = arith.constant 0 : index
    %c0_50 = arith.constant 0 : index
    %132 = vector.load %arg1[%c4, %c0_49, %c0_50] : memref<5x16x384xbf16, #tpu.memory_space<vmem>>, vector<1x16x384xbf16>
    %133 = vector.shape_cast %132 : vector<1x16x384xbf16> to vector<16x384xbf16>
    %cst_51 = arith.constant dense<0.000000e+00> : vector<16x384xf32>
    %134 = tpu.matmul %133, %0, %cst_51 {dimension_numbers = #tpu.dot_dimension_numbers<[1], [0], [0], [1], [0, 0, 1, 1], [], []>} : vector<16x384xbf16>, vector<384x384xbf16>, vector<16x384xf32> -> vector<16x384xf32>
    %135 = vector.broadcast %1 : vector<1x384xf32> to vector<16x384xf32>
    %136 = arith.addf %134, %135 : vector<16x384xf32>
    %137 = math.tanh %136 : vector<16x384xf32>
    %138 = arith.truncf %137 : vector<16x384xf32> to vector<16x384xbf16>
    %cst_52 = arith.constant dense<0.000000e+00> : vector<16x128xf32>
    %139 = tpu.matmul %138, %2, %cst_52 {dimension_numbers = #tpu.dot_dimension_numbers<[1], [0], [0], [1], [0, 0, 1, 1], [], []>} : vector<16x384xbf16>, vector<384x128xbf16>, vector<16x128xf32> -> vector<16x128xf32>
    %140 = vector.broadcast %3 : vector<1x128xf32> to vector<16x128xf32>
    %141 = arith.addf %139, %140 : vector<16x128xf32>
    %142 = math.tanh %141 : vector<16x128xf32>
    %143 = arith.mulf %142, %17 : vector<16x128xf32>
    %cst_53 = arith.constant dense<0.000000e+00> : vector<16xf32>
    %144 = vector.multi_reduction <add>, %143, %cst_53 [1] : vector<16x128xf32> to vector<16xf32>
    %145 = vector.shape_cast %144 : vector<16xf32> to vector<16x1xf32>
    %146 = arith.mulf %142, %142 : vector<16x128xf32>
    %cst_54 = arith.constant dense<0.000000e+00> : vector<16xf32>
    %147 = vector.multi_reduction <add>, %146, %cst_54 [1] : vector<16x128xf32> to vector<16xf32>
    %148 = vector.shape_cast %147 : vector<16xf32> to vector<16x1xf32>
    %149 = math.sqrt %148 : vector<16x1xf32>
    %150 = arith.mulf %149, %21 : vector<16x1xf32>
    %cst_55 = arith.constant 9.99999993E-9 : f32
    %151 = vector.broadcast %cst_55 : f32 to vector<16x1xf32>
    %152 = arith.maximumf %150, %151 : vector<16x1xf32>
    %153 = arith.divf %145, %152 : vector<16x1xf32>
    %c4_i32 = arith.constant 4 : i32
    %154 = vector.broadcast %c4_i32 : i32 to vector<16x128xi32>
    %155 = arith.cmpi eq, %22, %154 : vector<16x128xi32>
    %156 = vector.shape_cast %153 : vector<16x1xf32> to vector<16x1xf32>
    %157 = vector.broadcast %156 : vector<16x1xf32> to vector<16x128xf32>
    %158 = arith.select %155, %157, %131 : vector<16x128xi1>, vector<16x128xf32>
    %c0_56 = arith.constant 0 : index
    %c0_57 = arith.constant 0 : index
    %159 = vector.load %arg11[%c0_56, %c0_57] : memref<16x128xf32, #tpu.memory_space<vmem>>, vector<16x128xf32>
    tpu.vector_store %arg11[%c0_56, %c0_57], %158 {strides = array<i32>} : memref<16x128xf32, #tpu.memory_space<vmem>>, vector<16x128xf32>,
    return
  }
  func.func @transform_0(%arg0: i32) -> (i32, i32, i32) {
    %c0_i32 = arith.constant 0 : i32
    %c0_i32_0 = arith.constant 0 : i32
    %c0_i32_1 = arith.constant 0 : i32
    return %c0_i32, %arg0, %c0_i32_0 : i32, i32, i32
  }
  func.func @transform_1(%arg0: i32) -> (i32, i32) {
    %c0_i32 = arith.constant 0 : i32
    %c0_i32_0 = arith.constant 0 : i32
    return %arg0, %c0_i32 : i32, i32
  }
  func.func @transform_2(%arg0: i32) -> (i32, i32) {
    %c0_i32 = arith.constant 0 : i32
    %c0_i32_0 = arith.constant 0 : i32
    %c0_i32_1 = arith.constant 0 : i32
    return %c0_i32, %c0_i32_0 : i32, i32
  }
  func.func @transform_3(%arg0: i32) -> (i32, i32) {
    %c0_i32 = arith.constant 0 : i32
    %c0_i32_0 = arith.constant 0 : i32
    %c0_i32_1 = arith.constant 0 : i32
    return %c0_i32, %c0_i32_0 : i32, i32
  }
  func.func @transform_4(%arg0: i32) -> (i32, i32) {
    %c0_i32 = arith.constant 0 : i32
    %c0_i32_0 = arith.constant 0 : i32
    %c0_i32_1 = arith.constant 0 : i32
    return %c0_i32, %c0_i32_0 : i32, i32
  }
  func.func @transform_5(%arg0: i32) -> (i32, i32) {
    %c0_i32 = arith.constant 0 : i32
    %c0_i32_0 = arith.constant 0 : i32
    %c0_i32_1 = arith.constant 0 : i32
    return %c0_i32, %c0_i32_0 : i32, i32
  }
  func.func @transform_6(%arg0: i32) -> (i32, i32) {
    %c0_i32 = arith.constant 0 : i32
    %c0_i32_0 = arith.constant 0 : i32
    %c0_i32_1 = arith.constant 0 : i32
    return %c0_i32, %c0_i32_0 : i32, i32
  }
  func.func @transform_7(%arg0: i32) -> (i32, i32) {
    %c0_i32 = arith.constant 0 : i32
    %c0_i32_0 = arith.constant 0 : i32
    %c0_i32_1 = arith.constant 0 : i32
    return %c0_i32, %c0_i32_0 : i32, i32
  }
  func.func @transform_8(%arg0: i32) -> (i32, i32) {
    %c0_i32 = arith.constant 0 : i32
    %c0_i32_0 = arith.constant 0 : i32
    %c0_i32_1 = arith.constant 0 : i32
    return %c0_i32, %c0_i32_0 : i32, i32
  }
  func.func @transform_9(%arg0: i32) -> (i32, i32) {
    %c0_i32 = arith.constant 0 : i32
    %c0_i32_0 = arith.constant 0 : i32
    %c0_i32_1 = arith.constant 0 : i32
    return %c0_i32, %c0_i32_0 : i32, i32
  }
  func.func @transform_10(%arg0: i32) -> (i32, i32) {
    %c0_i32 = arith.constant 0 : i32
    %c0_i32_0 = arith.constant 0 : i32
    return %arg0, %c0_i32 : i32, i32
  }
}

</mosaic_0001>

<bundles_post_ra>
// kernel: tpu_custom_call.1
= control target key start
LH: loop header
LB: loop body
LE: loop exit
PB: predicated region body
PF: predicated region fallthrough
CT: control target
= control target key end

     0   :  { %15 = vsyncpa [#allocation3], 0  ;;  %s6383_s0 = inlined_call_operand.hbm [shape: bf16[5,16,384], index: 0, kind: input, shape index: {}]   ;;  %s6384_s1 = inlined_call_operand.hbm [shape: bf16[16,384], index: 1, kind: input, shape index: {}]   ;;  %s6385_s2 = inlined_call_operand.hbm [shape: bf16[384,384], index: 2, kind: input, shape index: {}]   ;;  %s6386_s3 = inlined_call_operand.vmem [shape: f32[1,384], index: 3, kind: input, shape index: {}]   ;;  %s6387_s4 = inlined_call_operand.hbm [shape: bf16[384,128], index: 4, kind: input, shape index: {}]   ;;  %s6388_s5 = inlined_call_operand.vmem [shape: f32[1,128], index: 5, kind: input, shape index: {}]   ;;  %s6389_s6 = inlined_call_operand.hbm [shape: bf16[384,384], index: 6, kind: input, shape index: {}]   ;;  %s6390_s7 = inlined_call_operand.vmem [shape: f32[1,384], index: 7, kind: input, shape index: {}]   ;;  %s6391_s8 = inlined_call_operand.hbm [shape: bf16[384,128], index: 8, kind: input, shape index: {}]   ;;  %s6392_s9 = inlined_call_operand.vmem [shape: f32[1,128], index: 9, kind: input, shape index: {}]   ;;  %s6393_s10 = inlined_call_operand.hbm [shape: f32[16,128], index: 10, kind: output, shape index: {}]  }
   0x1   :  { %16 = vsyncpa [#allocation6], 0 }
   0x2   :  { %17 = vsyncpa [#allocation9], 0 }
   0x3   :  { %18 = vsyncpa [#allocation12], 0 }
   0x4   :  { %19 = vsyncpa [#allocation4], 0  ;;  %s4983_s13 = smov [#allocation5]   ;;  %s4984_s15 = smov [#allocation8]  }
   0x5   :  { %s37_s14 = sshll.u32 %s4983_s13, 4  ;;  %s63_s16 = sshll.u32 %s4984_s15, 4  ;;  %s38_s14 = int_to_ptr.vmem [resolvable:$true] %s37_s14  ;;  %s5054_s16 = int_to_ptr.vmem [resolvable:$true] %s63_s16 }
   0x6   :  { %s4819_s19 = scalar_lea.hbm %s6384_s1, 384 }
   0x7   :  { %p4820_p0 = scmp.ne.s32.totalorder %s6384_s1, %s4819_s19  ;;  %p4823_p1 = scmp.lt.u32.totalorder %s4819_s19, %s6384_s1 }
   0x9   :  { %p4825_p2 = pnand %p4823_p1, %p4820_p0 }
   0xb   :  { %4828 = shalt.err (!%p4825_p2)
}
   0xc   :  { %s4829_s24 = scalar_lea.vmem %s38_s14, 384  ;;  %p4834_p4 = scmp.lt.s32.totalorder %s38_s14, %s38_s14 }
   0xd   :  { %p4830_p3 = scmp.ne.s32.totalorder %s38_s14, %s4829_s24  ;;  %p4835_p5 = scmp.lt.s32.totalorder %s4829_s24, %s4829_s24 }
   0xf   :  { %p4836_p6 = por %p4835_p5, %p4834_p4 }
  0x11   :  { %p4837_p7 = pnand %p4836_p6, %p4830_p3 }
  0x13   :  { %4840 = shalt.err (!%p4837_p7)
}
  0x14   :  { %s4985_s25 = smov 192   ;;  %s4986_s26 = smov 12  }
  0x15   :  { %43 = dma.hbm_to_vmem [thread:$0]  %s6384_s1, 384, %s38_s14, [#allocation6], %s4985_s25, %s4985_s25, %s4986_s26  }
  0x16   :  { %s4841_s11 = scalar_lea.hbm %s6387_s4, 3072 }
  0x17   :  { %p4842_p8 = scmp.ne.s32.totalorder %s6387_s4, %s4841_s11  ;;  %p4845_p9 = scmp.lt.u32.totalorder %s4841_s11, %s6387_s4 }
  0x19   :  { %p4847_p10 = pnand %p4845_p9, %p4842_p8 }
  0x1b   :  { %4850 = shalt.err (!%p4847_p10)
}
  0x1c   :  { %s4851_s18 = scalar_lea.vmem %s5054_s16, 3072  ;;  %p4856_p12 = scmp.lt.s32.totalorder %s5054_s16, %s5054_s16 }
  0x1d   :  { %p4852_p11 = scmp.ne.s32.totalorder %s5054_s16, %s4851_s18  ;;  %p4857_p13 = scmp.lt.s32.totalorder %s4851_s18, %s4851_s18 }
  0x1f   :  { %p4858_p0 = por %p4857_p13, %p4856_p12 }
  0x21   :  { %p4859_p1 = pnand %p4858_p0, %p4852_p11 }
  0x23   :  { %4862 = shalt.err (!%p4859_p1)
}
  0x24   :  { %s4987_s1 = smov 64   ;;  %s4988_s14 = smov 4  }
  0x25   :  { %69 = dma.hbm_to_vmem [thread:$0]  %s6387_s4, 3072, %s5054_s16, [#allocation9], %s4987_s1, %s4987_s1, %s4988_s14  }
  0x26   :  { %s4989_s21 = smov [#allocation2]   ;;  %s4990_s23 = smov [#allocation7]  }
  0x27   :  { %s25_s22 = sshll.u32 %s4989_s21, 4  ;;  %s49_s24 = sshll.u32 %s4990_s23, 4  ;;  %s26_s22 = int_to_ptr.vmem [resolvable:$true] %s25_s22  ;;  %s5091_s24 = int_to_ptr.vmem [resolvable:$true] %s49_s24 }
  0x28   :  { %s4863_s29 = scalar_lea.hbm %s6383_s0, 1920 }
  0x29   :  { %p4864_p2 = scmp.ne.s32.totalorder %s6383_s0, %s4863_s29  ;;  %p4867_p3 = scmp.lt.u32.totalorder %s4863_s29, %s6383_s0 }
  0x2b   :  { %p4869_p4 = pnand %p4867_p3, %p4864_p2 }
  0x2d   :  { %4872 = shalt.err (!%p4869_p4)
}
  0x2e   :  { %s4873_s4 = scalar_lea.vmem %s26_s22, 1920  ;;  %p4878_p6 = scmp.lt.s32.totalorder %s26_s22, %s26_s22 }
  0x2f   :  { %p4874_p5 = scmp.ne.s32.totalorder %s26_s22, %s4873_s4  ;;  %p4879_p7 = scmp.lt.s32.totalorder %s4873_s4, %s4873_s4 }
  0x31   :  { %p4880_p8 = por %p4879_p7, %p4878_p6 }
  0x33   :  { %p4881_p9 = pnand %p4880_p8, %p4874_p5 }
  0x35   :  { %4884 = shalt.err (!%p4881_p9)
}
  0x36   :  { %31 = dma.hbm_to_vmem [thread:$0]  %s6383_s0, 1920, %s26_s22, [#allocation3], %s4985_s25, %s4985_s25, %s4986_s26  }
  0x37   :  { %s4885_s19 = scalar_lea.hbm %s6385_s2, 9216 }
  0x38   :  { %p4886_p10 = scmp.ne.s32.totalorder %s6385_s2, %s4885_s19  ;;  %p4889_p11 = scmp.lt.u32.totalorder %s4885_s19, %s6385_s2 }
  0x3a   :  { %p4891_p12 = pnand %p4889_p11, %p4886_p10 }
  0x3c   :  { %4894 = shalt.err (!%p4891_p12)
}
  0x3d   :  { %s4895_s28 = scalar_lea.vmem %s5091_s24, 9216  ;;  %p4900_p0 = scmp.lt.s32.totalorder %s5091_s24, %s5091_s24 }
  0x3e   :  { %p4896_p13 = scmp.ne.s32.totalorder %s5091_s24, %s4895_s28  ;;  %p4901_p1 = scmp.lt.s32.totalorder %s4895_s28, %s4895_s28 }
  0x40   :  { %p4902_p2 = por %p4901_p1, %p4900_p0 }
  0x42   :  { %p4903_p3 = pnand %p4902_p2, %p4896_p13 }
  0x44   :  { %4906 = shalt.err (!%p4903_p3)
}
  0x45   :  { %55 = dma.hbm_to_vmem [thread:$0]  %s6385_s2, 9216, %s5091_s24, [#allocation6], %s4985_s25, %s4985_s25, %s4986_s26  }
  0x46   :  { %s4991_s29 = smov [#allocation10]   ;;  %s4992_s11 = smov [#allocation11]  }
  0x47   :  { %s77_s30 = sshll.u32 %s4991_s29, 4  ;;  %s91_s12 = sshll.u32 %s4992_s11, 4  ;;  %s78_s30 = int_to_ptr.vmem [resolvable:$true] %s77_s30  ;;  %s5128_s12 = int_to_ptr.vmem [resolvable:$true] %s91_s12 }
  0x48   :  { %s4907_s16 = scalar_lea.hbm %s6389_s6, 9216 }
  0x49   :  { %p4908_p4 = scmp.ne.s32.totalorder %s6389_s6, %s4907_s16  ;;  %p4911_p5 = scmp.lt.u32.totalorder %s4907_s16, %s6389_s6 }
  0x4b   :  { %p4913_p6 = pnand %p4911_p5, %p4908_p4 }
  0x4d   :  { %4916 = shalt.err (!%p4913_p6)
}
  0x4e   :  { %s4917_s2 = scalar_lea.vmem %s78_s30, 9216  ;;  %p4922_p8 = scmp.lt.s32.totalorder %s78_s30, %s78_s30 }
  0x4f   :  { %p4918_p7 = scmp.ne.s32.totalorder %s78_s30, %s4917_s2  ;;  %p4923_p9 = scmp.lt.s32.totalorder %s4917_s2, %s4917_s2 }
  0x51   :  { %p4924_p10 = por %p4923_p9, %p4922_p8 }
  0x53   :  { %p4925_p11 = pnand %p4924_p10, %p4918_p7 }
  0x55   :  { %4928 = shalt.err (!%p4925_p11)
}
  0x56   :  { %83 = dma.hbm_to_vmem [thread:$0]  %s6389_s6, 9216, %s78_s30, [#allocation9], %s4985_s25, %s4985_s25, %s4986_s26  }
  0x57   :  { %s4929_s27 = scalar_lea.hbm %s6391_s8, 3072 }
  0x58   :  { %p4930_p12 = scmp.ne.s32.totalorder %s6391_s8, %s4929_s27  ;;  %p4933_p13 = scmp.lt.u32.totalorder %s4929_s27, %s6391_s8 }
  0x5a   :  { %p4935_p0 = pnand %p4933_p13, %p4930_p12 }
  0x5c   :  { %4938 = shalt.err (!%p4935_p0)
}
  0x5d   :  { %s4939_s11 = scalar_lea.vmem %s5128_s12, 3072  ;;  %p4944_p2 = scmp.lt.s32.totalorder %s5128_s12, %s5128_s12 }
  0x5e   :  { %p4940_p1 = scmp.ne.s32.totalorder %s5128_s12, %s4939_s11  ;;  %p4945_p3 = scmp.lt.s32.totalorder %s4939_s11, %s4939_s11 }
  0x60   :  { %p4946_p4 = por %p4945_p3, %p4944_p2 }
  0x62   :  { %p4947_p5 = pnand %p4946_p4, %p4940_p1 }
  0x64   :  { %4950 = shalt.err (!%p4947_p5)
}
  0x65   :  { %97 = dma.hbm_to_vmem [thread:$0]  %s6391_s8, 3072, %s5128_s12, [#allocation12], %s4987_s1, %s4987_s1, %s4988_s14  }
  0x66   :  { %4973 = dma.done.wait [#allocation3], 1920  }
  0x67   :  { %4974 = vsyncadd [#allocation3], 4294965376 }
  0x68   :  { %4975 = dma.done.wait [#allocation6], 9600  }
  0x69   :  { %4976 = vsyncadd [#allocation6], 4294957696 }
  0x6a   :  { %4977 = dma.done.wait [#allocation9], 12288  }
  0x6b   :  { %4978 = vsyncadd [#allocation9], 4294955008 }
  0x6c   :  { %4979 = dma.done.wait [#allocation12], 3072  }
  0x6d   :  { %4980 = vsyncadd [#allocation12], 4294964224  ;;  %v4318_v0 = vld [vmem:[#allocation10 + $0x4] ss:$12 sps:$4 sm:$0xff]   ;;  %v4320_v1 = vld [vmem:[#allocation10] ss:$12 sps:$4 sm:$0xff]  }
  0x6e   :  { %831 = vmatprep.subr.bf16.mxu0 %v4318_v0  ;;  %v4321_v2 = vld [vmem:[#allocation10 + $0x1c] ss:$12 sps:$4 sm:$0xff]   ;;  %v4323_v3 = vld [vmem:[#allocation10 + $0x18] ss:$12 sps:$4 sm:$0xff]   ;;  %v4324_v4 = vld [vmem:[#allocation10 + $0x34] ss:$12 sps:$4 sm:$0xff]  }
  0x6f   :  { %832 = vmatpush1.bf16.msra.mxu0 %v4320_v1  ;;  %v4326_v5 = vld [vmem:[#allocation10 + $0x30] ss:$12 sps:$4 sm:$0xff]   ;;  %v4327_v6 = vld [vmem:[#allocation10 + $0x4c] ss:$12 sps:$4 sm:$0xff]   ;;  %v4329_v7 = vld [vmem:[#allocation10 + $0x48] ss:$12 sps:$4 sm:$0xff]  }
  0x70   :  { %833 = vmatprep.subr.bf16.mxu0 %v4321_v2  ;;  %v4330_v8 = vld [vmem:[#allocation10 + $0x64] ss:$12 sps:$4 sm:$0xff]   ;;  %v4348_v9 = vld [vmem:[#allocation10 + $0xc8] ss:$12 sps:$4 sm:$0xff]   ;;  %v4332_v10 = vld [vmem:[#allocation10 + $0x60] ss:$12 sps:$4 sm:$0xff]  }
  0x71   :  { %v4333_v11 = vld [vmem:[#allocation10 + $0x7c] ss:$12 sps:$4 sm:$0xff]   ;;  %3642 = vmatprep.subr.bf16.mxu1 %v4348_v9  ;;  %v4353_v13 = vld [vmem:[#allocation10 + $0xe0] ss:$12 sps:$4 sm:$0xff]   ;;  %v4335_v14 = vld [vmem:[#allocation10 + $0x78] ss:$12 sps:$4 sm:$0xff]  }
  0x72   :  { %v4351_v12 = vld [vmem:[#allocation10 + $0x8] ss:$12 sps:$4 sm:$0xff]   ;;  %v4356_v16 = vld [vmem:[#allocation10 + $0x20] ss:$12 sps:$4 sm:$0xff]   ;;  %v4358_v17 = vld [vmem:[#allocation10 + $0xf8] ss:$12 sps:$4 sm:$0xff]  }
  0x73   :  { %834 = vmatpush1.bf16.msra.mxu0 %v4323_v3  ;;  %3643 = vmatpush3.bf16.msra.mxu1 %v4351_v12  ;;  %v4336_v15 = vld [vmem:[#allocation10 + $0x94] ss:$12 sps:$4 sm:$0xff]   ;;  %v4338_v18 = vld [vmem:[#allocation10 + $0x90] ss:$12 sps:$4 sm:$0xff]   ;;  %v4361_v19 = vld [vmem:[#allocation10 + $0x38] ss:$12 sps:$4 sm:$0xff]  }
  0x74   :  { %835 = vmatprep.subr.bf16.mxu0 %v4324_v4  ;;  %3644 = vmatprep.subr.bf16.mxu1 %v4353_v13  ;;  %v4339_v20 = vld [vmem:[#allocation10 + $0xac] ss:$12 sps:$4 sm:$0xff]   ;;  %v4363_v21 = vld [vmem:[#allocation10 + $0x110] ss:$12 sps:$4 sm:$0xff]   ;;  %v4341_v22 = vld [vmem:[#allocation10 + $0xa8] ss:$12 sps:$4 sm:$0xff]  }
  0x75   :  { %v4366_v23 = vld [vmem:[#allocation10 + $0x50] ss:$12 sps:$4 sm:$0xff]   ;;  %v4368_v24 = vld [vmem:[#allocation10 + $0x128] ss:$12 sps:$4 sm:$0xff]   ;;  %v4344_v26 = vld [vmem:[#allocation10 + $0xc0] ss:$12 sps:$4 sm:$0xff]  }
  0x76   :  { %v4342_v25 = vld [vmem:[#allocation10 + $0xc4] ss:$12 sps:$4 sm:$0xff]   ;;  %v4371_v27 = vld [vmem:[#allocation10 + $0x68] ss:$12 sps:$4 sm:$0xff]   ;;  %v4373_v28 = vld [vmem:[#allocation10 + $0x140] ss:$12 sps:$4 sm:$0xff]  }
  0x77   :  { %836 = vmatpush1.bf16.msra.mxu0 %v4326_v5  ;;  %3645 = vmatpush3.bf16.msra.mxu1 %v4356_v16  ;;  %v4345_v29 = vld [vmem:[#allocation10 + $0xdc] ss:$12 sps:$4 sm:$0xff]   ;;  %v4347_v30 = vld [vmem:[#allocation10 + $0xd8] ss:$12 sps:$4 sm:$0xff]   ;;  %v4376_v31 = vld [vmem:[#allocation10 + $0x80] ss:$12 sps:$4 sm:$0xff]  }
  0x78   :  { %837 = vmatprep.subr.bf16.mxu0 %v4327_v6  ;;  %3646 = vmatprep.subr.bf16.mxu1 %v4358_v17  ;;  %v4378_v32 = vld [vmem:[#allocation10 + $0x158] ss:$12 sps:$4 sm:$0xff]   ;;  %v4349_v34 = vld [vmem:[#allocation10 + $0xf4] ss:$12 sps:$4 sm:$0xff]   ;;  %v4352_v35 = vld [vmem:[#allocation10 + $0xf0] ss:$12 sps:$4 sm:$0xff]  }
  0x79   :  { %v4381_v33 = vld [vmem:[#allocation5 + $0x4] ss:$12 sps:$4 sm:$0xff]   ;;  %v4386_v37 = vld [vmem:[#allocation10 + $0x170] ss:$12 sps:$4 sm:$0xff]   ;;  %v4357_v40 = vld [vmem:[#allocation10 + $0x108] ss:$12 sps:$4 sm:$0xff]  }
  0x7a   :  { %863 = vmatprep.mubr.bf16.mxu0 %v4381_v33  ;;  %949 = vmatprep.mubr.bf16.mxu1 %v4381_v33  ;;  %v4385_v36 = vld [vmem:[#allocation10 + $0x98] ss:$12 sps:$4 sm:$0xff]   ;;  %v4390_v39 = vld [vmem:[#allocation10 + $0xb0] ss:$12 sps:$4 sm:$0xff]   ;;  %v4362_v42 = vld [vmem:[#allocation10 + $0x120] ss:$12 sps:$4 sm:$0xff]  }
  0x7b   :  { %838 = vmatpush1.bf16.msra.mxu0 %v4329_v7  ;;  %3647 = vmatpush3.bf16.msra.mxu1 %v4361_v19  ;;  %v4354_v38 = vld [vmem:[#allocation10 + $0x10c] ss:$12 sps:$4 sm:$0xff]   ;;  %v4359_v41 = vld [vmem:[#allocation10 + $0x124] ss:$12 sps:$4 sm:$0xff]   ;;  %v4394_v43 = vld [vmem:[#allocation10 + $0x188] ss:$12 sps:$4 sm:$0xff]  }
  0x7c   :  { %839 = vmatprep.subr.bf16.mxu0 %v4330_v8  ;;  %3648 = vmatprep.subr.bf16.mxu1 %v4363_v21  ;;  %v4379_v44 = vld [vmem:[#allocation5] ss:$12 sps:$4 sm:$0xff]   ;;  %v6398_v45 = vmov 0.0   ;;  %v4398_v47 = vld [vmem:[#allocation10 + $0x1a0] ss:$12 sps:$4 sm:$0xff]   ;;  %vm4994_vm0 = vmmov 0  }
  0x7d   :  { %v4364_v46 = vld [vmem:[#allocation10 + $0x13c] ss:$12 sps:$4 sm:$0xff]   ;;  %v4367_v48 = vld [vmem:[#allocation10 + $0x138] ss:$12 sps:$4 sm:$0xff]   ;;  %v4369_v49 = vld [vmem:[#allocation10 + $0x154] ss:$12 sps:$4 sm:$0xff]  }
  0x7e   :  { %v4402_v50 = vld [vmem:[#allocation10 + $0x1b8] ss:$12 sps:$4 sm:$0xff]   ;;  %v4372_v51 = vld [vmem:[#allocation10 + $0x150] ss:$12 sps:$4 sm:$0xff]   ;;  %v4377_v54 = vld [vmem:[#allocation10 + $0x168] ss:$12 sps:$4 sm:$0xff]  }
  0x7f   :  { %840 = vmatpush1.bf16.msra.mxu0 %v4332_v10  ;;  %3649 = vmatpush3.bf16.msra.mxu1 %v4366_v23  ;;  %v4374_v52 = vld [vmem:[#allocation10 + $0x16c] ss:$12 sps:$4 sm:$0xff]   ;;  %v4406_v53 = vld [vmem:[#allocation10 + $0x1d0] ss:$12 sps:$4 sm:$0xff]   ;;  %v4410_v56 = vld [vmem:[#allocation10 + $0x1e8] ss:$12 sps:$4 sm:$0xff]  }
  0x80   :  { %841 = vmatprep.subr.bf16.mxu0 %v4333_v11  ;;  %3650 = vmatprep.subr.bf16.mxu1 %v4368_v24  ;;  %v4384_v55 = vld [vmem:[#allocation10 + $0x184] ss:$12 sps:$4 sm:$0xff]   ;;  %v4382_v57 = vld [vmem:[#allocation10 + $0x180] ss:$12 sps:$4 sm:$0xff]   ;;  %v4389_v58 = vld [vmem:[#allocation10 + $0x19c] ss:$12 sps:$4 sm:$0xff]  }
  0x81   :  { %v4414_v59 = vld [vmem:[#allocation10 + $0x200] ss:$12 sps:$4 sm:$0xff]   ;;  %v4387_v60 = vld [vmem:[#allocation10 + $0x198] ss:$12 sps:$4 sm:$0xff]   ;;  %v6408_v62 = vmov 0   ;;  %v4423_v13 = vld [vmem:[#allocation11 + $0x50] sm:$0xff]  }
  0x82   :  { %v4393_v61 = vld [vmem:[#allocation10 + $0x1b4] ss:$12 sps:$4 sm:$0xff]   ;;  %v4416_v63 = vld [vmem:[#allocation10 + $0x218] ss:$12 sps:$4 sm:$0xff]   ;;  %v4391_v0 = vld [vmem:[#allocation10 + $0x1b0] ss:$12 sps:$4 sm:$0xff]  }
  0x83   :  { %842 = vmatpush1.bf16.msra.mxu0 %v4335_v14  ;;  %3651 = vmatpush3.bf16.msra.mxu1 %v4371_v27  ;;  %v4397_v1 = vld [vmem:[#allocation10 + $0x1cc] ss:$12 sps:$4 sm:$0xff]   ;;  %v4417_v2 = vld [vmem:[#allocation10 + $0x230] ss:$12 sps:$4 sm:$0xff]   ;;  %v4395_v3 = vld [vmem:[#allocation10 + $0x1c8] ss:$12 sps:$4 sm:$0xff]  }
  0x84   :  { %843 = vmatprep.subr.bf16.mxu0 %v4336_v15  ;;  %3652 = vmatprep.subr.bf16.mxu1 %v4373_v28  ;;  %v4418_v4 = vld [vmem:[#allocation11 + $0x40] sm:$0xff]   ;;  %v4415_v8 = vld [vmem:[#allocation5 + $0x8] ss:$12 sps:$4 sm:$0xff]   ;;  %v4420_v9 = vld [vmem:[#allocation11 + $0x48] sm:$0xff]  }
  0x85   :  { %v4401_v5 = vld [vmem:[#allocation10 + $0x1e4] ss:$12 sps:$4 sm:$0xff]   ;;  %v4399_v7 = vld [vmem:[#allocation10 + $0x1e0] ss:$12 sps:$4 sm:$0xff]   ;;  %v4405_v10 = vld [vmem:[#allocation10 + $0x1fc] ss:$12 sps:$4 sm:$0xff]  }
  0x86   :  { %v4419_v6 = vld [vmem:[#allocation11] sm:$0xff]   ;;  %v4421_v11 = vld [vmem:[#allocation11 + $0x8] sm:$0xff]   ;;  %v4424_v15 = vld [vmem:[#allocation11 + $0x10] sm:$0xff]  }
  0x87   :  { %844 = vmatpush1.bf16.msra.mxu0 %v4338_v18  ;;  %3653 = vmatpush3.bf16.msra.mxu1 %v4376_v31  ;;  %v4403_v12 = vld [vmem:[#allocation10 + $0x1f8] ss:$12 sps:$4 sm:$0xff]   ;;  %v4409_v14 = vld [vmem:[#allocation10 + $0x214] ss:$12 sps:$4 sm:$0xff]   ;;  %v4407_v16 = vld [vmem:[#allocation10 + $0x210] ss:$12 sps:$4 sm:$0xff]  }
  0x88   :  { %845 = vmatprep.subr.bf16.mxu0 %v4339_v20  ;;  %3654 = vmatprep.subr.bf16.mxu1 %v4378_v32  ;;  %v4426_v17 = vld [vmem:[#allocation11 + $0x58] sm:$0xff]   ;;  %v4411_v19 = vld [vmem:[#allocation10 + $0x228] ss:$12 sps:$4 sm:$0xff]   ;;  %v4422_v20 = vld [vmem:[#allocation11 + $0x80] sm:$0xff]  }
  0x89   :  { %v4413_v18 = vld [vmem:[#allocation10 + $0x22c] ss:$12 sps:$4 sm:$0xff]   ;;  %v4428_v23 = vld [vmem:[#allocation11 + $0x90] sm:$0xff]   ;;  %v4429_v24 = vld [vmem:[#allocation11 + $0x60] sm:$0xff]  }
  0x8a   :  { %v4425_v21 = vld [vmem:[#allocation11 + $0x88] sm:$0xff]   ;;  %v4436_v31 = vld [vmem:[#allocation11 + $0x30] sm:$0xff]   ;;  %v4438_v32 = vld [vmem:[#allocation11 + $0x78] sm:$0xff]  }
  0x8b   :  { %846 = vmatpush1.bf16.msra.mxu0 %v4341_v22  ;;  %3655 = vmatpush3.bf16.msra.mxu1 %v4385_v36  ;;  %v4427_v22 = vld [vmem:[#allocation11 + $0x18] sm:$0xff]   ;;  %v4432_v27 = vld [vmem:[#allocation11 + $0x68] sm:$0xff]   ;;  %v5185_v36 = vld [vmem:[#allocation7 + $0x4] ss:$12 sps:$4 sm:$0xff]  }
  0x8c   :  { %847 = vmatprep.subr.bf16.mxu0 %v4342_v25  ;;  %3656 = vmatprep.subr.bf16.mxu1 %v4386_v37  ;;  %v4430_v25 = vld [vmem:[#allocation11 + $0x20] sm:$0xff]   ;;  %v4433_v28 = vld [vmem:[#allocation11 + $0x28] sm:$0xff]   ;;  %6569 = vst [vmem:[#allocation19_spill] sm:$0xff] %v5185_v36  ;;  %v4444_v37 = vld [vmem:[#allocation11 + $0xb8] sm:$0xff]  }
  0x8d   :  { %v4437_v33 = vld [vmem:[#allocation11 + $0xa8] sm:$0xff]  }
  0x8f   :  { %848 = vmatpush1.bf16.msra.mxu0 %v4344_v26  ;;  %3657 = vmatpush3.bf16.msra.mxu1 %v4390_v39  ;;  %v4431_v26 = vld [vmem:[#allocation11 + $0x98] sm:$0xff]  }
  0x90   :  { %849 = vmatprep.subr.bf16.mxu0 %v4345_v29  ;;  %4014 = vmatprep.subr.bf16.mxu1 %v6398_v45  ;;  %v4434_v29 = vld [vmem:[#allocation11 + $0xa0] sm:$0xff]  }
  0x92   :  { %950 = vmatmul.mubr.bf16.vlgmr.msra.gmra.mrb[0].mxu1 %v4379_v44 }
  0x93   :  { %850 = vmatpush1.bf16.msra.mxu0 %v4347_v30  ;;  %4015 = vmatpush3.bf16.msra.mxu1 %v4394_v43  ;;  %v4435_v30 = vld [vmem:[#allocation11 + $0x70] sm:$0xff]  }
  0x94   :  { %851 = vmatprep.subr.bf16.mxu0 %v4349_v34  ;;  %4030 = vmatprep.mubr.msk.bf16.mxu1 %vm4994_vm0, %v6398_v45  ;;  %v4439_v34 = vld [vmem:[#allocation11 + $0x38] sm:$0xff]  }
  0x95   :  { %4016 = vmatprep.subr.bf16.mxu1 %v6398_v45 }
  0x97   :  { %852 = vmatpush1.bf16.msra.mxu0 %v4352_v35  ;;  %4017 = vmatpush3.bf16.msra.mxu1 %v4398_v47  ;;  %v4440_v35 = vld [vmem:[#allocation11 + $0xb0] sm:$0xff]  }
  0x98   :  { %853 = vmatprep.subr.bf16.mxu0 %v4354_v38  ;;  %4018 = vmatprep.subr.bf16.mxu1 %v6398_v45  ;;  %v5189_v38 = vld [vmem:[#allocation7 + $0xc8] ss:$12 sps:$4 sm:$0xff]  }
  0x99   :  { %6570 = vst [vmem:[#allocation20_spill] sm:$0xff] %v5189_v38 }
  0x9b   :  { %854 = vmatpush1.bf16.msra.mxu0 %v4357_v40  ;;  %4019 = vmatpush3.bf16.msra.mxu1 %v4402_v50 }
  0x9c   :  { %855 = vmatprep.subr.bf16.mxu0 %v4359_v41  ;;  %4020 = vmatprep.subr.bf16.mxu1 %v6398_v45 }
  0x9f   :  { %856 = vmatpush1.bf16.msra.mxu0 %v4362_v42  ;;  %4021 = vmatpush3.bf16.msra.mxu1 %v4406_v53 }
  0xa0   :  { %857 = vmatprep.subr.bf16.mxu0 %v4364_v46  ;;  %4022 = vmatprep.subr.bf16.mxu1 %v6398_v45  ;;  %v6394_v46 = vlaneseq }
  0xa2   :  { %v5193_v47 = vshrl.u32 %v6394_v46, 7  ;;  %v5378_v46 = vld [vmem:[#allocation7 + $0x168] ss:$12 sps:$4 sm:$0xff]  }
  0xa3   :  { %858 = vmatpush1.bf16.msra.mxu0 %v4367_v48  ;;  %4023 = vmatpush3.bf16.msra.mxu1 %v4410_v56  ;;  %6599 = vst [vmem:[#allocation49_spill] sm:$0xff] %v5378_v46 }
  0xa4   :  { %859 = vmatprep.subr.bf16.mxu0 %v4369_v49  ;;  %4024 = vmatprep.subr.bf16.mxu1 %v6398_v45  ;;  %v6397_v48 = vsub.s32 2, %v5193_v47  ;;  %v361_v49 = vld [vmem:[%s6390_s7] sm:$0x7] }
  0xa6   :  { %v427_v50 = vrot.slane %v361_v49, %v6397_v48  ;;  %v5387_v48 = vld [vmem:[#allocation7 + $0x19c] ss:$12 sps:$4 sm:$0xff]  }
  0xa7   :  { %860 = vmatpush1.bf16.msra.mxu0 %v4372_v51  ;;  %4025 = vmatpush3.bf16.msra.mxu1 %v4414_v59  ;;  %v6396_v59 = vsub.s32 0, %v5193_v47  ;;  %6602 = vst [vmem:[#allocation52_spill] sm:$0xff] %v5387_v48 }
  0xa8   :  { %861 = vmatprep.subr.bf16.mxu0 %v4374_v52  ;;  %4026 = vmatprep.subr.bf16.mxu1 %v6398_v45 }
  0xab   :  { %862 = vmatpush1.bf16.msra.mxu0 %v4377_v54  ;;  %4027 = vmatpush3.bf16.msra.mxu1 %v4416_v63  ;;  %v419_v63 = vrot.slane %v361_v49, %v6396_v59  ;;  %v5384_v59 = vld [vmem:[#allocation7 + $0x180] ss:$12 sps:$4 sm:$0xff]  }
  0xac   :  { %874 = vmatprep.subr.bf16.mxu0 %v4384_v55  ;;  %4028 = vmatprep.subr.bf16.mxu1 %v6398_v45  ;;  %6601 = vst [vmem:[#allocation51_spill] sm:$0xff] %v5384_v59 }
  0xae   :  { %864 = vmatmul.mubr.bf16.vlgmr.msra.gmra.mrb[0].mxu0 %v4379_v44 }
  0xaf   :  { %875 = vmatpush1.bf16.msra.mxu0 %v4382_v57  ;;  %906 = vmatprep.mubr.bf16.mxu0 %v6408_v62 }
  0xb0   :  { %876 = vmatprep.subr.bf16.mxu0 %v4389_v58  ;;  %4029 = vmatpush3.bf16.msra.mxu1 %v4417_v2  ;;  %v5207_v2 = vld [vmem:[#allocation7 + $0x8] ss:$12 sps:$4 sm:$0xff]  }
  0xb1   :  { %3673 = vmatprep.subr.bf16.mxu1 %v4418_v4  ;;  %v5209_v4 = vld [vmem:[#allocation7 + $0xe0] ss:$12 sps:$4 sm:$0xff]  }
  0xb3   :  { %877 = vmatpush1.bf16.msra.mxu0 %v4387_v60  ;;  %4031 = vmatmul.mubr.bf16.vlgmr.msra.gmra.mrb[4].mxu1 %v4415_v8  ;;  %v6395_v60 = vsub.s32 1, %v5193_v47 }
  0xb4   :  { %878 = vmatprep.subr.bf16.mxu0 %v4393_v61  ;;  %3674 = vmatpush3.bf16.msra.mxu1 %v4419_v6  ;;  %v4505_v6 = vld [vmem:[#allocation2 + $0x4] ss:$12 sps:$4 sm:$0xff]  }
  0xb5   :  { %3675 = vmatprep.subr.bf16.mxu1 %v4420_v9 }
  0xb7   :  { %879 = vmatpush1.bf16.msra.mxu0 %v4391_v0 }
  0xb8   :  { %880 = vmatprep.subr.bf16.mxu0 %v4397_v1  ;;  %3676 = vmatpush3.bf16.msra.mxu1 %v4421_v11  ;;  %v423_v1 = vrot.slane %v361_v49, %v6395_v60  ;;  %v5212_v11 = vld [vmem:[#allocation7 + $0x20] ss:$12 sps:$4 sm:$0xff]   ;;  %v5381_v60 = vld [vmem:[#allocation7 + $0x184] ss:$12 sps:$4 sm:$0xff]  }
  0xb9   :  { %3677 = vmatprep.subr.bf16.mxu1 %v4423_v13  ;;  %v5280_v49 = vld [vmem:[#allocation7 + $0x60] ss:$12 sps:$4 sm:$0xff]   ;;  %6600 = vst [vmem:[#allocation50_spill] sm:$0xff] %v5381_v60 }
  0xba   :  { %6577 = vst [vmem:[#allocation27_spill] sm:$0xff] %v5280_v49 }
  0xbb   :  { %881 = vmatpush1.bf16.msra.mxu0 %v4395_v3 }
  0xbc   :  { %882 = vmatprep.subr.bf16.mxu0 %v4401_v5  ;;  %3678 = vmatpush3.bf16.msra.mxu1 %v4424_v15 }
  0xbd   :  { %3679 = vmatprep.subr.bf16.mxu1 %v4426_v17  ;;  %v5221_v17 = vld [vmem:[#allocation7 + $0x110] ss:$12 sps:$4 sm:$0xff]  }
  0xbf   :  { %883 = vmatpush1.bf16.msra.mxu0 %v4399_v7 }
  0xc0   :  { %884 = vmatprep.subr.bf16.mxu0 %v4405_v10  ;;  %3680 = vmatpush3.bf16.msra.mxu1 %v4427_v22  ;;  %v5230_v22 = vld [vmem:[#allocation7 + $0x68] ss:$12 sps:$4 sm:$0xff]  }
  0xc1   :  { %3681 = vmatprep.subr.bf16.mxu1 %v4429_v24  ;;  %v5233_v24 = vld [vmem:[#allocation7 + $0x140] ss:$12 sps:$4 sm:$0xff]  }
  0xc3   :  { %885 = vmatpush1.bf16.msra.mxu0 %v4403_v12 }
  0xc4   :  { %886 = vmatprep.subr.bf16.mxu0 %v4409_v14  ;;  %3682 = vmatpush3.bf16.msra.mxu1 %v4430_v25  ;;  %v5215_v14 = vld [vmem:[#allocation7 + $0xf8] ss:$12 sps:$4 sm:$0xff]  }
  0xc5   :  { %3683 = vmatprep.subr.bf16.mxu1 %v4432_v27 }
  0xc7   :  { %887 = vmatpush1.bf16.msra.mxu0 %v4407_v16  ;;  %v5218_v16 = vld [vmem:[#allocation7 + $0x38] ss:$12 sps:$4 sm:$0xff]  }
  0xc8   :  { %888 = vmatprep.subr.bf16.mxu0 %v4413_v18  ;;  %3684 = vmatpush3.bf16.msra.mxu1 %v4433_v28  ;;  %v5224_v18 = vld [vmem:[#allocation7 + $0x50] ss:$12 sps:$4 sm:$0xff]   ;;  %v5235_v28 = vld [vmem:[#allocation7] ss:$12 sps:$4 sm:$0xff]  }
  0xc9   :  { %3685 = vmatprep.subr.bf16.mxu1 %v4435_v30  ;;  %v5240_v30 = vld [vmem:[#allocation7 + $0x80] ss:$12 sps:$4 sm:$0xff]  }
  0xcb   :  { %889 = vmatpush1.bf16.msra.mxu0 %v4411_v19  ;;  %v5227_v19 = vld [vmem:[#allocation7 + $0x128] ss:$12 sps:$4 sm:$0xff]  }
  0xcc   :  { %4034 = vmatprep.subr.bf16.mxu0 %v6398_v45  ;;  %3686 = vmatpush3.bf16.msra.mxu1 %v4436_v31  ;;  %v5243_v31 = vld [vmem:[#allocation7 + $0x158] ss:$12 sps:$4 sm:$0xff]  }
  0xcd   :  { %3687 = vmatprep.subr.bf16.mxu1 %v4438_v32  ;;  %v5246_v32 = vld [vmem:[#allocation7 + $0x18] ss:$12 sps:$4 sm:$0xff]  }
  0xce   :  { %907 = vmatmul.mubr.bf16.vlgmr.msra.gmra.mrb[0].mxu0 %v4415_v8  ;;  %6571 = vst [vmem:[#allocation21_spill] sm:$0xff] %v5246_v32 }
  0xcf   :  { %4035 = vmatpush3.bf16.msra.mxu0 %v4422_v20  ;;  %4050 = vmatprep.mubr.msk.bf16.mxu0 %vm4994_vm0, %v6398_v45 }
  0xd0   :  { %4036 = vmatprep.subr.bf16.mxu0 %v6398_v45  ;;  %3688 = vmatpush3.bf16.msra.mxu1 %v4439_v34  ;;  %v5252_v34 = vld [vmem:[#allocation7 + $0x98] ss:$12 sps:$4 sm:$0xff]  }
  0xd1   :  { %1684 = vmatprep.subr.bf16.mxu1 %v5185_v36 }
  0xd3   :  { %4037 = vmatpush3.bf16.msra.mxu0 %v4425_v21 }
  0xd4   :  { %4038 = vmatprep.subr.bf16.mxu0 %v6398_v45 }
  0xd7   :  { %4039 = vmatpush3.bf16.msra.mxu0 %v4428_v23 }
  0xd8   :  { %4040 = vmatprep.subr.bf16.mxu0 %v6398_v45 }
  0xdb   :  { %4041 = vmatpush3.bf16.msra.mxu0 %v4431_v26 }
  0xdc   :  { %4042 = vmatprep.subr.bf16.mxu0 %v6398_v45 }
  0xdf   :  { %4043 = vmatpush3.bf16.msra.mxu0 %v4434_v29  ;;  %v5237_v29 = vld [vmem:[#allocation7 + $0x1c] ss:$12 sps:$4 sm:$0xff]  }
  0xe0   :  { %4044 = vmatprep.subr.bf16.mxu0 %v6398_v45 }
  0xe3   :  { %4045 = vmatpush3.bf16.msra.mxu0 %v4437_v33  ;;  %v5249_v33 = vld [vmem:[#allocation7 + $0x34] ss:$12 sps:$4 sm:$0xff]  }
  0xe4   :  { %4046 = vmatprep.subr.bf16.mxu0 %v6398_v45  ;;  %6572 = vst [vmem:[#allocation22_spill] sm:$0xff] %v5249_v33 }
  0xe7   :  { %4047 = vmatpush3.bf16.msra.mxu0 %v4440_v35  ;;  %v5255_v35 = vld [vmem:[#allocation7 + $0x170] ss:$12 sps:$4 sm:$0xff]  }
  0xe8   :  { %4048 = vmatprep.subr.bf16.mxu0 %v6398_v45 }
  0xeb   :  { %4049 = vmatpush3.bf16.msra.mxu0 %v4444_v37  ;;  %v5258_v37 = vld [vmem:[#allocation7 + $0x30] ss:$12 sps:$4 sm:$0xff]  }
  0xec   :  { %3704 = vmatprep.subr.bf16.mxu0 %v5189_v38  ;;  %6573 = vst [vmem:[#allocation23_spill] sm:$0xff] %v5258_v37 }
 0x165   :  { %v3658_v39 = vpop.f32.mrb[0].mxu1 }
 0x166   :  { %v3659_v40 = vpop.f32.mrb[1].mxu1 }
 0x167   :  { %v3660_v41 = vadd.f32 %v3659_v40, %v3658_v39  ;;  %v3661_v42 = vpop.f32.mrb[2].mxu1  ;;  %v5261_v39 = vld [vmem:[#allocation7 + $0x4c] ss:$12 sps:$4 sm:$0xff]   ;;  %v5264_v40 = vld [vmem:[#allocation7 + $0xb0] ss:$12 sps:$4 sm:$0xff]  }
 0x168   :  { %v3662_v43 = vpop.f32.mrb[3].mxu1  ;;  %6574 = vst [vmem:[#allocation24_spill] sm:$0xff] %v5261_v39 }
 0x169   :  { %v3663_v44 = vadd.f32 %v3662_v43, %v3661_v42  ;;  %v952_v51 = vadd.f32 %v3660_v41, %v427_v50  ;;  %v5268_v41 = vld [vmem:[#allocation7 + $0x48] ss:$12 sps:$4 sm:$0xff]   ;;  %v5271_v42 = vld [vmem:[#allocation7 + $0x64] ss:$12 sps:$4 sm:$0xff]  }
 0x16a   :  { %6575 = vst [vmem:[#allocation25_spill] sm:$0xff] %v5268_v41  ;;  %6576 = vst [vmem:[#allocation26_spill] sm:$0xff] %v5271_v42  ;;  %v5274_v43 = vld [vmem:[#allocation7 + $0x188] ss:$12 sps:$4 sm:$0xff]  }
 0x16b   :  { %v955_v52 = vadd.f32 %v3663_v44, %v427_v50  ;;  %v5276_v44 = vld [vmem:[#allocation2] ss:$12 sps:$4 sm:$0xff]  }
 0x16c   :  { %v5284_v50 = vld [vmem:[#allocation7 + $0x7c] ss:$12 sps:$4 sm:$0xff]  }
 0x16d   :  { %6578 = vst [vmem:[#allocation28_spill] sm:$0xff] %v5284_v50 }
 0x186   :  { %v992_v53 = vpop.f32.mrb[4].mxu1 }
 0x187   :  { %v993_v54 = vadd.f32 %v992_v53, %v952_v51  ;;  %v4032_v55 = vpop.f32.mrb[5].mxu1  ;;  %v5287_v51 = vld [vmem:[#allocation7 + $0x1a0] ss:$12 sps:$4 sm:$0xff]  }
 0x188   :  { %v995_v56 = vpop.f32.mrb[6].mxu1  ;;  %v5296_v53 = vld [vmem:[#allocation7 + $0x94] ss:$12 sps:$4 sm:$0xff]   ;;  %v5303_v55 = vld [vmem:[#allocation7 + $0x90] ss:$12 sps:$4 sm:$0xff]  }
 0x189   :  { %4582 = vtanh.f32 %v993_v54  ;;  %v996_v57 = vadd.f32 %v995_v56, %v955_v52  ;;  %v4033_v58 = vpop.f32.mrb[7].mxu1  ;;  %v5293_v52 = vld [vmem:[#allocation7 + $0x78] ss:$12 sps:$4 sm:$0xff]   ;;  %6580 = vst [vmem:[#allocation30_spill] sm:$0xff] %v5296_v53  ;;  %6581 = vst [vmem:[#allocation31_spill] sm:$0xff] %v5303_v55 }
 0x18a   :  { %6579 = vst [vmem:[#allocation29_spill] sm:$0xff] %v5293_v52  ;;  %v5299_v54 = vld [vmem:[#allocation7 + $0x1b8] ss:$12 sps:$4 sm:$0xff]   ;;  %v5313_v58 = vld [vmem:[#allocation7 + $0xa8] ss:$12 sps:$4 sm:$0xff]  }
 0x18b   :  { %4584 = vtanh.f32 %v996_v57  ;;  %v5306_v56 = vld [vmem:[#allocation7 + $0xac] ss:$12 sps:$4 sm:$0xff]   ;;  %v5309_v57 = vld [vmem:[#allocation7 + $0x1d0] ss:$12 sps:$4 sm:$0xff]   ;;  %6583 = vst [vmem:[#allocation33_spill] sm:$0xff] %v5313_v58 }
 0x18c   :  { %6582 = vst [vmem:[#allocation32_spill] sm:$0xff] %v5306_v56 }
 0x193   :  { %v4583_v61 = vpop.eup %4582 }
 0x195   :  { %v4585_v0 = vpop.eup %4584 }
 0x196   :  { %v1007_v3 = vpack.c.bf16 %v4585_v0, %v4583_v61  ;;  %v5316_v61 = vld [vmem:[#allocation7 + $0xc4] ss:$12 sps:$4 sm:$0xff]   ;;  %v5323_v0 = vld [vmem:[#allocation7 + $0xc0] ss:$12 sps:$4 sm:$0xff]  }
 0x197   :  { %6584 = vst [vmem:[#allocation34_spill] sm:$0xff] %v5316_v61  ;;  %6585 = vst [vmem:[#allocation35_spill] sm:$0xff] %v5323_v0 }
 0x198   :  { %4051 = vmatmul.mubr.bf16.vlgmr.msra.gmra.mrb[4].mxu0 %v1007_v3  ;;  %v5329_v3 = vld [vmem:[#allocation7 + $0x200] ss:$12 sps:$4 sm:$0xff]  }
 0x199   :  { %3705 = vmatpush3.bf16.msra.mxu0 %v5207_v2  ;;  %1802 = vmatprep.mubr.bf16.mxu0 %v4505_v6 }
 0x19a   :  { %3706 = vmatprep.subr.bf16.mxu0 %v5209_v4 }
 0x19d   :  { %3707 = vmatpush3.bf16.msra.mxu0 %v5212_v11 }
 0x19e   :  { %3708 = vmatprep.subr.bf16.mxu0 %v5215_v14 }
 0x1a1   :  { %v908_v5 = vpop.f32.mrb[0].mxu0  ;;  %3709 = vmatpush3.bf16.msra.mxu0 %v5218_v16 }
 0x1a2   :  { %v4254_v7 = vadd.f32 %v908_v5, %v419_v63  ;;  %v910_v8 = vpop.f32.mrb[1].mxu0  ;;  %3710 = vmatprep.subr.bf16.mxu0 %v5221_v17  ;;  %v5333_v5 = vld [vmem:[#allocation7 + $0xd8] ss:$12 sps:$4 sm:$0xff]  }
 0x1a3   :  { %v4255_v9 = vadd.f32 %v910_v8, %v423_v1  ;;  %v912_v10 = vpop.f32.mrb[2].mxu0  ;;  %6587 = vst [vmem:[#allocation37_spill] sm:$0xff] %v5333_v5  ;;  %v5343_v8 = vld [vmem:[#allocation7 + $0xf0] ss:$12 sps:$4 sm:$0xff]  }
 0x1a4   :  { %4586 = vtanh.f32 %v4254_v7  ;;  %v4256_v12 = vadd.f32 %v912_v10, %v419_v63  ;;  %v914_v13 = vpop.f32.mrb[3].mxu0  ;;  %v5319_v63 = vld [vmem:[#allocation7 + $0x1e8] ss:$12 sps:$4 sm:$0xff]   ;;  %v5339_v7 = vld [vmem:[#allocation7 + $0x218] ss:$12 sps:$4 sm:$0xff]   ;;  %6589 = vst [vmem:[#allocation39_spill] sm:$0xff] %v5343_v8 }
 0x1a5   :  { %4588 = vtanh.f32 %v4255_v9  ;;  %v4257_v15 = vadd.f32 %v914_v13, %v423_v1  ;;  %3711 = vmatpush3.bf16.msra.mxu0 %v5224_v18  ;;  %v5326_v1 = vld [vmem:[#allocation7 + $0xdc] ss:$12 sps:$4 sm:$0xff]   ;;  %v5346_v9 = vld [vmem:[#allocation7 + $0x10c] ss:$12 sps:$4 sm:$0xff]   ;;  %v5356_v13 = vld [vmem:[#allocation7 + $0x124] ss:$12 sps:$4 sm:$0xff]  }
 0x1a6   :  { %4590 = vtanh.f32 %v4256_v12  ;;  %3712 = vmatprep.subr.bf16.mxu0 %v5227_v19  ;;  %6586 = vst [vmem:[#allocation36_spill] sm:$0xff] %v5326_v1  ;;  %6590 = vst [vmem:[#allocation40_spill] sm:$0xff] %v5346_v9  ;;  %v5349_v10 = vld [vmem:[#allocation7 + $0x230] ss:$12 sps:$4 sm:$0xff]   ;;  %v5353_v12 = vld [vmem:[#allocation7 + $0x108] ss:$12 sps:$4 sm:$0xff]  }
 0x1a7   :  { %4592 = vtanh.f32 %v4257_v15  ;;  %6591 = vst [vmem:[#allocation41_spill] sm:$0xff] %v5353_v12  ;;  %6592 = vst [vmem:[#allocation42_spill] sm:$0xff] %v5356_v13  ;;  %v4539_v15 = vld [vmem:[#allocation2 + $0x8] ss:$12 sps:$4 sm:$0xff]  }
 0x1a9   :  { %3713 = vmatpush3.bf16.msra.mxu0 %v5230_v22 }
 0x1aa   :  { %3714 = vmatprep.subr.bf16.mxu0 %v5233_v24 }
 0x1ad   :  { %3715 = vmatpush3.bf16.msra.mxu0 %v5240_v30 }
 0x1ae   :  { %v4587_v20 = vpop.eup %4586  ;;  %3716 = vmatprep.subr.bf16.mxu0 %v5243_v31 }
 0x1af   :  { %v4589_v21 = vpop.eup %4588 }
 0x1b0   :  { %v4591_v23 = vpop.eup %4590 }
 0x1b1   :  { %v4593_v25 = vpop.eup %4592  ;;  %v1005_v26 = vpack.c.bf16 %v4591_v23, %v4587_v20  ;;  %3717 = vmatpush3.bf16.msra.mxu0 %v5252_v34  ;;  %v5360_v20 = vld [vmem:[#allocation7 + $0x120] ss:$12 sps:$4 sm:$0xff]   ;;  %v5366_v23 = vld [vmem:[#allocation7 + $0x138] ss:$12 sps:$4 sm:$0xff]  }
 0x1b2   :  { %v1006_v27 = vpack.c.bf16 %v4593_v25, %v4589_v21  ;;  %3718 = vmatprep.subr.bf16.mxu0 %v5255_v35  ;;  %6593 = vst [vmem:[#allocation43_spill] sm:$0xff] %v5360_v20  ;;  %v5363_v21 = vld [vmem:[#allocation7 + $0x13c] ss:$12 sps:$4 sm:$0xff]   ;;  %6595 = vst [vmem:[#allocation45_spill] sm:$0xff] %v5366_v23  ;;  %v5369_v25 = vld [vmem:[#allocation7 + $0x154] ss:$12 sps:$4 sm:$0xff]  }
 0x1b3   :  { %6594 = vst [vmem:[#allocation44_spill] sm:$0xff] %v5363_v21  ;;  %6596 = vst [vmem:[#allocation46_spill] sm:$0xff] %v5369_v25 }
 0x1b4   :  { %1190 = vmatprep.mubr.bf16.mxu1 %v1006_v27  ;;  %v5375_v27 = vld [vmem:[#allocation7 + $0x16c] ss:$12 sps:$4 sm:$0xff]  }
 0x1b5   :  { %1191 = vmatmul.mubr.bf16.vlgmr.msra.gmra.mrb[8].mxu1 %v1005_v26  ;;  %3719 = vmatpush3.bf16.msra.mxu0 %v5264_v40  ;;  %v5372_v26 = vld [vmem:[#allocation7 + $0x150] ss:$12 sps:$4 sm:$0xff]   ;;  %6598 = vst [vmem:[#allocation48_spill] sm:$0xff] %v5375_v27 }
 0x1b6   :  { %1685 = vmatpush1.bf16.msra.mxu1 %v5235_v28  ;;  %1716 = vmatprep.mubr.bf16.mxu1 %v4505_v6  ;;  %v5336_v6 = vld [vmem:[#allocation7 + $0xf4] ss:$12 sps:$4 sm:$0xff]   ;;  %6597 = vst [vmem:[#allocation47_spill] sm:$0xff] %v5372_v26 }
 0x1b7   :  { %1686 = vmatprep.subr.bf16.mxu1 %v5237_v29  ;;  %4054 = vmatprep.subr.bf16.mxu0 %v6398_v45  ;;  %6588 = vst [vmem:[#allocation38_spill] sm:$0xff] %v5336_v6 }
 0x1b8   :  { %1803 = vmatmul.mubr.bf16.vlgmr.msra.gmra.mrb[8].mxu0 %v5276_v44 }
 0x1b9   :  { %4055 = vmatpush3.bf16.msra.mxu0 %v5274_v43  ;;  %4070 = vmatprep.mubr.msk.bf16.mxu0 %vm4994_vm0, %v6398_v45 }
 0x1ba   :  { %1687 = vmatpush1.bf16.msra.mxu1 %v5246_v32  ;;  %4056 = vmatprep.subr.bf16.mxu0 %v6398_v45 }
 0x1bb   :  { %1688 = vmatprep.subr.bf16.mxu1 %v5249_v33 }
 0x1bd   :  { %4057 = vmatpush3.bf16.msra.mxu0 %v5287_v51 }
 0x1be   :  { %1689 = vmatpush1.bf16.msra.mxu1 %v5258_v37  ;;  %4058 = vmatprep.subr.bf16.mxu0 %v6398_v45 }
 0x1bf   :  { %1690 = vmatprep.subr.bf16.mxu1 %v5261_v39 }
 0x1c1   :  { %4059 = vmatpush3.bf16.msra.mxu0 %v5299_v54 }
 0x1c2   :  { %1691 = vmatpush1.bf16.msra.mxu1 %v5268_v41  ;;  %4060 = vmatprep.subr.bf16.mxu0 %v6398_v45 }
 0x1c3   :  { %1692 = vmatprep.subr.bf16.mxu1 %v5271_v42 }
 0x1c5   :  { %4061 = vmatpush3.bf16.msra.mxu0 %v5309_v57 }
 0x1c6   :  { %1693 = vmatpush1.bf16.msra.mxu1 %v5280_v49  ;;  %4062 = vmatprep.subr.bf16.mxu0 %v6398_v45 }
 0x1c7   :  { %1694 = vmatprep.subr.bf16.mxu1 %v5284_v50 }
 0x1c9   :  { %4063 = vmatpush3.bf16.msra.mxu0 %v5319_v63 }
 0x1ca   :  { %1695 = vmatpush1.bf16.msra.mxu1 %v5293_v52  ;;  %4064 = vmatprep.subr.bf16.mxu0 %v6398_v45 }
 0x1cb   :  { %1696 = vmatprep.subr.bf16.mxu1 %v5296_v53 }
 0x1cd   :  { %4065 = vmatpush3.bf16.msra.mxu0 %v5329_v3 }
 0x1ce   :  { %1697 = vmatpush1.bf16.msra.mxu1 %v5303_v55  ;;  %4066 = vmatprep.subr.bf16.mxu0 %v6398_v45 }
 0x1cf   :  { %1698 = vmatprep.subr.bf16.mxu1 %v5306_v56 }
 0x1d1   :  { %4067 = vmatpush3.bf16.msra.mxu0 %v5339_v7 }
 0x1d2   :  { %1699 = vmatpush1.bf16.msra.mxu1 %v5313_v58  ;;  %4068 = vmatprep.subr.bf16.mxu0 %v6398_v45  ;;  %v5391_v45 = vld [vmem:[#allocation7 + $0x198] ss:$12 sps:$4 sm:$0xff]  }
 0x1d3   :  { %1700 = vmatprep.subr.bf16.mxu1 %v5316_v61  ;;  %6603 = vst [vmem:[#allocation53_spill] sm:$0xff] %v5391_v45 }
 0x1d5   :  { %4069 = vmatpush3.bf16.msra.mxu0 %v5349_v10 }
 0x1d6   :  { %1701 = vmatpush1.bf16.msra.mxu1 %v5323_v0  ;;  %v5505_v0 = vld [vmem:[#allocation8 + $0xb0] sm:$0xff]  }
 0x1d7   :  { %1702 = vmatprep.subr.bf16.mxu1 %v5326_v1  ;;  %6632 = vst [vmem:[#allocation81_spill] sm:$0xff] %v5505_v0 }
 0x1d8   :  { %4071 = vmatmul.mubr.bf16.vlgmr.msra.gmra.mrb[12].mxu0 %v4539_v15 }
 0x1da   :  { %1703 = vmatpush1.bf16.msra.mxu1 %v5333_v5 }
 0x1db   :  { %1704 = vmatprep.subr.bf16.mxu1 %v5336_v6  ;;  %v5501_v6 = vld [vmem:[#allocation8 + $0x38] sm:$0xff]  }
 0x1dc   :  { %6631 = vst [vmem:[#allocation80_spill] sm:$0xff] %v5501_v6 }
 0x1de   :  { %1705 = vmatpush1.bf16.msra.mxu1 %v5343_v8  ;;  %v5494_v8 = vld [vmem:[#allocation8 + $0x78] sm:$0xff]  }
 0x1df   :  { %1706 = vmatprep.subr.bf16.mxu1 %v5346_v9  ;;  %v5486_v9 = vld [vmem:[#allocation8 + $0x70] sm:$0xff]   ;;  %6629 = vst [vmem:[#allocation78_spill] sm:$0xff] %v5494_v8 }
 0x1e0   :  { %6627 = vst [vmem:[#allocation76_spill] sm:$0xff] %v5486_v9 }
 0x1e2   :  { %1707 = vmatpush1.bf16.msra.mxu1 %v5353_v12  ;;  %v5484_v12 = vld [vmem:[#allocation8 + $0xa0] sm:$0xff]  }
 0x1e3   :  { %1708 = vmatprep.subr.bf16.mxu1 %v5356_v13  ;;  %v5482_v13 = vld [vmem:[#allocation8 + $0x28] sm:$0xff]   ;;  %6626 = vst [vmem:[#allocation75_spill] sm:$0xff] %v5484_v12 }
 0x1e4   :  { %6625 = vst [vmem:[#allocation74_spill] sm:$0xff] %v5482_v13 }
 0x1e6   :  { %1709 = vmatpush1.bf16.msra.mxu1 %v5360_v20  ;;  %v5479_v20 = vld [vmem:[#allocation8 + $0x68] sm:$0xff]  }
 0x1e7   :  { %1710 = vmatprep.subr.bf16.mxu1 %v5363_v21  ;;  %v5477_v21 = vld [vmem:[#allocation8 + $0x98] sm:$0xff]   ;;  %6624 = vst [vmem:[#allocation73_spill] sm:$0xff] %v5479_v20 }
 0x1e8   :  { %6623 = vst [vmem:[#allocation72_spill] sm:$0xff] %v5477_v21 }
 0x1ea   :  { %1711 = vmatpush1.bf16.msra.mxu1 %v5366_v23  ;;  %v5469_v23 = vld [vmem:[#allocation8 + $0x60] sm:$0xff]  }
 0x1eb   :  { %1712 = vmatprep.subr.bf16.mxu1 %v5369_v25  ;;  %v5467_v25 = vld [vmem:[#allocation8 + $0x90] sm:$0xff]   ;;  %6621 = vst [vmem:[#allocation70_spill] sm:$0xff] %v5469_v23 }
 0x1ec   :  { %6620 = vst [vmem:[#allocation69_spill] sm:$0xff] %v5467_v25 }
 0x1ee   :  { %1713 = vmatpush1.bf16.msra.mxu1 %v5372_v26  ;;  %v5459_v26 = vld [vmem:[#allocation8 + $0x58] sm:$0xff]  }
 0x1ef   :  { %1714 = vmatprep.subr.bf16.mxu1 %v5375_v27  ;;  %v5395_v27 = vld [vmem:[#allocation7 + $0x1b4] ss:$12 sps:$4 sm:$0xff]  }
 0x1f0   :  { %6604 = vst [vmem:[#allocation54_spill] sm:$0xff] %v5395_v27 }
 0x1f2   :  { %1715 = vmatpush1.bf16.msra.mxu1 %v5378_v46  ;;  %v5398_v46 = vld [vmem:[#allocation7 + $0x1b0] ss:$12 sps:$4 sm:$0xff]  }
 0x1f3   :  { %1727 = vmatprep.subr.bf16.mxu1 %v5381_v60  ;;  %6605 = vst [vmem:[#allocation55_spill] sm:$0xff] %v5398_v46  ;;  %v5401_v60 = vld [vmem:[#allocation7 + $0x1cc] ss:$12 sps:$4 sm:$0xff]  }
 0x1f4   :  { %6606 = vst [vmem:[#allocation56_spill] sm:$0xff] %v5401_v60 }
 0x1f5   :  { %1717 = vmatmul.mubr.bf16.vlgmr.msra.gmra.mrb[12].mxu1 %v5276_v44  ;;  %v5404_v44 = vld [vmem:[#allocation7 + $0x1c8] ss:$12 sps:$4 sm:$0xff]  }
 0x1f6   :  { %1728 = vmatpush1.bf16.msra.mxu1 %v5384_v59  ;;  %1759 = vmatprep.mubr.bf16.mxu1 %v6408_v62  ;;  %6607 = vst [vmem:[#allocation57_spill] sm:$0xff] %v5404_v44  ;;  %v5407_v59 = vld [vmem:[#allocation7 + $0x1e4] ss:$12 sps:$4 sm:$0xff]   ;;  %v5410_v62 = vld [vmem:[#allocation7 + $0x1e0] ss:$12 sps:$4 sm:$0xff]  }
 0x1f7   :  { %1729 = vmatprep.subr.bf16.mxu1 %v5387_v48  ;;  %6608 = vst [vmem:[#allocation58_spill] sm:$0xff] %v5407_v59  ;;  %6609 = vst [vmem:[#allocation59_spill] sm:$0xff] %v5410_v62  ;;  %v5441_v48 = vld [vmem:[#allocation8 + $0x80] sm:$0xff]  }
 0x1f8   :  { %6617 = vst [vmem:[#allocation66_spill] sm:$0xff] %v5441_v48 }
 0x1fa   :  { %1730 = vmatpush1.bf16.msra.mxu1 %v5391_v45  ;;  %v5413_v45 = vld [vmem:[#allocation7 + $0x1fc] ss:$12 sps:$4 sm:$0xff]  }
 0x1fb   :  { %1731 = vmatprep.subr.bf16.mxu1 %v5395_v27  ;;  %6610 = vst [vmem:[#allocation60_spill] sm:$0xff] %v5413_v45  ;;  %v5416_v27 = vld [vmem:[#allocation7 + $0x1f8] ss:$12 sps:$4 sm:$0xff]  }
 0x1fc   :  { %6611 = vst [vmem:[#allocation61_spill] sm:$0xff] %v5416_v27 }
 0x1fe   :  { %1732 = vmatpush1.bf16.msra.mxu1 %v5398_v46  ;;  %v5419_v46 = vld [vmem:[#allocation7 + $0x214] ss:$12 sps:$4 sm:$0xff]  }
 0x1ff   :  { %1733 = vmatprep.subr.bf16.mxu1 %v5401_v60  ;;  %6612 = vst [vmem:[#allocation62_spill] sm:$0xff] %v5419_v46  ;;  %v5422_v60 = vld [vmem:[#allocation7 + $0x210] ss:$12 sps:$4 sm:$0xff]  }
 0x200   :  { %6613 = vst [vmem:[#allocation63_spill] sm:$0xff] %v5422_v60 }
 0x202   :  { %1734 = vmatpush1.bf16.msra.mxu1 %v5404_v44  ;;  %v5425_v44 = vld [vmem:[#allocation7 + $0x22c] ss:$12 sps:$4 sm:$0xff]  }
 0x203   :  { %1735 = vmatprep.subr.bf16.mxu1 %v5407_v59  ;;  %6614 = vst [vmem:[#allocation64_spill] sm:$0xff] %v5425_v44  ;;  %v5428_v59 = vld [vmem:[#allocation7 + $0x228] ss:$12 sps:$4 sm:$0xff]  }
 0x204   :  { %6615 = vst [vmem:[#allocation65_spill] sm:$0xff] %v5428_v59 }
 0x206   :  { %1736 = vmatpush1.bf16.msra.mxu1 %v5410_v62  ;;  %v6616_v62 = vmov 0.0  }
 0x207   :  { %1737 = vmatprep.subr.bf16.mxu1 %v5413_v45  ;;  %v5437_v45 = vld [vmem:[#allocation8] sm:$0xff]  }
 0x20a   :  { %1738 = vmatpush1.bf16.msra.mxu1 %v5416_v27  ;;  %v5435_v27 = vld [vmem:[#allocation8 + $0x40] sm:$0xff]  }
 0x20b   :  { %1739 = vmatprep.subr.bf16.mxu1 %v5419_v46  ;;  %v5439_v46 = vld [vmem:[#allocation8 + $0x48] sm:$0xff]   ;;  %3735 = vmatprep.subr.bf16.mxu0 %v5435_v27 }
 0x20c   :  { %3736 = vmatpush3.bf16.msra.mxu0 %v5437_v45 }
 0x20d   :  { %3737 = vmatprep.subr.bf16.mxu0 %v5439_v46 }
 0x20e   :  { %1740 = vmatpush1.bf16.msra.mxu1 %v5422_v60  ;;  %v5455_v60 = vld [vmem:[#allocation8 + $0x10] sm:$0xff]  }
 0x20f   :  { %1741 = vmatprep.subr.bf16.mxu1 %v5425_v44  ;;  %v5445_v44 = vld [vmem:[#allocation8 + $0x8] sm:$0xff]  }
 0x210   :  { %3738 = vmatpush3.bf16.msra.mxu0 %v5445_v44 }
 0x212   :  { %1742 = vmatpush1.bf16.msra.mxu1 %v5428_v59  ;;  %v5451_v59 = vld [vmem:[#allocation8 + $0x50] sm:$0xff]  }
 0x213   :  { %4074 = vmatprep.subr.bf16.mxu1 %v6616_v62  ;;  %3739 = vmatprep.subr.bf16.mxu0 %v5451_v59 }
 0x214   :  { %3740 = vmatpush3.bf16.msra.mxu0 %v5455_v60 }
 0x215   :  { %1760 = vmatmul.mubr.bf16.vlgmr.msra.gmra.mrb[12].mxu1 %v4539_v15  ;;  %v5448_v15 = vld [vmem:[#allocation8 + $0x88] sm:$0xff]   ;;  %3741 = vmatprep.subr.bf16.mxu0 %v5459_v26 }
 0x216   :  { %4090 = vmatprep.mubr.msk.bf16.mxu1 %vm4994_vm0, %v6616_v62  ;;  %4075 = vmatpush3.bf16.msra.mxu1 %v5441_v48  ;;  %6618 = vst [vmem:[#allocation67_spill] sm:$0xff] %v5448_v15  ;;  %v5464_v48 = vld [vmem:[#allocation8 + $0x18] sm:$0xff]  }
 0x217   :  { %4076 = vmatprep.subr.bf16.mxu1 %v6616_v62  ;;  %6619 = vst [vmem:[#allocation68_spill] sm:$0xff] %v5464_v48 }
 0x218   :  { %3742 = vmatpush3.bf16.msra.mxu0 %v5464_v48 }
 0x219   :  { %3743 = vmatprep.subr.bf16.mxu0 %v5469_v23 }
 0x21a   :  { %4077 = vmatpush3.bf16.msra.mxu1 %v5448_v15  ;;  %v5472_v15 = vld [vmem:[#allocation8 + $0x20] sm:$0xff]  }
 0x21b   :  { %4078 = vmatprep.subr.bf16.mxu1 %v6616_v62  ;;  %6622 = vst [vmem:[#allocation71_spill] sm:$0xff] %v5472_v15 }
 0x21c   :  { %3744 = vmatpush3.bf16.msra.mxu0 %v5472_v15 }
 0x21d   :  { %3745 = vmatprep.subr.bf16.mxu0 %v5479_v20 }
 0x21e   :  { %4079 = vmatpush3.bf16.msra.mxu1 %v5467_v25  ;;  %v5491_v25 = vld [vmem:[#allocation8 + $0x30] sm:$0xff]  }
 0x21f   :  { %4080 = vmatprep.subr.bf16.mxu1 %v6616_v62  ;;  %6628 = vst [vmem:[#allocation77_spill] sm:$0xff] %v5491_v25 }
 0x220   :  { %3746 = vmatpush3.bf16.msra.mxu0 %v5482_v13 }
 0x221   :  { %3747 = vmatprep.subr.bf16.mxu0 %v5486_v9 }
 0x222   :  { %4081 = vmatpush3.bf16.msra.mxu1 %v5477_v21  ;;  %v5497_v21 = vld [vmem:[#allocation8 + $0xa8] sm:$0xff]  }
 0x223   :  { %4082 = vmatprep.subr.bf16.mxu1 %v6616_v62  ;;  %6630 = vst [vmem:[#allocation79_spill] sm:$0xff] %v5497_v21 }
 0x224   :  { %3748 = vmatpush3.bf16.msra.mxu0 %v5491_v25  ;;  %v5512_v25 = vld [vmem:[#allocation8 + $0xb8] sm:$0xff]  }
 0x225   :  { %3749 = vmatprep.subr.bf16.mxu0 %v5494_v8  ;;  %6633 = vst [vmem:[#allocation82_spill] sm:$0xff] %v5512_v25 }
 0x226   :  { %4083 = vmatpush3.bf16.msra.mxu1 %v5484_v12 }
 0x227   :  { %4084 = vmatprep.subr.bf16.mxu1 %v6616_v62 }
 0x228   :  { %3750 = vmatpush3.bf16.msra.mxu0 %v5501_v6 }
 0x229   :  { %2153 = vmatprep.subr.bf16.mxu0 %v5185_v36 }
 0x22a   :  { %4085 = vmatpush3.bf16.msra.mxu1 %v5497_v21 }
 0x22b   :  { %4086 = vmatprep.subr.bf16.mxu1 %v6616_v62 }
 0x22e   :  { %4087 = vmatpush3.bf16.msra.mxu1 %v5505_v0 }
 0x22f   :  { %4088 = vmatprep.subr.bf16.mxu1 %v6616_v62 }
 0x232   :  { %4089 = vmatpush3.bf16.msra.mxu1 %v5512_v25 }
 0x233   :  { %3766 = vmatprep.subr.bf16.mxu1 %v5189_v38 }
 0x26b   :  { %v1233_v5 = vpop.f32.mrb[4].mxu0 }
 0x26c   :  { %v4052_v1 = vpop.f32.mrb[5].mxu0 }
 0x26d   :  { %v1236_v9 = vpop.f32.mrb[6].mxu0 }
 0x26e   :  { %v4053_v12 = vpop.f32.mrb[7].mxu0 }
 0x26f   :  { %v3505_v12 = vld [vmem:[%s6392_s9] ss:$0 sm:$0xff] }
 0x288   :  { %v3689_v1 = vpop.f32.mrb[8].mxu1 }
 0x289   :  { %v3690_v21 = vpop.f32.mrb[9].mxu1 }
 0x28a   :  { %v3691_v8 = vadd.f32 %v3690_v21, %v3689_v1  ;;  %v3692_v6 = vpop.f32.mrb[10].mxu1 }
 0x28b   :  { %v3693_v13 = vpop.f32.mrb[11].mxu1  ;;  %v3720_v15 = vpop.f32.mrb[8].mxu0 }
 0x28c   :  { %v3694_v36 = vadd.f32 %v3693_v13, %v3692_v6  ;;  %v1193_v61 = vadd.f32 %v3691_v8, %v3505_v12  ;;  %v3721_v25 = vpop.f32.mrb[9].mxu0 }
 0x28d   :  { %v3722_v56 = vadd.f32 %v3721_v25, %v3720_v15  ;;  %v3723_v38 = vpop.f32.mrb[10].mxu0 }
 0x28e   :  { %v1234_v0 = vadd.f32 %v1233_v5, %v1193_v61  ;;  %v1196_v20 = vadd.f32 %v3694_v36, %v3505_v12  ;;  %v3724_v23 = vpop.f32.mrb[11].mxu0  ;;  %v6636_v61 = vsub.s32 2, %v5193_v47 }
 0x28f   :  { %v3725_v55 = vadd.f32 %v3724_v23, %v3723_v38 }
 0x290   :  { %4594 = vtanh.f32 %v1234_v0  ;;  %v1237_v58 = vadd.f32 %v1236_v9, %v1196_v20 }
 0x292   :  { %4596 = vtanh.f32 %v1237_v58  ;;  %v215_v58 = vld [vmem:[%s6386_s3] sm:$0x7] }
 0x293   :  { %v5532_v0 = vrot.slane %v215_v58, %v6636_v61  ;;  %v6638_v61 = vsub.s32 1, %v5193_v47 }
 0x295   :  { %v1805_v38 = vadd.f32 %v3722_v56, %v5532_v0  ;;  %v1808_v5 = vadd.f32 %v3725_v55, %v5532_v0  ;;  %v6637_v55 = vsub.s32 0, %v5193_v47 }
 0x297   :  { %v5553_v56 = vrot.slane %v215_v58, %v6637_v55 }
 0x29a   :  { %v5519_v48 = vpop.eup %4594 }
 0x29b   :  { %6634 = vst [vmem:[#allocation83_spill] sm:$0xff] %v5519_v48  ;;  %v1242_v21 = vmul.f32 %v5519_v48, %v5519_v48  ;;  %v6654_v48 = vld [vmem:[#allocation38_spill] sm:$0xff] }
 0x29c   :  { %v5523_v1 = vpop.eup %4596 }
 0x29d   :  { %6635 = vst [vmem:[#allocation84_spill] sm:$0xff] %v5523_v1  ;;  %1244 = vadd.xlane.f32.xlu0 %v1242_v21  ;;  %v1243_v36 = vmul.f32 %v5523_v1, %v5523_v1  ;;  %v4568_v21 = vld [vmem:[#allocation2 + $0x1c] ss:$12 sps:$4 sm:$0xff]  }
 0x29e   :  { %v6653_v1 = vld [vmem:[#allocation78_spill] sm:$0xff] }
 0x2a1   :  { %1246 = vadd.xlane.f32.xlu0 %v1243_v36  ;;  %v5555_v36 = vld [vmem:[#allocation2 + $0x18] ss:$12 sps:$4 sm:$0xff]  }
 0x2ab   :  { %v1845_v6 = vpop.f32.mrb[12].mxu0 }
 0x2ac   :  { %v1846_v8 = vadd.f32 %v1845_v6, %v1805_v38  ;;  %v4072_v9 = vpop.f32.mrb[13].mxu0  ;;  %v5560_v38 = vrot.slane %v215_v58, %v6638_v61 }
 0x2ad   :  { %v1848_v13 = vpop.f32.mrb[14].mxu0 }
 0x2ae   :  { %4598 = vtanh.f32 %v1846_v8  ;;  %v1849_v20 = vadd.f32 %v1848_v13, %v1808_v5  ;;  %v4073_v23 = vpop.f32.mrb[15].mxu0 }
 0x2b0   :  { %4600 = vtanh.f32 %v1849_v20 }
 0x2b8   :  { %v4599_v25 = vpop.eup %4598 }
 0x2ba   :  { %v4601_v15 = vpop.eup %4600 }
 0x2bb   :  { %v1860_v12 = vpack.c.bf16 %v4601_v15, %v4599_v25 }
 0x2bd   :  { %4091 = vmatmul.mubr.bf16.vlgmr.msra.gmra.mrb[16].mxu1 %v1860_v12 }
 0x2be   :  { %3767 = vmatpush3.bf16.msra.mxu1 %v5207_v2  ;;  %2271 = vmatprep.mubr.bf16.mxu1 %v4568_v21 }
 0x2bf   :  { %3768 = vmatprep.subr.bf16.mxu1 %v5209_v4 }
 0x2c2   :  { %3769 = vmatpush3.bf16.msra.mxu1 %v5212_v11 }
 0x2c3   :  { %3770 = vmatprep.subr.bf16.mxu1 %v5215_v14 }
 0x2c6   :  { %3771 = vmatpush3.bf16.msra.mxu1 %v5218_v16 }
 0x2c7   :  { %3772 = vmatprep.subr.bf16.mxu1 %v5221_v17 }
 0x2ca   :  { %3773 = vmatpush3.bf16.msra.mxu1 %v5224_v18 }
 0x2cb   :  { %3774 = vmatprep.subr.bf16.mxu1 %v5227_v19 }
 0x2ce   :  { %3775 = vmatpush3.bf16.msra.mxu1 %v5230_v22 }
 0x2cf   :  { %3776 = vmatprep.subr.bf16.mxu1 %v5233_v24 }
 0x2d2   :  { %3777 = vmatpush3.bf16.msra.mxu1 %v5240_v30 }
 0x2d3   :  { %3778 = vmatprep.subr.bf16.mxu1 %v5243_v31 }
 0x2d6   :  { %3779 = vmatpush3.bf16.msra.mxu1 %v5252_v34 }
 0x2d7   :  { %3780 = vmatprep.subr.bf16.mxu1 %v5255_v35 }
 0x2da   :  { %3781 = vmatpush3.bf16.msra.mxu1 %v5264_v40 }
 0x2db   :  { %4094 = vmatprep.subr.bf16.mxu1 %v6616_v62 }
 0x2dd   :  { %2272 = vmatmul.mubr.bf16.vlgmr.msra.gmra.mrb[20].mxu1 %v5555_v36 }
 0x2de   :  { %4095 = vmatpush3.bf16.msra.mxu1 %v5274_v43  ;;  %4110 = vmatprep.mubr.msk.bf16.mxu1 %vm4994_vm0, %v6616_v62 }
 0x2df   :  { %4096 = vmatprep.subr.bf16.mxu1 %v6616_v62 }
 0x2e2   :  { %4097 = vmatpush3.bf16.msra.mxu1 %v5287_v51 }
 0x2e3   :  { %4098 = vmatprep.subr.bf16.mxu1 %v6616_v62 }
 0x2e6   :  { %4099 = vmatpush3.bf16.msra.mxu1 %v5299_v54 }
 0x2e7   :  { %4100 = vmatprep.subr.bf16.mxu1 %v6616_v62 }
 0x2e8   :  { %v1761_v5 = vpop.f32.mrb[12].mxu1 }
 0x2e9   :  { %v4258_v6 = vadd.f32 %v1761_v5, %v5553_v56  ;;  %v1763_v8 = vpop.f32.mrb[13].mxu1  ;;  %v5589_v5 = vld [vmem:[#allocation2 + $0x20] ss:$12 sps:$4 sm:$0xff]  }
 0x2ea   :  { %v4259_v9 = vadd.f32 %v1763_v8, %v5560_v38  ;;  %v1765_v13 = vpop.f32.mrb[14].mxu1  ;;  %4101 = vmatpush3.bf16.msra.mxu1 %v5309_v57  ;;  %v6641_v8 = vld [vmem:[#allocation70_spill] sm:$0xff] }
 0x2eb   :  { %4602 = vtanh.f32 %v4258_v6  ;;  %v4260_v47 = vadd.f32 %v1765_v13, %v5553_v56  ;;  %v1767_v58 = vpop.f32.mrb[15].mxu1  ;;  %4102 = vmatprep.subr.bf16.mxu1 %v6616_v62  ;;  %v6640_v6 = vld [vmem:[#allocation31_spill] sm:$0xff] }
 0x2ec   :  { %4604 = vtanh.f32 %v4259_v9  ;;  %v4261_v20 = vadd.f32 %v1767_v58, %v5560_v38  ;;  %v6642_v9 = vld [vmem:[#allocation32_spill] sm:$0xff]  ;;  %v6643_v13 = vld [vmem:[#allocation71_spill] sm:$0xff]  ;;  %v6645_v58 = vld [vmem:[#allocation73_spill] sm:$0xff] }
 0x2ed   :  { %4606 = vtanh.f32 %v4260_v47  ;;  %v6644_v47 = vld [vmem:[#allocation33_spill] sm:$0xff] }
 0x2ee   :  { %4608 = vtanh.f32 %v4261_v20  ;;  %4103 = vmatpush3.bf16.msra.mxu1 %v5319_v63  ;;  %v6646_v20 = vld [vmem:[#allocation34_spill] sm:$0xff] }
 0x2ef   :  { %4104 = vmatprep.subr.bf16.mxu1 %v6616_v62 }
 0x2f2   :  { %4105 = vmatpush3.bf16.msra.mxu1 %v5329_v3 }
 0x2f3   :  { %4106 = vmatprep.subr.bf16.mxu1 %v6616_v62 }
 0x2f5   :  { %v4603_v23 = vpop.eup %4602 }
 0x2f6   :  { %v4605_v25 = vpop.eup %4604  ;;  %4107 = vmatpush3.bf16.msra.mxu1 %v5339_v7 }
 0x2f7   :  { %v4607_v15 = vpop.eup %4606  ;;  %4108 = vmatprep.subr.bf16.mxu1 %v6616_v62 }
 0x2f8   :  { %v4609_v12 = vpop.eup %4608  ;;  %v1858_v55 = vpack.c.bf16 %v4607_v15, %v4603_v23  ;;  %v6647_v23 = vld [vmem:[#allocation74_spill] sm:$0xff]  ;;  %v6649_v15 = vld [vmem:[#allocation76_spill] sm:$0xff] }
 0x2f9   :  { %v1859_v61 = vpack.c.bf16 %v4609_v12, %v4605_v25  ;;  %v6648_v25 = vld [vmem:[#allocation35_spill] sm:$0xff]  ;;  %v6650_v12 = vld [vmem:[#allocation36_spill] sm:$0xff] }
 0x2fa   :  { %4109 = vmatpush3.bf16.msra.mxu1 %v5349_v10 }
 0x2fb   :  { %2043 = vmatprep.mubr.bf16.mxu0 %v1859_v61  ;;  %3797 = vmatprep.subr.bf16.mxu1 %v5435_v27  ;;  %v6652_v61 = vld [vmem:[#allocation37_spill] sm:$0xff] }
 0x2fc   :  { %2044 = vmatmul.mubr.bf16.vlgmr.msra.gmra.mrb[16].mxu0 %v1858_v55  ;;  %v6651_v55 = vld [vmem:[#allocation77_spill] sm:$0xff] }
 0x2fd   :  { %2154 = vmatpush1.bf16.msra.mxu0 %v5235_v28  ;;  %2185 = vmatprep.mubr.bf16.mxu0 %v4568_v21  ;;  %v6639_v21 = vld [vmem:[#allocation68_spill] sm:$0xff] }
 0x2fe   :  { %2155 = vmatprep.subr.bf16.mxu0 %v5237_v29  ;;  %4111 = vmatmul.mubr.bf16.vlgmr.msra.gmra.mrb[24].mxu1 %v5589_v5 }
 0x2ff   :  { %3798 = vmatpush3.bf16.msra.mxu1 %v5437_v45 }
 0x300   :  { %3799 = vmatprep.subr.bf16.mxu1 %v5439_v46 }
 0x301   :  { %2156 = vmatpush1.bf16.msra.mxu0 %v5246_v32 }
 0x302   :  { %2157 = vmatprep.subr.bf16.mxu0 %v5249_v33 }
 0x303   :  { %3800 = vmatpush3.bf16.msra.mxu1 %v5445_v44 }
 0x304   :  { %3801 = vmatprep.subr.bf16.mxu1 %v5451_v59 }
 0x305   :  { %2158 = vmatpush1.bf16.msra.mxu0 %v5258_v37 }
 0x306   :  { %2159 = vmatprep.subr.bf16.mxu0 %v5261_v39 }
 0x307   :  { %3802 = vmatpush3.bf16.msra.mxu1 %v5455_v60 }
 0x308   :  { %3803 = vmatprep.subr.bf16.mxu1 %v5459_v26 }
 0x309   :  { %2160 = vmatpush1.bf16.msra.mxu0 %v5268_v41 }
 0x30a   :  { %2161 = vmatprep.subr.bf16.mxu0 %v5271_v42 }
 0x30b   :  { %3804 = vmatpush3.bf16.msra.mxu1 %v6639_v21 }
 0x30c   :  { %3805 = vmatprep.subr.bf16.mxu1 %v6641_v8 }
 0x30d   :  { %2162 = vmatpush1.bf16.msra.mxu0 %v5280_v49  ;;  %v6666_v49 = vld [vmem:[#allocation48_spill] sm:$0xff] }
 0x30e   :  { %2163 = vmatprep.subr.bf16.mxu0 %v5284_v50  ;;  %v6664_v50 = vld [vmem:[#allocation46_spill] sm:$0xff] }
 0x30f   :  { %3806 = vmatpush3.bf16.msra.mxu1 %v6643_v13 }
 0x310   :  { %3807 = vmatprep.subr.bf16.mxu1 %v6645_v58 }
 0x311   :  { %2164 = vmatpush1.bf16.msra.mxu0 %v5293_v52  ;;  %v6662_v52 = vld [vmem:[#allocation44_spill] sm:$0xff] }
 0x312   :  { %2165 = vmatprep.subr.bf16.mxu0 %v5296_v53  ;;  %v6660_v53 = vld [vmem:[#allocation42_spill] sm:$0xff] }
 0x313   :  { %3808 = vmatpush3.bf16.msra.mxu1 %v6647_v23 }
 0x314   :  { %3809 = vmatprep.subr.bf16.mxu1 %v6649_v15 }
 0x315   :  { %2166 = vmatpush1.bf16.msra.mxu0 %v6640_v6  ;;  %v6658_v6 = vld [vmem:[#allocation40_spill] sm:$0xff] }
 0x316   :  { %2167 = vmatprep.subr.bf16.mxu0 %v6642_v9  ;;  %v6656_v9 = vld [vmem:[#allocation39_spill] sm:$0xff] }
 0x317   :  { %3810 = vmatpush3.bf16.msra.mxu1 %v6651_v55 }
 0x318   :  { %3811 = vmatprep.subr.bf16.mxu1 %v6653_v1 }
 0x319   :  { %2168 = vmatpush1.bf16.msra.mxu0 %v6644_v47  ;;  %v6655_v47 = vld [vmem:[#allocation80_spill] sm:$0xff] }
 0x31a   :  { %2169 = vmatprep.subr.bf16.mxu0 %v6646_v20  ;;  %v6657_v20 = vld [vmem:[#allocation19_spill] sm:$0xff] }
 0x31b   :  { %3812 = vmatpush3.bf16.msra.mxu1 %v6655_v47 }
 0x31c   :  { %2472 = vmatprep.subr.bf16.mxu1 %v6657_v20  ;;  %v6668_v20 = vld [vmem:[#allocation50_spill] sm:$0xff] }
 0x31d   :  { %2170 = vmatpush1.bf16.msra.mxu0 %v6648_v25  ;;  %v6659_v25 = vld [vmem:[#allocation41_spill] sm:$0xff] }
 0x31e   :  { %2171 = vmatprep.subr.bf16.mxu0 %v6650_v12  ;;  %v6661_v12 = vld [vmem:[#allocation43_spill] sm:$0xff] }
 0x321   :  { %2172 = vmatpush1.bf16.msra.mxu0 %v6652_v61  ;;  %v6663_v61 = vld [vmem:[#allocation45_spill] sm:$0xff] }
 0x322   :  { %2173 = vmatprep.subr.bf16.mxu0 %v6654_v48  ;;  %v6665_v48 = vld [vmem:[#allocation47_spill] sm:$0xff] }
 0x325   :  { %2174 = vmatpush1.bf16.msra.mxu0 %v6656_v9  ;;  %v6667_v9 = vld [vmem:[#allocation49_spill] sm:$0xff] }
 0x326   :  { %2175 = vmatprep.subr.bf16.mxu0 %v6658_v6 }
 0x329   :  { %2176 = vmatpush1.bf16.msra.mxu0 %v6659_v25  ;;  %v6669_v25 = vld [vmem:[#allocation51_spill] sm:$0xff] }
 0x32a   :  { %2177 = vmatprep.subr.bf16.mxu0 %v6660_v53  ;;  %v6670_v53 = vmov 0  }
 0x32d   :  { %2178 = vmatpush1.bf16.msra.mxu0 %v6661_v12  ;;  %v6671_v12 = vld [vmem:[#allocation52_spill] sm:$0xff] }
 0x32e   :  { %2179 = vmatprep.subr.bf16.mxu0 %v6662_v52  ;;  %v6672_v52 = vld [vmem:[#allocation53_spill] sm:$0xff] }
 0x331   :  { %2180 = vmatpush1.bf16.msra.mxu0 %v6663_v61  ;;  %v6673_v61 = vld [vmem:[#allocation54_spill] sm:$0xff] }
 0x332   :  { %2181 = vmatprep.subr.bf16.mxu0 %v6664_v50  ;;  %v6674_v50 = vld [vmem:[#allocation55_spill] sm:$0xff] }
 0x335   :  { %2182 = vmatpush1.bf16.msra.mxu0 %v6665_v48  ;;  %v6675_v48 = vld [vmem:[#allocation56_spill] sm:$0xff] }
 0x336   :  { %2183 = vmatprep.subr.bf16.mxu0 %v6666_v49  ;;  %v6676_v49 = vld [vmem:[#allocation57_spill] sm:$0xff] }
 0x339   :  { %2184 = vmatpush1.bf16.msra.mxu0 %v6667_v9  ;;  %v6677_v9 = vld [vmem:[#allocation58_spill] sm:$0xff] }
 0x33a   :  { %2196 = vmatprep.subr.bf16.mxu0 %v6668_v20  ;;  %v6678_v20 = vld [vmem:[#allocation59_spill] sm:$0xff] }
 0x33c   :  { %2186 = vmatmul.mubr.bf16.vlgmr.msra.gmra.mrb[20].mxu0 %v5555_v36  ;;  %v6679_v36 = vld [vmem:[#allocation60_spill] sm:$0xff] }
 0x33d   :  { %2197 = vmatpush1.bf16.msra.mxu0 %v6669_v25  ;;  %2228 = vmatprep.mubr.bf16.mxu0 %v6670_v53  ;;  %v6680_v25 = vld [vmem:[#allocation61_spill] sm:$0xff]  ;;  %v6681_v53 = vld [vmem:[#allocation62_spill] sm:$0xff] }
 0x33e   :  { %2198 = vmatprep.subr.bf16.mxu0 %v6671_v12  ;;  %v6682_v12 = vld [vmem:[#allocation63_spill] sm:$0xff] }
 0x341   :  { %2199 = vmatpush1.bf16.msra.mxu0 %v6672_v52  ;;  %v6683_v52 = vld [vmem:[#allocation64_spill] sm:$0xff] }
 0x342   :  { %2200 = vmatprep.subr.bf16.mxu0 %v6673_v61  ;;  %v6684_v61 = vld [vmem:[#allocation65_spill] sm:$0xff] }
 0x345   :  { %2201 = vmatpush1.bf16.msra.mxu0 %v6674_v50 }
 0x346   :  { %2202 = vmatprep.subr.bf16.mxu0 %v6675_v48 }
 0x349   :  { %2203 = vmatpush1.bf16.msra.mxu0 %v6676_v49  ;;  %v6685_v49 = vld [vmem:[#allocation66_spill] sm:$0xff] }
 0x34a   :  { %2204 = vmatprep.subr.bf16.mxu0 %v6677_v9 }
 0x34d   :  { %2205 = vmatpush1.bf16.msra.mxu0 %v6678_v20 }
 0x34e   :  { %2206 = vmatprep.subr.bf16.mxu0 %v6679_v36 }
 0x351   :  { %2207 = vmatpush1.bf16.msra.mxu0 %v6680_v25  ;;  %v6686_v25 = vld [vmem:[#allocation67_spill] sm:$0xff] }
 0x352   :  { %2208 = vmatprep.subr.bf16.mxu0 %v6681_v53 }
 0x355   :  { %2209 = vmatpush1.bf16.msra.mxu0 %v6682_v12  ;;  %v6687_v12 = vld [vmem:[#allocation69_spill] sm:$0xff] }
 0x356   :  { %2210 = vmatprep.subr.bf16.mxu0 %v6683_v52  ;;  %v6691_v52 = vld [vmem:[#allocation81_spill] sm:$0xff] }
 0x359   :  { %2211 = vmatpush1.bf16.msra.mxu0 %v6684_v61  ;;  %v6688_v61 = vld [vmem:[#allocation72_spill] sm:$0xff] }
 0x35a   :  { %4114 = vmatprep.subr.bf16.mxu0 %v6616_v62 }
 0x35c   :  { %2229 = vmatmul.mubr.bf16.vlgmr.msra.gmra.mrb[20].mxu0 %v5589_v5  ;;  %v6689_v5 = vld [vmem:[#allocation75_spill] sm:$0xff] }
 0x35d   :  { %4115 = vmatpush3.bf16.msra.mxu0 %v6685_v49  ;;  %4130 = vmatprep.mubr.msk.bf16.mxu0 %vm4994_vm0, %v6616_v62  ;;  %v6690_v49 = vld [vmem:[#allocation79_spill] sm:$0xff] }
 0x35e   :  { %4116 = vmatprep.subr.bf16.mxu0 %v6616_v62 }
 0x361   :  { %4117 = vmatpush3.bf16.msra.mxu0 %v6686_v25  ;;  %v6692_v25 = vld [vmem:[#allocation82_spill] sm:$0xff] }
 0x362   :  { %4118 = vmatprep.subr.bf16.mxu0 %v6616_v62 }
 0x365   :  { %4119 = vmatpush3.bf16.msra.mxu0 %v6687_v12  ;;  %v6693_v12 = vld [vmem:[#allocation20_spill] sm:$0xff] }
 0x366   :  { %4120 = vmatprep.subr.bf16.mxu0 %v6616_v62 }
 0x369   :  { %4121 = vmatpush3.bf16.msra.mxu0 %v6688_v61 }
 0x36a   :  { %4122 = vmatprep.subr.bf16.mxu0 %v6616_v62 }
 0x36d   :  { %4123 = vmatpush3.bf16.msra.mxu0 %v6689_v5 }
 0x36e   :  { %4124 = vmatprep.subr.bf16.mxu0 %v6616_v62 }
 0x371   :  { %4125 = vmatpush3.bf16.msra.mxu0 %v6690_v49 }
 0x372   :  { %4126 = vmatprep.subr.bf16.mxu0 %v6616_v62 }
 0x375   :  { %4127 = vmatpush3.bf16.msra.mxu0 %v6691_v52  ;;  %v5676_v52 = vld [vmem:[%s6388_s5] ss:$0 sm:$0xff] }
 0x376   :  { %4128 = vmatprep.subr.bf16.mxu0 %v6616_v62 }
 0x379   :  { %4129 = vmatpush3.bf16.msra.mxu0 %v6692_v25 }
 0x37a   :  { %3828 = vmatprep.subr.bf16.mxu0 %v6693_v12 }
 0x390   :  { %v2086_v53 = vpop.f32.mrb[16].mxu1 }
 0x391   :  { %v4092_v61 = vpop.f32.mrb[17].mxu1 }
 0x392   :  { %v2089_v36 = vpop.f32.mrb[18].mxu1 }
 0x393   :  { %v4093_v20 = vpop.f32.mrb[19].mxu1 }
 0x3b0   :  { %v3782_v9 = vpop.f32.mrb[20].mxu1 }
 0x3b1   :  { %v3783_v5 = vpop.f32.mrb[21].mxu1 }
 0x3b2   :  { %v3784_v48 = vadd.f32 %v3783_v5, %v3782_v9  ;;  %v3785_v50 = vpop.f32.mrb[22].mxu1 }
 0x3b3   :  { %v3786_v6 = vpop.f32.mrb[23].mxu1 }
 0x3b4   :  { %v3787_v49 = vadd.f32 %v3786_v6, %v3785_v50  ;;  %v2274_v50 = vadd.f32 %v3784_v48, %v5532_v0 }
 0x3b6   :  { %v2277_v6 = vadd.f32 %v3787_v49, %v5532_v0 }
 0x3cf   :  { %v3751_v42 = vpop.f32.mrb[16].mxu0 }
 0x3d0   :  { %v3752_v41 = vpop.f32.mrb[17].mxu0 }
 0x3d1   :  { %v3753_v25 = vadd.f32 %v3752_v41, %v3751_v42  ;;  %v3754_v39 = vpop.f32.mrb[18].mxu0  ;;  %v2314_v5 = vpop.f32.mrb[24].mxu1 }
 0x3d2   :  { %v3755_v12 = vpop.f32.mrb[19].mxu0  ;;  %v2315_v33 = vadd.f32 %v2314_v5, %v2274_v50  ;;  %v4112_v32 = vpop.f32.mrb[25].mxu1  ;;  %v6715_v50 = vld [vmem:[#allocation38_spill] sm:$0xff]  ;;  %v6717_v5 = vld [vmem:[#allocation40_spill] sm:$0xff] }
 0x3d3   :  { %v3756_v37 = vadd.f32 %v3755_v12, %v3754_v39  ;;  %v2046_v61 = vadd.f32 %v3753_v25, %v5676_v52  ;;  %v2317_v1 = vpop.f32.mrb[26].mxu1  ;;  %v6709_v25 = vld [vmem:[#allocation32_spill] sm:$0xff]  ;;  %v6711_v12 = vld [vmem:[#allocation34_spill] sm:$0xff] }
 0x3d4   :  { %v2318_v41 = vadd.f32 %v2317_v1, %v2277_v6  ;;  %v4113_v42 = vpop.f32.mrb[27].mxu1  ;;  %v6708_v1 = vld [vmem:[#allocation31_spill] sm:$0xff] }
 0x3d5   :  { %v2087_v20 = vadd.f32 %v2086_v53, %v2046_v61  ;;  %v2049_v47 = vadd.f32 %v3756_v37, %v5676_v52  ;;  %v6712_v61 = vld [vmem:[#allocation35_spill] sm:$0xff]  ;;  %v6719_v42 = vld [vmem:[#allocation42_spill] sm:$0xff] }
 0x3d6   :  { %v6716_v6 = vld [vmem:[#allocation39_spill] sm:$0xff] }
 0x3d7   :  { %4610 = vtanh.f32 %v2087_v20  ;;  %v2090_v9 = vadd.f32 %v2089_v36, %v2049_v47  ;;  %v6710_v36 = vld [vmem:[#allocation33_spill] sm:$0xff]  ;;  %v6713_v20 = vld [vmem:[#allocation36_spill] sm:$0xff] }
 0x3d9   :  { %4612 = vtanh.f32 %v2090_v9  ;;  %v6714_v9 = vld [vmem:[#allocation37_spill] sm:$0xff] }
 0x3da   :  { %4614 = vtanh.f32 %v2315_v33 }
 0x3db   :  { %4616 = vtanh.f32 %v2318_v41  ;;  %v6718_v41 = vld [vmem:[#allocation41_spill] sm:$0xff] }
 0x3e1   :  { %v5682_v39 = vpop.eup %4610 }
 0x3e2   :  { %6694 = vst [vmem:[#allocation68_spill] sm:$0xff] %v5682_v39  ;;  %v2101_v37 = vmul.f32 %v5682_v39, %v5682_v39  ;;  %v6034_v39 = vld [vmem:[#allocation7 + $0x154] ss:$12 sps:$4 sm:$0xff]  }
 0x3e3   :  { %v5686_v53 = vpop.eup %4612 }
 0x3e4   :  { %6695 = vst [vmem:[#allocation70_spill] sm:$0xff] %v5686_v53  ;;  %2103 = vadd.xlane.f32.xlu1 %v2101_v37  ;;  %v2102_v48 = vmul.f32 %v5686_v53, %v5686_v53  ;;  %v4615_v49 = vpop.eup %4614  ;;  %v6720_v37 = vld [vmem:[#allocation43_spill] sm:$0xff]  ;;  %v6031_v53 = vld [vmem:[#allocation7 + $0x138] ss:$12 sps:$4 sm:$0xff]  }
 0x3e5   :  { %v4617_v47 = vpop.eup %4616 }
 0x3e6   :  { %v2329_v32 = vpack.c.bf16 %v4617_v47, %v4615_v49  ;;  %v6722_v49 = vld [vmem:[#allocation45_spill] sm:$0xff]  ;;  %v6723_v47 = vld [vmem:[#allocation46_spill] sm:$0xff] }
 0x3e8   :  { %2105 = vadd.xlane.f32.xlu1 %v2102_v48  ;;  %4131 = vmatmul.mubr.bf16.vlgmr.msra.gmra.mrb[24].mxu0 %v2329_v32  ;;  %v6721_v48 = vld [vmem:[#allocation44_spill] sm:$0xff]  ;;  %v6724_v32 = vld [vmem:[#allocation47_spill] sm:$0xff] }
 0x3e9   :  { %3829 = vmatpush3.bf16.msra.mxu0 %v5207_v2  ;;  %v4572_v2 = vld [vmem:[#allocation2 + $0x34] ss:$12 sps:$4 sm:$0xff]  }
 0x3ea   :  { %3830 = vmatprep.subr.bf16.mxu0 %v5209_v4  ;;  %2590 = vmatprep.mubr.bf16.mxu0 %v4572_v2  ;;  %v5705_v4 = vld [vmem:[#allocation2 + $0x30] ss:$12 sps:$4 sm:$0xff]  }
 0x3ed   :  { %3831 = vmatpush3.bf16.msra.mxu0 %v5212_v11  ;;  %v5726_v11 = vld [vmem:[#allocation2 + $0x38] ss:$12 sps:$4 sm:$0xff]  }
 0x3ee   :  { %3832 = vmatprep.subr.bf16.mxu0 %v5215_v14 }
 0x3f1   :  { %3833 = vmatpush3.bf16.msra.mxu0 %v5218_v16 }
 0x3f2   :  { %3834 = vmatprep.subr.bf16.mxu0 %v5221_v17 }
 0x3f5   :  { %3835 = vmatpush3.bf16.msra.mxu0 %v5224_v18 }
 0x3f6   :  { %3836 = vmatprep.subr.bf16.mxu0 %v5227_v19 }
 0x3f9   :  { %3837 = vmatpush3.bf16.msra.mxu0 %v5230_v22 }
 0x3fa   :  { %3838 = vmatprep.subr.bf16.mxu0 %v5233_v24 }
 0x3fd   :  { %3839 = vmatpush3.bf16.msra.mxu0 %v5240_v30 }
 0x3fe   :  { %3840 = vmatprep.subr.bf16.mxu0 %v5243_v31 }
 0x401   :  { %3841 = vmatpush3.bf16.msra.mxu0 %v5252_v34 }
 0x402   :  { %3842 = vmatprep.subr.bf16.mxu0 %v5255_v35 }
 0x405   :  { %3843 = vmatpush3.bf16.msra.mxu0 %v5264_v40  ;;  %v6696_v40 = vld [vmem:[#allocation78_spill] sm:$0xff] }
 0x406   :  { %4134 = vmatprep.subr.bf16.mxu0 %v6616_v62 }
 0x408   :  { %2591 = vmatmul.mubr.bf16.vlgmr.msra.gmra.mrb[28].mxu0 %v5705_v4 }
 0x409   :  { %4135 = vmatpush3.bf16.msra.mxu0 %v5274_v43  ;;  %4150 = vmatprep.mubr.msk.bf16.mxu0 %vm4994_vm0, %v6616_v62  ;;  %v6697_v43 = vld [vmem:[#allocation21_spill] sm:$0xff] }
 0x40a   :  { %4136 = vmatprep.subr.bf16.mxu0 %v6616_v62 }
 0x40d   :  { %4137 = vmatpush3.bf16.msra.mxu0 %v5287_v51  ;;  %v6698_v51 = vld [vmem:[#allocation22_spill] sm:$0xff] }
 0x40e   :  { %4138 = vmatprep.subr.bf16.mxu0 %v6616_v62 }
 0x411   :  { %4139 = vmatpush3.bf16.msra.mxu0 %v5299_v54  ;;  %v6699_v54 = vld [vmem:[#allocation80_spill] sm:$0xff] }
 0x412   :  { %4140 = vmatprep.subr.bf16.mxu0 %v6616_v62 }
 0x415   :  { %4141 = vmatpush3.bf16.msra.mxu0 %v5309_v57  ;;  %v5753_v57 = vld [vmem:[#allocation7 + $0x4] ss:$12 sps:$4 sm:$0xff]  }
 0x416   :  { %4142 = vmatprep.subr.bf16.mxu0 %v6616_v62 }
 0x419   :  { %4143 = vmatpush3.bf16.msra.mxu0 %v5319_v63  ;;  %v6700_v63 = vld [vmem:[#allocation23_spill] sm:$0xff] }
 0x41a   :  { %4144 = vmatprep.subr.bf16.mxu0 %v6616_v62 }
 0x41d   :  { %4145 = vmatpush3.bf16.msra.mxu0 %v5329_v3  ;;  %v6702_v3 = vld [vmem:[#allocation25_spill] sm:$0xff] }
 0x41e   :  { %4146 = vmatprep.subr.bf16.mxu0 %v6616_v62 }
 0x421   :  { %4147 = vmatpush3.bf16.msra.mxu0 %v5339_v7  ;;  %v6704_v7 = vld [vmem:[#allocation27_spill] sm:$0xff] }
 0x422   :  { %4148 = vmatprep.subr.bf16.mxu0 %v6616_v62  ;;  %6767 = vst [vmem:[#allocation27_spill] sm:$0xff] %v6031_v53 }
 0x425   :  { %4149 = vmatpush3.bf16.msra.mxu0 %v5349_v10  ;;  %v6705_v10 = vld [vmem:[#allocation28_spill] sm:$0xff] }
 0x426   :  { %3859 = vmatprep.subr.bf16.mxu0 %v5435_v27  ;;  %v6706_v27 = vld [vmem:[#allocation29_spill] sm:$0xff]  ;;  %6768 = vst [vmem:[#allocation28_spill] sm:$0xff] %v6034_v39 }
 0x428   :  { %4151 = vmatmul.mubr.bf16.vlgmr.msra.gmra.mrb[32].mxu0 %v5726_v11 }
 0x429   :  { %3860 = vmatpush3.bf16.msra.mxu0 %v5437_v45 }
 0x42a   :  { %3861 = vmatprep.subr.bf16.mxu0 %v5439_v46 }
 0x42d   :  { %3862 = vmatpush3.bf16.msra.mxu0 %v5445_v44  ;;  %v6707_v44 = vld [vmem:[#allocation30_spill] sm:$0xff] }
 0x42e   :  { %3863 = vmatprep.subr.bf16.mxu0 %v5451_v59 }
 0x42f   :  { %v2230_v14 = vpop.f32.mrb[20].mxu0 }
 0x430   :  { %v4262_v16 = vadd.f32 %v2230_v14, %v5553_v56  ;;  %v2232_v17 = vpop.f32.mrb[21].mxu0  ;;  %v6726_v14 = vld [vmem:[#allocation49_spill] sm:$0xff] }
 0x431   :  { %v4263_v18 = vadd.f32 %v2232_v17, %v5560_v38  ;;  %v2234_v19 = vpop.f32.mrb[22].mxu0  ;;  %3864 = vmatpush3.bf16.msra.mxu0 %v5455_v60  ;;  %v6728_v17 = vld [vmem:[#allocation51_spill] sm:$0xff] }
 0x432   :  { %4618 = vtanh.f32 %v4262_v16  ;;  %v4264_v22 = vadd.f32 %v2234_v19, %v5553_v56  ;;  %v2236_v24 = vpop.f32.mrb[23].mxu0  ;;  %3865 = vmatprep.subr.bf16.mxu0 %v5459_v26  ;;  %v6727_v16 = vld [vmem:[#allocation50_spill] sm:$0xff]  ;;  %v6730_v19 = vld [vmem:[#allocation52_spill] sm:$0xff] }
 0x433   :  { %4620 = vtanh.f32 %v4263_v18  ;;  %v4265_v45 = vadd.f32 %v2236_v24, %v5560_v38  ;;  %v6729_v18 = vmov 0   ;;  %v6732_v24 = vld [vmem:[#allocation54_spill] sm:$0xff] }
 0x434   :  { %4622 = vtanh.f32 %v4264_v22  ;;  %v6731_v22 = vld [vmem:[#allocation53_spill] sm:$0xff] }
 0x435   :  { %4624 = vtanh.f32 %v4265_v45  ;;  %3866 = vmatpush3.bf16.msra.mxu0 %v6639_v21  ;;  %v6733_v45 = vld [vmem:[#allocation55_spill] sm:$0xff] }
 0x436   :  { %3867 = vmatprep.subr.bf16.mxu0 %v6641_v8 }
 0x439   :  { %3868 = vmatpush3.bf16.msra.mxu0 %v6643_v13 }
 0x43a   :  { %3869 = vmatprep.subr.bf16.mxu0 %v6645_v58 }
 0x43c   :  { %v4619_v46 = vpop.eup %4618 }
 0x43d   :  { %v4621_v30 = vpop.eup %4620  ;;  %3870 = vmatpush3.bf16.msra.mxu0 %v6647_v23 }
 0x43e   :  { %v4623_v31 = vpop.eup %4622  ;;  %3871 = vmatprep.subr.bf16.mxu0 %v6649_v15 }
 0x43f   :  { %v4625_v33 = vpop.eup %4624  ;;  %v2327_v34 = vpack.c.bf16 %v4623_v31, %v4619_v46  ;;  %v6734_v46 = vld [vmem:[#allocation56_spill] sm:$0xff]  ;;  %v6736_v31 = vld [vmem:[#allocation58_spill] sm:$0xff] }
 0x440   :  { %v2328_v35 = vpack.c.bf16 %v4625_v33, %v4621_v30  ;;  %v6735_v30 = vld [vmem:[#allocation57_spill] sm:$0xff]  ;;  %v6737_v33 = vld [vmem:[#allocation59_spill] sm:$0xff] }
 0x441   :  { %3872 = vmatpush3.bf16.msra.mxu0 %v6651_v55 }
 0x442   :  { %2362 = vmatprep.mubr.bf16.mxu1 %v2328_v35  ;;  %3873 = vmatprep.subr.bf16.mxu0 %v6696_v40  ;;  %v6740_v35 = vld [vmem:[#allocation62_spill] sm:$0xff] }
 0x443   :  { %2363 = vmatmul.mubr.bf16.vlgmr.msra.gmra.mrb[28].mxu1 %v2327_v34  ;;  %v6739_v34 = vld [vmem:[#allocation61_spill] sm:$0xff] }
 0x444   :  { %2473 = vmatpush1.bf16.msra.mxu1 %v5235_v28  ;;  %2504 = vmatprep.mubr.bf16.mxu1 %v4572_v2  ;;  %v6701_v28 = vld [vmem:[#allocation24_spill] sm:$0xff] }
 0x445   :  { %2474 = vmatprep.subr.bf16.mxu1 %v5237_v29  ;;  %3874 = vmatpush3.bf16.msra.mxu0 %v6699_v54  ;;  %v6703_v29 = vld [vmem:[#allocation26_spill] sm:$0xff]  ;;  %v6725_v2 = vld [vmem:[#allocation48_spill] sm:$0xff] }
 0x446   :  { %2791 = vmatprep.subr.bf16.mxu0 %v5753_v57 }
 0x448   :  { %2475 = vmatpush1.bf16.msra.mxu1 %v6697_v43  ;;  %v6741_v43 = vld [vmem:[#allocation63_spill] sm:$0xff] }
 0x449   :  { %2476 = vmatprep.subr.bf16.mxu1 %v6698_v51  ;;  %v6742_v51 = vld [vmem:[#allocation64_spill] sm:$0xff] }
 0x44c   :  { %2477 = vmatpush1.bf16.msra.mxu1 %v6700_v63  ;;  %v6743_v63 = vld [vmem:[#allocation65_spill] sm:$0xff] }
 0x44d   :  { %2478 = vmatprep.subr.bf16.mxu1 %v6701_v28  ;;  %v6744_v28 = vld [vmem:[#allocation66_spill] sm:$0xff] }
 0x450   :  { %2479 = vmatpush1.bf16.msra.mxu1 %v6702_v3  ;;  %v6745_v3 = vld [vmem:[#allocation67_spill] sm:$0xff] }
 0x451   :  { %2480 = vmatprep.subr.bf16.mxu1 %v6703_v29  ;;  %v6746_v29 = vld [vmem:[#allocation69_spill] sm:$0xff] }
 0x454   :  { %2481 = vmatpush1.bf16.msra.mxu1 %v6704_v7  ;;  %v6747_v7 = vld [vmem:[#allocation72_spill] sm:$0xff] }
 0x455   :  { %2482 = vmatprep.subr.bf16.mxu1 %v6705_v10  ;;  %v6749_v10 = vld [vmem:[#allocation79_spill] sm:$0xff] }
 0x458   :  { %2483 = vmatpush1.bf16.msra.mxu1 %v6706_v27  ;;  %v6750_v27 = vld [vmem:[#allocation81_spill] sm:$0xff] }
 0x459   :  { %2484 = vmatprep.subr.bf16.mxu1 %v6707_v44 }
 0x45c   :  { %2485 = vmatpush1.bf16.msra.mxu1 %v6708_v1 }
 0x45d   :  { %2486 = vmatprep.subr.bf16.mxu1 %v6709_v25  ;;  %v6751_v25 = vld [vmem:[#allocation82_spill] sm:$0xff] }
 0x460   :  { %2487 = vmatpush1.bf16.msra.mxu1 %v6710_v36 }
 0x461   :  { %2488 = vmatprep.subr.bf16.mxu1 %v6711_v12  ;;  %v5820_v12 = vld [vmem:[#allocation7 + $0xc8] ss:$12 sps:$4 sm:$0xff]  }
 0x464   :  { %2489 = vmatpush1.bf16.msra.mxu1 %v6712_v61 }
 0x465   :  { %2490 = vmatprep.subr.bf16.mxu1 %v6713_v20 }
 0x468   :  { %2491 = vmatpush1.bf16.msra.mxu1 %v6714_v9 }
 0x469   :  { %2492 = vmatprep.subr.bf16.mxu1 %v6715_v50 }
 0x46c   :  { %2493 = vmatpush1.bf16.msra.mxu1 %v6716_v6 }
 0x46d   :  { %2494 = vmatprep.subr.bf16.mxu1 %v6717_v5 }
 0x470   :  { %2495 = vmatpush1.bf16.msra.mxu1 %v6718_v41 }
 0x471   :  { %2496 = vmatprep.subr.bf16.mxu1 %v6719_v42 }
 0x474   :  { %2497 = vmatpush1.bf16.msra.mxu1 %v6720_v37 }
 0x475   :  { %2498 = vmatprep.subr.bf16.mxu1 %v6721_v48 }
 0x478   :  { %2499 = vmatpush1.bf16.msra.mxu1 %v6722_v49 }
 0x479   :  { %2500 = vmatprep.subr.bf16.mxu1 %v6723_v47 }
 0x47c   :  { %2501 = vmatpush1.bf16.msra.mxu1 %v6724_v32 }
 0x47d   :  { %2502 = vmatprep.subr.bf16.mxu1 %v6725_v2 }
 0x480   :  { %2503 = vmatpush1.bf16.msra.mxu1 %v6726_v14 }
 0x481   :  { %2515 = vmatprep.subr.bf16.mxu1 %v6727_v16 }
 0x483   :  { %2505 = vmatmul.mubr.bf16.vlgmr.msra.gmra.mrb[32].mxu1 %v5705_v4  ;;  %v6738_v4 = vld [vmem:[#allocation60_spill] sm:$0xff] }
 0x484   :  { %2516 = vmatpush1.bf16.msra.mxu1 %v6728_v17  ;;  %2547 = vmatprep.mubr.bf16.mxu1 %v6729_v18 }
 0x485   :  { %2517 = vmatprep.subr.bf16.mxu1 %v6730_v19 }
 0x488   :  { %2518 = vmatpush1.bf16.msra.mxu1 %v6731_v22  ;;  %v5825_v22 = vld [vmem:[#allocation7 + $0x8] ss:$12 sps:$4 sm:$0xff]  }
 0x489   :  { %2519 = vmatprep.subr.bf16.mxu1 %v6732_v24  ;;  %v5828_v24 = vld [vmem:[#allocation7 + $0xe0] ss:$12 sps:$4 sm:$0xff]  }
 0x48c   :  { %2520 = vmatpush1.bf16.msra.mxu1 %v6733_v45 }
 0x48d   :  { %2521 = vmatprep.subr.bf16.mxu1 %v6734_v46  ;;  %v5831_v46 = vld [vmem:[#allocation7 + $0x20] ss:$12 sps:$4 sm:$0xff]  }
 0x490   :  { %2522 = vmatpush1.bf16.msra.mxu1 %v6735_v30 }
 0x491   :  { %2523 = vmatprep.subr.bf16.mxu1 %v6736_v31  ;;  %v5834_v31 = vld [vmem:[#allocation7 + $0xf8] ss:$12 sps:$4 sm:$0xff]  }
 0x494   :  { %2524 = vmatpush1.bf16.msra.mxu1 %v6737_v33 }
 0x495   :  { %2525 = vmatprep.subr.bf16.mxu1 %v6738_v4 }
 0x498   :  { %2526 = vmatpush1.bf16.msra.mxu1 %v6739_v34 }
 0x499   :  { %2527 = vmatprep.subr.bf16.mxu1 %v6740_v35 }
 0x49c   :  { %2528 = vmatpush1.bf16.msra.mxu1 %v6741_v43 }
 0x49d   :  { %2529 = vmatprep.subr.bf16.mxu1 %v6742_v51  ;;  %v5838_v51 = vld [vmem:[#allocation7 + $0x38] ss:$12 sps:$4 sm:$0xff]  }
 0x4a0   :  { %2530 = vmatpush1.bf16.msra.mxu1 %v6743_v63  ;;  %v5841_v63 = vld [vmem:[#allocation7 + $0x110] ss:$12 sps:$4 sm:$0xff]  }
 0x4a1   :  { %4154 = vmatprep.subr.bf16.mxu1 %v6616_v62 }
 0x4a3   :  { %2548 = vmatmul.mubr.bf16.vlgmr.msra.gmra.mrb[32].mxu1 %v5726_v11  ;;  %v6748_v11 = vld [vmem:[#allocation75_spill] sm:$0xff] }
 0x4a4   :  { %4155 = vmatpush3.bf16.msra.mxu1 %v6744_v28  ;;  %4170 = vmatprep.mubr.msk.bf16.mxu1 %vm4994_vm0, %v6616_v62 }
 0x4a5   :  { %4156 = vmatprep.subr.bf16.mxu1 %v6616_v62 }
 0x4a8   :  { %4157 = vmatpush3.bf16.msra.mxu1 %v6745_v3 }
 0x4a9   :  { %4158 = vmatprep.subr.bf16.mxu1 %v6616_v62 }
 0x4ac   :  { %4159 = vmatpush3.bf16.msra.mxu1 %v6746_v29 }
 0x4ad   :  { %4160 = vmatprep.subr.bf16.mxu1 %v6616_v62 }
 0x4b0   :  { %4161 = vmatpush3.bf16.msra.mxu1 %v6747_v7  ;;  %v5845_v7 = vld [vmem:[#allocation7 + $0x50] ss:$12 sps:$4 sm:$0xff]  }
 0x4b1   :  { %4162 = vmatprep.subr.bf16.mxu1 %v6616_v62 }
 0x4b4   :  { %4163 = vmatpush3.bf16.msra.mxu1 %v6748_v11  ;;  %v5848_v11 = vld [vmem:[#allocation7 + $0x128] ss:$12 sps:$4 sm:$0xff]  }
 0x4b5   :  { %4164 = vmatprep.subr.bf16.mxu1 %v6616_v62 }
 0x4b8   :  { %4165 = vmatpush3.bf16.msra.mxu1 %v6749_v10  ;;  %v5851_v10 = vld [vmem:[#allocation7 + $0x68] ss:$12 sps:$4 sm:$0xff]  }
 0x4b9   :  { %4166 = vmatprep.subr.bf16.mxu1 %v6616_v62 }
 0x4bb   :  { %v2405_v44 = vpop.f32.mrb[24].mxu0 }
 0x4bc   :  { %4167 = vmatpush3.bf16.msra.mxu1 %v6750_v27  ;;  %v4132_v1 = vpop.f32.mrb[25].mxu0  ;;  %v5854_v27 = vld [vmem:[#allocation7 + $0x140] ss:$12 sps:$4 sm:$0xff]  }
 0x4bd   :  { %4168 = vmatprep.subr.bf16.mxu1 %v6616_v62  ;;  %v2408_v36 = vpop.f32.mrb[26].mxu0  ;;  %v5860_v1 = vld [vmem:[#allocation7 + $0x158] ss:$12 sps:$4 sm:$0xff]  }
 0x4be   :  { %v4133_v61 = vpop.f32.mrb[27].mxu0 }
 0x4c0   :  { %4169 = vmatpush3.bf16.msra.mxu1 %v6751_v25 }
 0x4c1   :  { %3890 = vmatprep.subr.bf16.mxu1 %v5820_v12 }
 0x4db   :  { %v3844_v20 = vpop.f32.mrb[28].mxu0 }
 0x4dc   :  { %v3845_v9 = vpop.f32.mrb[29].mxu0 }
 0x4dd   :  { %v3847_v50 = vpop.f32.mrb[30].mxu0  ;;  %v3846_v5 = vadd.f32 %v3845_v9, %v3844_v20  ;;  %v5869_v20 = vld [vmem:[#allocation7 + $0x98] ss:$12 sps:$4 sm:$0xff]  }
 0x4de   :  { %v3848_v6 = vpop.f32.mrb[31].mxu0 }
 0x4df   :  { %v3849_v41 = vadd.f32 %v3848_v6, %v3847_v50  ;;  %v2593_v42 = vadd.f32 %v3846_v5, %v5532_v0  ;;  %v5874_v50 = vld [vmem:[#allocation7 + $0x170] ss:$12 sps:$4 sm:$0xff]  }
 0x4e0   :  { %v5877_v6 = vld [vmem:[#allocation7 + $0xb0] ss:$12 sps:$4 sm:$0xff]  }
 0x4e1   :  { %v2596_v37 = vadd.f32 %v3849_v41, %v5532_v0  ;;  %v5881_v5 = vld [vmem:[#allocation2 + $0x4c] ss:$12 sps:$4 sm:$0xff]   ;;  %v5883_v41 = vld [vmem:[#allocation2 + $0x48] ss:$12 sps:$4 sm:$0xff]  }
 0x4fb   :  { %v2633_v48 = vpop.f32.mrb[32].mxu0 }
 0x4fc   :  { %v2634_v49 = vadd.f32 %v2633_v48, %v2593_v42  ;;  %v4152_v47 = vpop.f32.mrb[33].mxu0  ;;  %v5887_v42 = vld [vmem:[#allocation7 + $0x188] ss:$12 sps:$4 sm:$0xff]   ;;  %v5897_v48 = vld [vmem:[#allocation7 + $0x1b8] ss:$12 sps:$4 sm:$0xff]  }
 0x4fd   :  { %v2636_v32 = vpop.f32.mrb[34].mxu0  ;;  %v5905_v47 = vld [vmem:[#allocation7 + $0x1e8] ss:$12 sps:$4 sm:$0xff]  }
 0x4fe   :  { %4626 = vtanh.f32 %v2634_v49  ;;  %v2637_v2 = vadd.f32 %v2636_v32, %v2596_v37  ;;  %v4153_v14 = vpop.f32.mrb[35].mxu0  ;;  %v5893_v37 = vld [vmem:[#allocation7 + $0x1a0] ss:$12 sps:$4 sm:$0xff]   ;;  %v5901_v49 = vld [vmem:[#allocation7 + $0x1d0] ss:$12 sps:$4 sm:$0xff]  }
 0x4ff   :  { %v5909_v32 = vld [vmem:[#allocation7 + $0x200] ss:$12 sps:$4 sm:$0xff]   ;;  %v5917_v14 = vld [vmem:[#allocation7 + $0x230] ss:$12 sps:$4 sm:$0xff]  }
 0x500   :  { %4628 = vtanh.f32 %v2637_v2  ;;  %v5913_v2 = vld [vmem:[#allocation7 + $0x218] ss:$12 sps:$4 sm:$0xff]  }
 0x508   :  { %v4627_v16 = vpop.eup %4626 }
 0x50a   :  { %v4629_v17 = vpop.eup %4628 }
 0x50b   :  { %v2648_v19 = vpack.c.bf16 %v4629_v17, %v4627_v16  ;;  %v5920_v16 = vld [vmem:[#allocation2 + $0x50] ss:$12 sps:$4 sm:$0xff]  }
 0x50c   :  { %v5922_v17 = vld [vmem:[#allocation8 + $0x40] sm:$0xff]  }
 0x50d   :  { %4171 = vmatmul.mubr.bf16.vlgmr.msra.gmra.mrb[36].mxu1 %v2648_v19  ;;  %v5926_v19 = vld [vmem:[#allocation8] sm:$0xff]  }
 0x50e   :  { %3891 = vmatpush3.bf16.msra.mxu1 %v5825_v22  ;;  %2909 = vmatprep.mubr.bf16.mxu1 %v5881_v5 }
 0x50f   :  { %3892 = vmatprep.subr.bf16.mxu1 %v5828_v24 }
 0x512   :  { %3893 = vmatpush3.bf16.msra.mxu1 %v5831_v46 }
 0x513   :  { %3894 = vmatprep.subr.bf16.mxu1 %v5834_v31 }
 0x516   :  { %v3813_v45 = vpop.f32.mrb[28].mxu1  ;;  %3895 = vmatpush3.bf16.msra.mxu1 %v5838_v51 }
 0x517   :  { %v3814_v30 = vpop.f32.mrb[29].mxu1  ;;  %3896 = vmatprep.subr.bf16.mxu1 %v5841_v63 }
 0x518   :  { %v3815_v33 = vadd.f32 %v3814_v30, %v3813_v45  ;;  %v3816_v4 = vpop.f32.mrb[30].mxu1  ;;  %v5929_v45 = vld [vmem:[#allocation8 + $0x48] sm:$0xff]  }
 0x519   :  { %v3817_v34 = vpop.f32.mrb[31].mxu1  ;;  %v5932_v30 = vld [vmem:[#allocation8 + $0x8] sm:$0xff]  }
 0x51a   :  { %v3818_v35 = vadd.f32 %v3817_v34, %v3816_v4  ;;  %v2365_v43 = vadd.f32 %v3815_v33, %v5676_v52  ;;  %3897 = vmatpush3.bf16.msra.mxu1 %v5845_v7 }
 0x51b   :  { %3898 = vmatprep.subr.bf16.mxu1 %v5848_v11 }
 0x51c   :  { %v2406_v28 = vadd.f32 %v2405_v44, %v2365_v43  ;;  %v2368_v3 = vadd.f32 %v3818_v35, %v5676_v52  ;;  %v5857_v44 = vld [vmem:[#allocation7 + $0x80] ss:$12 sps:$4 sm:$0xff]  }
 0x51e   :  { %4630 = vtanh.f32 %v2406_v28  ;;  %v2409_v29 = vadd.f32 %v2408_v36, %v2368_v3  ;;  %3899 = vmatpush3.bf16.msra.mxu1 %v5851_v10 }
 0x51f   :  { %3900 = vmatprep.subr.bf16.mxu1 %v5854_v27 }
 0x520   :  { %4632 = vtanh.f32 %v2409_v29 }
 0x522   :  { %3901 = vmatpush3.bf16.msra.mxu1 %v5857_v44 }
 0x523   :  { %3902 = vmatprep.subr.bf16.mxu1 %v5860_v1 }
 0x526   :  { %3903 = vmatpush3.bf16.msra.mxu1 %v5869_v20 }
 0x527   :  { %3904 = vmatprep.subr.bf16.mxu1 %v5874_v50 }
 0x528   :  { %v5863_v25 = vpop.eup %4630 }
 0x529   :  { %6752 = vst [vmem:[#allocation71_spill] sm:$0xff] %v5863_v25  ;;  %v2420_v36 = vmul.f32 %v5863_v25, %v5863_v25  ;;  %v6028_v25 = vld [vmem:[#allocation7 + $0x13c] ss:$12 sps:$4 sm:$0xff]  }
 0x52a   :  { %v5867_v61 = vpop.eup %4632  ;;  %3905 = vmatpush3.bf16.msra.mxu1 %v5877_v6  ;;  %6766 = vst [vmem:[#allocation26_spill] sm:$0xff] %v6028_v25 }
 0x52b   :  { %6753 = vst [vmem:[#allocation73_spill] sm:$0xff] %v5867_v61  ;;  %2422 = vadd.xlane.f32.xlu0 %v2420_v36  ;;  %v2421_v9 = vmul.f32 %v5867_v61, %v5867_v61  ;;  %4174 = vmatprep.subr.bf16.mxu1 %v6616_v62  ;;  %v6025_v61 = vld [vmem:[#allocation7 + $0x120] ss:$12 sps:$4 sm:$0xff]  }
 0x52c   :  { %6765 = vst [vmem:[#allocation25_spill] sm:$0xff] %v6025_v61 }
 0x52d   :  { %2424 = vadd.xlane.f32.xlu1 %v2421_v9  ;;  %2910 = vmatmul.mubr.bf16.vlgmr.msra.gmra.mrb[40].mxu1 %v5883_v41  ;;  %v5977_v9 = vld [vmem:[#allocation7 + $0x60] ss:$12 sps:$4 sm:$0xff]  }
 0x52e   :  { %4175 = vmatpush3.bf16.msra.mxu1 %v5887_v42  ;;  %4190 = vmatprep.mubr.msk.bf16.mxu1 %vm4994_vm0, %v6616_v62 }
 0x52f   :  { %4176 = vmatprep.subr.bf16.mxu1 %v6616_v62 }
 0x532   :  { %4177 = vmatpush3.bf16.msra.mxu1 %v5893_v37 }
 0x533   :  { %4178 = vmatprep.subr.bf16.mxu1 %v6616_v62 }
 0x536   :  { %4179 = vmatpush3.bf16.msra.mxu1 %v5897_v48 }
 0x537   :  { %4180 = vmatprep.subr.bf16.mxu1 %v6616_v62 }
 0x53a   :  { %4181 = vmatpush3.bf16.msra.mxu1 %v5901_v49 }
 0x53b   :  { %4182 = vmatprep.subr.bf16.mxu1 %v6616_v62 }
 0x53e   :  { %4183 = vmatpush3.bf16.msra.mxu1 %v5905_v47 }
 0x53f   :  { %4184 = vmatprep.subr.bf16.mxu1 %v6616_v62 }
 0x542   :  { %4185 = vmatpush3.bf16.msra.mxu1 %v5909_v32 }
 0x543   :  { %4186 = vmatprep.subr.bf16.mxu1 %v6616_v62 }
 0x546   :  { %4187 = vmatpush3.bf16.msra.mxu1 %v5913_v2 }
 0x547   :  { %4188 = vmatprep.subr.bf16.mxu1 %v6616_v62 }
 0x54a   :  { %4189 = vmatpush3.bf16.msra.mxu1 %v5917_v14 }
 0x54b   :  { %3921 = vmatprep.subr.bf16.mxu1 %v5922_v17 }
 0x54d   :  { %4191 = vmatmul.mubr.bf16.vlgmr.msra.gmra.mrb[44].mxu1 %v5920_v16 }
 0x54e   :  { %3922 = vmatpush3.bf16.msra.mxu1 %v5926_v19 }
 0x54f   :  { %3923 = vmatprep.subr.bf16.mxu1 %v5929_v45 }
 0x552   :  { %3924 = vmatpush3.bf16.msra.mxu1 %v5932_v30 }
 0x553   :  { %3925 = vmatprep.subr.bf16.mxu1 %v5451_v59 }
 0x556   :  { %3926 = vmatpush3.bf16.msra.mxu1 %v5455_v60 }
 0x557   :  { %3927 = vmatprep.subr.bf16.mxu1 %v5459_v26 }
 0x55a   :  { %3928 = vmatpush3.bf16.msra.mxu1 %v6639_v21 }
 0x55b   :  { %3929 = vmatprep.subr.bf16.mxu1 %v6641_v8 }
 0x55e   :  { %3930 = vmatpush3.bf16.msra.mxu1 %v6643_v13  ;;  %v5952_v13 = vld [vmem:[#allocation7] ss:$12 sps:$4 sm:$0xff]  }
 0x55f   :  { %3931 = vmatprep.subr.bf16.mxu1 %v6645_v58  ;;  %v5956_v58 = vld [vmem:[#allocation7 + $0x1c] ss:$12 sps:$4 sm:$0xff]  }
 0x562   :  { %3932 = vmatpush3.bf16.msra.mxu1 %v6647_v23  ;;  %v5959_v23 = vld [vmem:[#allocation7 + $0x18] ss:$12 sps:$4 sm:$0xff]  }
 0x563   :  { %3933 = vmatprep.subr.bf16.mxu1 %v6649_v15  ;;  %v5962_v15 = vld [vmem:[#allocation7 + $0x34] ss:$12 sps:$4 sm:$0xff]  }
 0x566   :  { %3934 = vmatpush3.bf16.msra.mxu1 %v6651_v55  ;;  %v5965_v55 = vld [vmem:[#allocation7 + $0x30] ss:$12 sps:$4 sm:$0xff]  }
 0x567   :  { %3935 = vmatprep.subr.bf16.mxu1 %v6696_v40  ;;  %v5968_v40 = vld [vmem:[#allocation7 + $0x4c] ss:$12 sps:$4 sm:$0xff]  }
 0x56a   :  { %3936 = vmatpush3.bf16.msra.mxu1 %v6699_v54  ;;  %v5971_v54 = vld [vmem:[#allocation7 + $0x48] ss:$12 sps:$4 sm:$0xff]  }
 0x56b   :  { %3110 = vmatprep.subr.bf16.mxu1 %v5753_v57  ;;  %v5974_v57 = vld [vmem:[#allocation7 + $0x64] ss:$12 sps:$4 sm:$0xff]  }
 0x576   :  { %v2549_v33 = vpop.f32.mrb[32].mxu1 }
 0x577   :  { %v4266_v4 = vadd.f32 %v2549_v33, %v5553_v56  ;;  %v2551_v34 = vpop.f32.mrb[33].mxu1  ;;  %v5983_v33 = vld [vmem:[#allocation7 + $0x78] ss:$12 sps:$4 sm:$0xff]  }
 0x578   :  { %v4267_v35 = vadd.f32 %v2551_v34, %v5560_v38  ;;  %v2553_v43 = vpop.f32.mrb[34].mxu1  ;;  %v5989_v34 = vld [vmem:[#allocation7 + $0x90] ss:$12 sps:$4 sm:$0xff]  }
 0x579   :  { %4634 = vtanh.f32 %v4266_v4  ;;  %v4268_v28 = vadd.f32 %v2553_v43, %v5553_v56  ;;  %v2555_v3 = vpop.f32.mrb[35].mxu1  ;;  %v5986_v4 = vld [vmem:[#allocation7 + $0x94] ss:$12 sps:$4 sm:$0xff]  }
 0x57a   :  { %4636 = vtanh.f32 %v4267_v35  ;;  %v4269_v59 = vadd.f32 %v2555_v3, %v5560_v38  ;;  %v5992_v35 = vld [vmem:[#allocation7 + $0xac] ss:$12 sps:$4 sm:$0xff]   ;;  %v5995_v43 = vld [vmem:[#allocation7 + $0xa8] ss:$12 sps:$4 sm:$0xff]  }
 0x57b   :  { %4638 = vtanh.f32 %v4268_v28  ;;  %6754 = vst [vmem:[#allocation74_spill] sm:$0xff] %v5992_v35  ;;  %6755 = vst [vmem:[#allocation76_spill] sm:$0xff] %v5995_v43  ;;  %v5998_v28 = vld [vmem:[#allocation7 + $0xc4] ss:$12 sps:$4 sm:$0xff]   ;;  %v6001_v3 = vld [vmem:[#allocation7 + $0xc0] ss:$12 sps:$4 sm:$0xff]  }
 0x57c   :  { %4640 = vtanh.f32 %v4269_v59  ;;  %6756 = vst [vmem:[#allocation77_spill] sm:$0xff] %v5998_v28  ;;  %6757 = vst [vmem:[#allocation19_spill] sm:$0xff] %v6001_v3  ;;  %v6004_v59 = vld [vmem:[#allocation7 + $0xdc] ss:$12 sps:$4 sm:$0xff]  }
 0x57d   :  { %6758 = vst [vmem:[#allocation20_spill] sm:$0xff] %v6004_v59 }
 0x583   :  { %v4635_v60 = vpop.eup %4634 }
 0x584   :  { %v4637_v26 = vpop.eup %4636 }
 0x585   :  { %v4639_v21 = vpop.eup %4638 }
 0x586   :  { %v4641_v8 = vpop.eup %4640  ;;  %v2646_v29 = vpack.c.bf16 %v4639_v21, %v4635_v60  ;;  %v6007_v60 = vld [vmem:[#allocation7 + $0xd8] ss:$12 sps:$4 sm:$0xff]   ;;  %v6013_v21 = vld [vmem:[#allocation7 + $0xf0] ss:$12 sps:$4 sm:$0xff]  }
 0x587   :  { %v2647_v36 = vpack.c.bf16 %v4641_v8, %v4637_v26  ;;  %6759 = vst [vmem:[#allocation78_spill] sm:$0xff] %v6007_v60  ;;  %v6010_v26 = vld [vmem:[#allocation7 + $0xf4] ss:$12 sps:$4 sm:$0xff]   ;;  %6761 = vst [vmem:[#allocation22_spill] sm:$0xff] %v6013_v21  ;;  %v6016_v8 = vld [vmem:[#allocation7 + $0x10c] ss:$12 sps:$4 sm:$0xff]  }
 0x588   :  { %6760 = vst [vmem:[#allocation21_spill] sm:$0xff] %v6010_v26  ;;  %6762 = vst [vmem:[#allocation80_spill] sm:$0xff] %v6016_v8 }
 0x589   :  { %2681 = vmatprep.mubr.bf16.mxu0 %v2647_v36  ;;  %v6022_v36 = vld [vmem:[#allocation7 + $0x124] ss:$12 sps:$4 sm:$0xff]  }
 0x58a   :  { %2682 = vmatmul.mubr.bf16.vlgmr.msra.gmra.mrb[36].mxu0 %v2646_v29  ;;  %v6019_v29 = vld [vmem:[#allocation7 + $0x108] ss:$12 sps:$4 sm:$0xff]   ;;  %6764 = vst [vmem:[#allocation24_spill] sm:$0xff] %v6022_v36 }
 0x58b   :  { %2792 = vmatpush1.bf16.msra.mxu0 %v5952_v13  ;;  %2823 = vmatprep.mubr.bf16.mxu0 %v5881_v5  ;;  %v5980_v5 = vld [vmem:[#allocation7 + $0x7c] ss:$12 sps:$4 sm:$0xff]   ;;  %6763 = vst [vmem:[#allocation23_spill] sm:$0xff] %v6019_v29 }
 0x58c   :  { %2793 = vmatprep.subr.bf16.mxu0 %v5956_v58 }
 0x58f   :  { %2794 = vmatpush1.bf16.msra.mxu0 %v5959_v23 }
 0x590   :  { %2795 = vmatprep.subr.bf16.mxu0 %v5962_v15 }
 0x593   :  { %2796 = vmatpush1.bf16.msra.mxu0 %v5965_v55 }
 0x594   :  { %2797 = vmatprep.subr.bf16.mxu0 %v5968_v40 }
 0x597   :  { %2798 = vmatpush1.bf16.msra.mxu0 %v5971_v54 }
 0x598   :  { %2799 = vmatprep.subr.bf16.mxu0 %v5974_v57 }
 0x59b   :  { %2800 = vmatpush1.bf16.msra.mxu0 %v5977_v9 }
 0x59c   :  { %2801 = vmatprep.subr.bf16.mxu0 %v5980_v5 }
 0x59f   :  { %2802 = vmatpush1.bf16.msra.mxu0 %v5983_v33 }
 0x5a0   :  { %2803 = vmatprep.subr.bf16.mxu0 %v5986_v4 }
 0x5a3   :  { %2804 = vmatpush1.bf16.msra.mxu0 %v5989_v34 }
 0x5a4   :  { %2805 = vmatprep.subr.bf16.mxu0 %v5992_v35 }
 0x5a7   :  { %2806 = vmatpush1.bf16.msra.mxu0 %v5995_v43 }
 0x5a8   :  { %2807 = vmatprep.subr.bf16.mxu0 %v5998_v28 }
 0x5ab   :  { %2808 = vmatpush1.bf16.msra.mxu0 %v6001_v3 }
 0x5ac   :  { %2809 = vmatprep.subr.bf16.mxu0 %v6004_v59 }
 0x5af   :  { %2810 = vmatpush1.bf16.msra.mxu0 %v6007_v60 }
 0x5b0   :  { %2811 = vmatprep.subr.bf16.mxu0 %v6010_v26 }
 0x5b3   :  { %2812 = vmatpush1.bf16.msra.mxu0 %v6013_v21 }
 0x5b4   :  { %2813 = vmatprep.subr.bf16.mxu0 %v6016_v8 }
 0x5b7   :  { %2814 = vmatpush1.bf16.msra.mxu0 %v6019_v29  ;;  %v6037_v29 = vld [vmem:[#allocation7 + $0x150] ss:$12 sps:$4 sm:$0xff]  }
 0x5b8   :  { %2815 = vmatprep.subr.bf16.mxu0 %v6022_v36  ;;  %6769 = vst [vmem:[#allocation29_spill] sm:$0xff] %v6037_v29  ;;  %v6040_v36 = vld [vmem:[#allocation7 + $0x16c] ss:$12 sps:$4 sm:$0xff]  }
 0x5b9   :  { %6770 = vst [vmem:[#allocation30_spill] sm:$0xff] %v6040_v36 }
 0x5bb   :  { %2816 = vmatpush1.bf16.msra.mxu0 %v6025_v61  ;;  %v6043_v61 = vld [vmem:[#allocation7 + $0x168] ss:$12 sps:$4 sm:$0xff]  }
 0x5bc   :  { %2817 = vmatprep.subr.bf16.mxu0 %v6028_v25  ;;  %6771 = vst [vmem:[#allocation31_spill] sm:$0xff] %v6043_v61  ;;  %v6046_v25 = vld [vmem:[#allocation7 + $0x184] ss:$12 sps:$4 sm:$0xff]  }
 0x5bd   :  { %6772 = vst [vmem:[#allocation32_spill] sm:$0xff] %v6046_v25 }
 0x5bf   :  { %2818 = vmatpush1.bf16.msra.mxu0 %v6031_v53  ;;  %v6050_v53 = vld [vmem:[#allocation7 + $0x180] ss:$12 sps:$4 sm:$0xff]  }
 0x5c0   :  { %2819 = vmatprep.subr.bf16.mxu0 %v6034_v39  ;;  %6773 = vst [vmem:[#allocation33_spill] sm:$0xff] %v6050_v53  ;;  %v6097_v39 = vld [vmem:[#allocation7 + $0x228] ss:$12 sps:$4 sm:$0xff]  }
 0x5c1   :  { %6787 = vst [vmem:[#allocation47_spill] sm:$0xff] %v6097_v39 }
 0x5c3   :  { %2820 = vmatpush1.bf16.msra.mxu0 %v6037_v29  ;;  %v6054_v29 = vld [vmem:[#allocation7 + $0x19c] ss:$12 sps:$4 sm:$0xff]  }
 0x5c4   :  { %2821 = vmatprep.subr.bf16.mxu0 %v6040_v36  ;;  %6774 = vst [vmem:[#allocation34_spill] sm:$0xff] %v6054_v29  ;;  %v6057_v36 = vld [vmem:[#allocation7 + $0x198] ss:$12 sps:$4 sm:$0xff]  }
 0x5c5   :  { %6775 = vst [vmem:[#allocation35_spill] sm:$0xff] %v6057_v36 }
 0x5c7   :  { %2822 = vmatpush1.bf16.msra.mxu0 %v6043_v61  ;;  %v6060_v61 = vld [vmem:[#allocation7 + $0x1b4] ss:$12 sps:$4 sm:$0xff]  }
 0x5c8   :  { %2834 = vmatprep.subr.bf16.mxu0 %v6046_v25  ;;  %6776 = vst [vmem:[#allocation36_spill] sm:$0xff] %v6060_v61  ;;  %v6063_v25 = vld [vmem:[#allocation7 + $0x1b0] ss:$12 sps:$4 sm:$0xff]  }
 0x5c9   :  { %6777 = vst [vmem:[#allocation37_spill] sm:$0xff] %v6063_v25 }
 0x5ca   :  { %2824 = vmatmul.mubr.bf16.vlgmr.msra.gmra.mrb[40].mxu0 %v5883_v41  ;;  %v6066_v41 = vld [vmem:[#allocation7 + $0x1cc] ss:$12 sps:$4 sm:$0xff]  }
 0x5cb   :  { %2835 = vmatpush1.bf16.msra.mxu0 %v6050_v53  ;;  %2866 = vmatprep.mubr.bf16.mxu0 %v6729_v18  ;;  %6778 = vst [vmem:[#allocation38_spill] sm:$0xff] %v6066_v41  ;;  %v6069_v18 = vld [vmem:[#allocation7 + $0x1c8] ss:$12 sps:$4 sm:$0xff]  }
 0x5cc   :  { %2836 = vmatprep.subr.bf16.mxu0 %v6054_v29  ;;  %6779 = vst [vmem:[#allocation39_spill] sm:$0xff] %v6069_v18  ;;  %v6072_v29 = vld [vmem:[#allocation7 + $0x1e4] ss:$12 sps:$4 sm:$0xff]  }
 0x5cd   :  { %6780 = vst [vmem:[#allocation40_spill] sm:$0xff] %v6072_v29 }
 0x5cf   :  { %2837 = vmatpush1.bf16.msra.mxu0 %v6057_v36  ;;  %v6075_v36 = vld [vmem:[#allocation7 + $0x1e0] ss:$12 sps:$4 sm:$0xff]  }
 0x5d0   :  { %2838 = vmatprep.subr.bf16.mxu0 %v6060_v61  ;;  %6781 = vst [vmem:[#allocation41_spill] sm:$0xff] %v6075_v36  ;;  %v6078_v61 = vld [vmem:[#allocation7 + $0x1fc] ss:$12 sps:$4 sm:$0xff]  }
 0x5d1   :  { %6782 = vst [vmem:[#allocation42_spill] sm:$0xff] %v6078_v61 }
 0x5d3   :  { %2839 = vmatpush1.bf16.msra.mxu0 %v6063_v25  ;;  %v6081_v25 = vld [vmem:[#allocation7 + $0x1f8] ss:$12 sps:$4 sm:$0xff]  }
 0x5d4   :  { %2840 = vmatprep.subr.bf16.mxu0 %v6066_v41  ;;  %6783 = vst [vmem:[#allocation43_spill] sm:$0xff] %v6081_v25  ;;  %v6084_v41 = vld [vmem:[#allocation7 + $0x214] ss:$12 sps:$4 sm:$0xff]  }
 0x5d5   :  { %6784 = vst [vmem:[#allocation44_spill] sm:$0xff] %v6084_v41 }
 0x5d7   :  { %2841 = vmatpush1.bf16.msra.mxu0 %v6069_v18  ;;  %v6087_v18 = vld [vmem:[#allocation7 + $0x210] ss:$12 sps:$4 sm:$0xff]  }
 0x5d8   :  { %2842 = vmatprep.subr.bf16.mxu0 %v6072_v29  ;;  %6785 = vst [vmem:[#allocation45_spill] sm:$0xff] %v6087_v18  ;;  %v6090_v29 = vld [vmem:[#allocation7 + $0x22c] ss:$12 sps:$4 sm:$0xff]  }
 0x5d9   :  { %6786 = vst [vmem:[#allocation46_spill] sm:$0xff] %v6090_v29 }
 0x5db   :  { %2843 = vmatpush1.bf16.msra.mxu0 %v6075_v36 }
 0x5dc   :  { %2844 = vmatprep.subr.bf16.mxu0 %v6078_v61 }
 0x5df   :  { %2845 = vmatpush1.bf16.msra.mxu0 %v6081_v25 }
 0x5e0   :  { %2846 = vmatprep.subr.bf16.mxu0 %v6084_v41  ;;  %v6093_v36 = vpop.f32.mrb[36].mxu1  ;;  %v6102_v41 = vld [vmem:[#allocation8 + $0x80] sm:$0xff]  }
 0x5e1   :  { %v4172_v53 = vpop.f32.mrb[37].mxu1  ;;  %6788 = vst [vmem:[#allocation48_spill] sm:$0xff] %v6102_v41 }
 0x5e2   :  { %v6095_v61 = vpop.f32.mrb[38].mxu1  ;;  %v6108_v53 = vld [vmem:[#allocation8 + $0x88] sm:$0xff]  }
 0x5e3   :  { %2847 = vmatpush1.bf16.msra.mxu0 %v6087_v18  ;;  %v4173_v25 = vpop.f32.mrb[39].mxu1  ;;  %6789 = vst [vmem:[#allocation49_spill] sm:$0xff] %v6108_v53 }
 0x5e4   :  { %2848 = vmatprep.subr.bf16.mxu0 %v6090_v29  ;;  %v6112_v25 = vld [vmem:[#allocation8 + $0x90] sm:$0xff]  }
 0x5e5   :  { %6790 = vst [vmem:[#allocation50_spill] sm:$0xff] %v6112_v25 }
 0x5e7   :  { %2849 = vmatpush1.bf16.msra.mxu0 %v6097_v39 }
 0x5e8   :  { %4194 = vmatprep.subr.bf16.mxu0 %v6616_v62 }
 0x5ea   :  { %2867 = vmatmul.mubr.bf16.vlgmr.msra.gmra.mrb[40].mxu0 %v5920_v16  ;;  %v6116_v16 = vld [vmem:[#allocation8 + $0x98] sm:$0xff]  }
 0x5eb   :  { %4195 = vmatpush3.bf16.msra.mxu0 %v6102_v41  ;;  %4210 = vmatprep.mubr.msk.bf16.mxu0 %vm4994_vm0, %v6616_v62  ;;  %6791 = vst [vmem:[#allocation51_spill] sm:$0xff] %v6116_v16  ;;  %v6120_v41 = vld [vmem:[#allocation8 + $0xa0] sm:$0xff]  }
 0x5ec   :  { %4196 = vmatprep.subr.bf16.mxu0 %v6616_v62  ;;  %6792 = vst [vmem:[#allocation52_spill] sm:$0xff] %v6120_v41 }
 0x5ef   :  { %4197 = vmatpush3.bf16.msra.mxu0 %v6108_v53  ;;  %v6124_v53 = vld [vmem:[#allocation8 + $0xa8] sm:$0xff]  }
 0x5f0   :  { %4198 = vmatprep.subr.bf16.mxu0 %v6616_v62  ;;  %6793 = vst [vmem:[#allocation53_spill] sm:$0xff] %v6124_v53 }
 0x5f3   :  { %4199 = vmatpush3.bf16.msra.mxu0 %v6112_v25  ;;  %v6128_v25 = vld [vmem:[#allocation8 + $0xb0] sm:$0xff]  }
 0x5f4   :  { %4200 = vmatprep.subr.bf16.mxu0 %v6616_v62  ;;  %6794 = vst [vmem:[#allocation54_spill] sm:$0xff] %v6128_v25 }
 0x5f7   :  { %4201 = vmatpush3.bf16.msra.mxu0 %v6116_v16  ;;  %v6132_v16 = vld [vmem:[#allocation8 + $0xb8] sm:$0xff]  }
 0x5f8   :  { %4202 = vmatprep.subr.bf16.mxu0 %v6616_v62  ;;  %6795 = vst [vmem:[#allocation55_spill] sm:$0xff] %v6132_v16 }
 0x5fb   :  { %4203 = vmatpush3.bf16.msra.mxu0 %v6120_v41 }
 0x5fc   :  { %4204 = vmatprep.subr.bf16.mxu0 %v6616_v62 }
 0x5ff   :  { %4205 = vmatpush3.bf16.msra.mxu0 %v6124_v53 }
 0x600   :  { %4206 = vmatprep.subr.bf16.mxu0 %v6616_v62  ;;  %v3906_v41 = vpop.f32.mrb[40].mxu1 }
 0x601   :  { %v3907_v39 = vpop.f32.mrb[41].mxu1 }
 0x602   :  { %v3909_v29 = vpop.f32.mrb[42].mxu1  ;;  %v3908_v8 = vadd.f32 %v3907_v39, %v3906_v41 }
 0x603   :  { %4207 = vmatpush3.bf16.msra.mxu0 %v6128_v25  ;;  %v3910_v18 = vpop.f32.mrb[43].mxu1 }
 0x604   :  { %4208 = vmatprep.subr.bf16.mxu0 %v6616_v62  ;;  %v3911_v53 = vadd.f32 %v3910_v18, %v3909_v29  ;;  %v2912_v60 = vadd.f32 %v3908_v8, %v5532_v0 }
 0x606   :  { %v2915_v25 = vadd.f32 %v3911_v53, %v5532_v0  ;;  %v6809_v53 = vld [vmem:[#allocation27_spill] sm:$0xff] }
 0x607   :  { %4209 = vmatpush3.bf16.msra.mxu0 %v6132_v16 }
 0x608   :  { %3952 = vmatprep.subr.bf16.mxu0 %v5820_v12 }
 0x620   :  { %v2952_v21 = vpop.f32.mrb[44].mxu1 }
 0x621   :  { %v4192_v26 = vpop.f32.mrb[45].mxu1  ;;  %v2953_v28 = vadd.f32 %v2952_v21, %v2912_v60 }
 0x622   :  { %v2955_v59 = vpop.f32.mrb[46].mxu1 }
 0x623   :  { %v4193_v3 = vpop.f32.mrb[47].mxu1  ;;  %v2956_v43 = vadd.f32 %v2955_v59, %v2915_v25  ;;  %4642 = vtanh.f32 %v2953_v28  ;;  %v6810_v25 = vld [vmem:[#allocation28_spill] sm:$0xff] }
 0x625   :  { %4644 = vtanh.f32 %v2956_v43 }
 0x62d   :  { %v4643_v16 = vpop.eup %4642 }
 0x62f   :  { %v4645_v12 = vpop.eup %4644 }
 0x630   :  { %v2967_v35 = vpack.c.bf16 %v4645_v12, %v4643_v16  ;;  %v6811_v16 = vld [vmem:[#allocation29_spill] sm:$0xff]  ;;  %v6812_v12 = vld [vmem:[#allocation30_spill] sm:$0xff] }
 0x632   :  { %4211 = vmatmul.mubr.bf16.vlgmr.msra.gmra.mrb[44].mxu0 %v2967_v35 }
 0x633   :  { %3953 = vmatpush3.bf16.msra.mxu0 %v5825_v22 }
 0x634   :  { %3954 = vmatprep.subr.bf16.mxu0 %v5828_v24 }
 0x637   :  { %3955 = vmatpush3.bf16.msra.mxu0 %v5831_v46 }
 0x638   :  { %3956 = vmatprep.subr.bf16.mxu0 %v5834_v31 }
 0x63b   :  { %3957 = vmatpush3.bf16.msra.mxu0 %v5838_v51 }
 0x63c   :  { %3958 = vmatprep.subr.bf16.mxu0 %v5841_v63 }
 0x63f   :  { %3959 = vmatpush3.bf16.msra.mxu0 %v5845_v7  ;;  %v6166_v7 = vld [vmem:[#allocation2 + $0x60] ss:$12 sps:$4 sm:$0xff]  }
 0x640   :  { %3960 = vmatprep.subr.bf16.mxu0 %v5848_v11  ;;  %v6168_v11 = vld [vmem:[#allocation2 + $0x64] ss:$12 sps:$4 sm:$0xff]  }
 0x641   :  { %3228 = vmatprep.mubr.bf16.mxu0 %v6168_v11 }
 0x643   :  { %3961 = vmatpush3.bf16.msra.mxu0 %v5851_v10  ;;  %v6189_v10 = vld [vmem:[#allocation2 + $0x68] ss:$12 sps:$4 sm:$0xff]  }
 0x644   :  { %3962 = vmatprep.subr.bf16.mxu0 %v5854_v27  ;;  %v4806_v27 = vld [vmem:[#allocation8 + $0x50] sm:$0xff]  }
 0x647   :  { %3963 = vmatpush3.bf16.msra.mxu0 %v5857_v44  ;;  %v4807_v44 = vld [vmem:[#allocation8 + $0x10] sm:$0xff]  }
 0x648   :  { %3964 = vmatprep.subr.bf16.mxu0 %v5860_v1  ;;  %v4808_v1 = vld [vmem:[#allocation8 + $0x58] sm:$0xff]  }
 0x64b   :  { %3965 = vmatpush3.bf16.msra.mxu0 %v5869_v20  ;;  %v4810_v20 = vld [vmem:[#allocation8 + $0x60] sm:$0xff]  }
 0x64c   :  { %3966 = vmatprep.subr.bf16.mxu0 %v5874_v50  ;;  %v4811_v50 = vld [vmem:[#allocation8 + $0x20] sm:$0xff]  }
 0x64f   :  { %3967 = vmatpush3.bf16.msra.mxu0 %v5877_v6  ;;  %v4812_v6 = vld [vmem:[#allocation8 + $0x68] sm:$0xff]  }
 0x650   :  { %4214 = vmatprep.subr.bf16.mxu0 %v6616_v62 }
 0x652   :  { %3229 = vmatmul.mubr.bf16.vlgmr.msra.gmra.mrb[48].mxu0 %v6166_v7 }
 0x653   :  { %4215 = vmatpush3.bf16.msra.mxu0 %v5887_v42  ;;  %4230 = vmatprep.mubr.msk.bf16.mxu0 %vm4994_vm0, %v6616_v62  ;;  %v4813_v42 = vld [vmem:[#allocation8 + $0x28] sm:$0xff]  }
 0x654   :  { %4216 = vmatprep.subr.bf16.mxu0 %v6616_v62 }
 0x657   :  { %4217 = vmatpush3.bf16.msra.mxu0 %v5893_v37  ;;  %v4814_v37 = vld [vmem:[#allocation8 + $0x70] sm:$0xff]  }
 0x658   :  { %4218 = vmatprep.subr.bf16.mxu0 %v6616_v62 }
 0x65b   :  { %4219 = vmatpush3.bf16.msra.mxu0 %v5897_v48  ;;  %v4815_v48 = vld [vmem:[#allocation8 + $0x30] sm:$0xff]  }
 0x65c   :  { %4220 = vmatprep.subr.bf16.mxu0 %v6616_v62 }
 0x65d   :  { %v3875_v39 = vpop.f32.mrb[36].mxu0 }
 0x65e   :  { %v3876_v18 = vpop.f32.mrb[37].mxu0 }
 0x65f   :  { %v3877_v26 = vadd.f32 %v3876_v18, %v3875_v39  ;;  %v3878_v3 = vpop.f32.mrb[38].mxu0  ;;  %4221 = vmatpush3.bf16.msra.mxu0 %v5901_v49  ;;  %v4816_v49 = vld [vmem:[#allocation8 + $0x78] sm:$0xff]   ;;  %v6813_v39 = vld [vmem:[#allocation31_spill] sm:$0xff] }
 0x660   :  { %v3879_v60 = vpop.f32.mrb[39].mxu0  ;;  %4222 = vmatprep.subr.bf16.mxu0 %v6616_v62  ;;  %v6814_v18 = vld [vmem:[#allocation32_spill] sm:$0xff] }
 0x661   :  { %v3880_v43 = vadd.f32 %v3879_v60, %v3878_v3  ;;  %v2684_v28 = vadd.f32 %v3877_v26, %v5676_v52  ;;  %v6815_v26 = vld [vmem:[#allocation33_spill] sm:$0xff]  ;;  %v6816_v3 = vmov 0   ;;  %v6817_v60 = vld [vmem:[#allocation34_spill] sm:$0xff] }
 0x663   :  { %v2725_v22 = vadd.f32 %v6093_v36, %v2684_v28  ;;  %v2687_v24 = vadd.f32 %v3880_v43, %v5676_v52  ;;  %4223 = vmatpush3.bf16.msra.mxu0 %v5905_v47  ;;  %v4817_v47 = vld [vmem:[#allocation8 + $0x38] sm:$0xff]   ;;  %v6818_v43 = vld [vmem:[#allocation35_spill] sm:$0xff] }
 0x664   :  { %4224 = vmatprep.subr.bf16.mxu0 %v6616_v62  ;;  %v6819_v28 = vld [vmem:[#allocation36_spill] sm:$0xff] }
 0x665   :  { %4646 = vtanh.f32 %v2725_v22  ;;  %v2728_v46 = vadd.f32 %v6095_v61, %v2687_v24  ;;  %v4809_v61 = vld [vmem:[#allocation8 + $0x18] sm:$0xff]   ;;  %v6820_v22 = vld [vmem:[#allocation37_spill] sm:$0xff]  ;;  %v6821_v24 = vld [vmem:[#allocation38_spill] sm:$0xff] }
 0x667   :  { %4648 = vtanh.f32 %v2728_v46  ;;  %4225 = vmatpush3.bf16.msra.mxu0 %v5909_v32  ;;  %v6822_v46 = vld [vmem:[#allocation39_spill] sm:$0xff] }
 0x668   :  { %4226 = vmatprep.subr.bf16.mxu0 %v6616_v62 }
 0x66b   :  { %4227 = vmatpush3.bf16.msra.mxu0 %v5913_v2 }
 0x66c   :  { %4228 = vmatprep.subr.bf16.mxu0 %v6616_v62 }
 0x66f   :  { %v6154_v31 = vpop.eup %4646  ;;  %4229 = vmatpush3.bf16.msra.mxu0 %v5917_v14 }
 0x670   :  { %v2739_v52 = vmul.f32 %v6154_v31, %v6154_v31  ;;  %3983 = vmatprep.subr.bf16.mxu0 %v5922_v17 }
 0x671   :  { %v6159_v51 = vpop.eup %4648 }
 0x672   :  { %2741 = vadd.xlane.f32.xlu0 %v2739_v52  ;;  %v2740_v63 = vmul.f32 %v6159_v51, %v6159_v51  ;;  %4231 = vmatmul.mubr.bf16.vlgmr.msra.gmra.mrb[52].mxu0 %v6189_v10  ;;  %v6823_v52 = vld [vmem:[#allocation40_spill] sm:$0xff] }
 0x673   :  { %3984 = vmatpush3.bf16.msra.mxu0 %v5926_v19 }
 0x674   :  { %2743 = vadd.xlane.f32.xlu1 %v2740_v63  ;;  %3985 = vmatprep.subr.bf16.mxu0 %v5929_v45  ;;  %v6824_v63 = vld [vmem:[#allocation41_spill] sm:$0xff] }
 0x677   :  { %3986 = vmatpush3.bf16.msra.mxu0 %v5932_v30 }
 0x678   :  { %3987 = vmatprep.subr.bf16.mxu0 %v4806_v27  ;;  %v6827_v27 = vld [vmem:[#allocation44_spill] sm:$0xff] }
 0x67b   :  { %3988 = vmatpush3.bf16.msra.mxu0 %v4807_v44  ;;  %v6828_v44 = vld [vmem:[#allocation45_spill] sm:$0xff] }
 0x67c   :  { %3989 = vmatprep.subr.bf16.mxu0 %v4808_v1 }
 0x67f   :  { %3990 = vmatpush3.bf16.msra.mxu0 %v4809_v61  ;;  %v6829_v61 = vld [vmem:[#allocation46_spill] sm:$0xff] }
 0x680   :  { %3991 = vmatprep.subr.bf16.mxu0 %v4810_v20 }
 0x683   :  { %3992 = vmatpush3.bf16.msra.mxu0 %v4811_v50 }
 0x684   :  { %3993 = vmatprep.subr.bf16.mxu0 %v4812_v6 }
 0x687   :  { %3994 = vmatpush3.bf16.msra.mxu0 %v4813_v42  ;;  %v6830_v42 = vld [vmem:[#allocation47_spill] sm:$0xff] }
 0x688   :  { %3995 = vmatprep.subr.bf16.mxu0 %v4814_v37  ;;  %v6831_v37 = vld [vmem:[#allocation48_spill] sm:$0xff] }
 0x68b   :  { %3996 = vmatpush3.bf16.msra.mxu0 %v4815_v48  ;;  %v6832_v48 = vld [vmem:[#allocation49_spill] sm:$0xff] }
 0x68c   :  { %3997 = vmatprep.subr.bf16.mxu0 %v4816_v49  ;;  %v6833_v49 = vld [vmem:[#allocation50_spill] sm:$0xff] }
 0x68f   :  { %3998 = vmatpush3.bf16.msra.mxu0 %v4817_v47  ;;  %v6834_v47 = vld [vmem:[#allocation51_spill] sm:$0xff] }
 0x6bd   :  { %v2868_v32 = vpop.f32.mrb[40].mxu0 }
 0x6be   :  { %v4270_v2 = vadd.f32 %v2868_v32, %v5553_v56  ;;  %v2870_v14 = vpop.f32.mrb[41].mxu0  ;;  %v6836_v32 = vld [vmem:[#allocation53_spill] sm:$0xff] }
 0x6bf   :  { %v4271_v17 = vadd.f32 %v2870_v14, %v5560_v38  ;;  %v2872_v19 = vpop.f32.mrb[42].mxu0 }
 0x6c0   :  { %4650 = vtanh.f32 %v4270_v2  ;;  %v4272_v45 = vadd.f32 %v2872_v19, %v5553_v56  ;;  %v2874_v30 = vpop.f32.mrb[43].mxu0  ;;  %v6837_v2 = vld [vmem:[#allocation54_spill] sm:$0xff] }
 0x6c1   :  { %4652 = vtanh.f32 %v4271_v17  ;;  %v4273_v35 = vadd.f32 %v2874_v30, %v5560_v38  ;;  %v6838_v30 = vld [vmem:[#allocation55_spill] sm:$0xff] }
 0x6c2   :  { %4654 = vtanh.f32 %v4272_v45 }
 0x6c3   :  { %4656 = vtanh.f32 %v4273_v35 }
 0x6ca   :  { %v4651_v59 = vpop.eup %4650 }
 0x6cb   :  { %v4653_v21 = vpop.eup %4652 }
 0x6cc   :  { %v4655_v8 = vpop.eup %4654 }
 0x6cd   :  { %v4657_v29 = vpop.eup %4656  ;;  %v2965_v36 = vpack.c.bf16 %v4655_v8, %v4651_v59 }
 0x6ce   :  { %v2966_v41 = vpack.c.bf16 %v4657_v29, %v4653_v21 }
 0x6d0   :  { %3000 = vmatprep.mubr.bf16.mxu1 %v2966_v41 }
 0x6d1   :  { %3001 = vmatmul.mubr.bf16.vlgmr.msra.gmra.mrb[48].mxu1 %v2965_v36 }
 0x6d2   :  { %3111 = vmatpush1.bf16.msra.mxu1 %v5952_v13  ;;  %3142 = vmatprep.mubr.bf16.mxu1 %v6168_v11  ;;  %v6796_v13 = vld [vmem:[#allocation74_spill] sm:$0xff]  ;;  %v6826_v11 = vld [vmem:[#allocation43_spill] sm:$0xff] }
 0x6d3   :  { %3112 = vmatprep.subr.bf16.mxu1 %v5956_v58  ;;  %v6797_v58 = vld [vmem:[#allocation76_spill] sm:$0xff] }
 0x6d6   :  { %3113 = vmatpush1.bf16.msra.mxu1 %v5959_v23  ;;  %v6798_v23 = vld [vmem:[#allocation77_spill] sm:$0xff] }
 0x6d7   :  { %3114 = vmatprep.subr.bf16.mxu1 %v5962_v15  ;;  %v6799_v15 = vld [vmem:[#allocation19_spill] sm:$0xff] }
 0x6da   :  { %3115 = vmatpush1.bf16.msra.mxu1 %v5965_v55  ;;  %v6800_v55 = vld [vmem:[#allocation20_spill] sm:$0xff] }
 0x6db   :  { %3116 = vmatprep.subr.bf16.mxu1 %v5968_v40  ;;  %v6801_v40 = vld [vmem:[#allocation78_spill] sm:$0xff] }
 0x6de   :  { %3117 = vmatpush1.bf16.msra.mxu1 %v5971_v54  ;;  %v6802_v54 = vld [vmem:[#allocation21_spill] sm:$0xff] }
 0x6df   :  { %3118 = vmatprep.subr.bf16.mxu1 %v5974_v57  ;;  %v6803_v57 = vld [vmem:[#allocation22_spill] sm:$0xff] }
 0x6e2   :  { %3119 = vmatpush1.bf16.msra.mxu1 %v5977_v9  ;;  %v6804_v9 = vld [vmem:[#allocation80_spill] sm:$0xff] }
 0x6e3   :  { %3120 = vmatprep.subr.bf16.mxu1 %v5980_v5  ;;  %v6805_v5 = vld [vmem:[#allocation23_spill] sm:$0xff] }
 0x6e6   :  { %3121 = vmatpush1.bf16.msra.mxu1 %v5983_v33  ;;  %v6806_v33 = vld [vmem:[#allocation24_spill] sm:$0xff] }
 0x6e7   :  { %3122 = vmatprep.subr.bf16.mxu1 %v5986_v4  ;;  %v6807_v4 = vld [vmem:[#allocation25_spill] sm:$0xff] }
 0x6ea   :  { %3123 = vmatpush1.bf16.msra.mxu1 %v5989_v34  ;;  %v6808_v34 = vld [vmem:[#allocation26_spill] sm:$0xff] }
 0x6eb   :  { %3124 = vmatprep.subr.bf16.mxu1 %v6796_v13 }
 0x6ee   :  { %3125 = vmatpush1.bf16.msra.mxu1 %v6797_v58 }
 0x6ef   :  { %3126 = vmatprep.subr.bf16.mxu1 %v6798_v23 }
 0x6f2   :  { %3127 = vmatpush1.bf16.msra.mxu1 %v6799_v15 }
 0x6f3   :  { %3128 = vmatprep.subr.bf16.mxu1 %v6800_v55 }
 0x6f6   :  { %3129 = vmatpush1.bf16.msra.mxu1 %v6801_v40 }
 0x6f7   :  { %3130 = vmatprep.subr.bf16.mxu1 %v6802_v54 }
 0x6fa   :  { %3131 = vmatpush1.bf16.msra.mxu1 %v6803_v57 }
 0x6fb   :  { %3132 = vmatprep.subr.bf16.mxu1 %v6804_v9 }
 0x6fe   :  { %3133 = vmatpush1.bf16.msra.mxu1 %v6805_v5 }
 0x6ff   :  { %3134 = vmatprep.subr.bf16.mxu1 %v6806_v33 }
 0x702   :  { %3135 = vmatpush1.bf16.msra.mxu1 %v6807_v4 }
 0x703   :  { %3136 = vmatprep.subr.bf16.mxu1 %v6808_v34 }
 0x705   :  { %v3043_v1 = vpop.f32.mrb[44].mxu0 }
 0x706   :  { %3137 = vmatpush1.bf16.msra.mxu1 %v6809_v53  ;;  %v4212_v20 = vpop.f32.mrb[45].mxu0 }
 0x707   :  { %3138 = vmatprep.subr.bf16.mxu1 %v6810_v25  ;;  %v3046_v50 = vpop.f32.mrb[46].mxu0 }
 0x708   :  { %v4213_v6 = vpop.f32.mrb[47].mxu0 }
 0x70a   :  { %3139 = vmatpush1.bf16.msra.mxu1 %v6811_v16 }
 0x70b   :  { %3140 = vmatprep.subr.bf16.mxu1 %v6812_v12 }
 0x70e   :  { %3141 = vmatpush1.bf16.msra.mxu1 %v6813_v39 }
 0x70f   :  { %3153 = vmatprep.subr.bf16.mxu1 %v6814_v18 }
 0x711   :  { %3143 = vmatmul.mubr.bf16.vlgmr.msra.gmra.mrb[52].mxu1 %v6166_v7  ;;  %v6825_v7 = vld [vmem:[#allocation42_spill] sm:$0xff] }
 0x712   :  { %3154 = vmatpush1.bf16.msra.mxu1 %v6815_v26  ;;  %3185 = vmatprep.mubr.bf16.mxu1 %v6816_v3 }
 0x713   :  { %3155 = vmatprep.subr.bf16.mxu1 %v6817_v60 }
 0x716   :  { %3156 = vmatpush1.bf16.msra.mxu1 %v6818_v43 }
 0x717   :  { %3157 = vmatprep.subr.bf16.mxu1 %v6819_v28 }
 0x71a   :  { %3158 = vmatpush1.bf16.msra.mxu1 %v6820_v22 }
 0x71b   :  { %3159 = vmatprep.subr.bf16.mxu1 %v6821_v24 }
 0x71e   :  { %3160 = vmatpush1.bf16.msra.mxu1 %v6822_v46 }
 0x71f   :  { %3161 = vmatprep.subr.bf16.mxu1 %v6823_v52 }
 0x722   :  { %3162 = vmatpush1.bf16.msra.mxu1 %v6824_v63 }
 0x723   :  { %3163 = vmatprep.subr.bf16.mxu1 %v6825_v7 }
 0x725   :  { %v3968_v14 = vpop.f32.mrb[48].mxu0 }
 0x726   :  { %3164 = vmatpush1.bf16.msra.mxu1 %v6826_v11  ;;  %v3969_v17 = vpop.f32.mrb[49].mxu0 }
 0x727   :  { %3165 = vmatprep.subr.bf16.mxu1 %v6827_v27  ;;  %v3970_v19 = vadd.f32 %v3969_v17, %v3968_v14  ;;  %v3971_v45 = vpop.f32.mrb[50].mxu0 }
 0x728   :  { %v3972_v35 = vpop.f32.mrb[51].mxu0 }
 0x729   :  { %v3973_v59 = vadd.f32 %v3972_v35, %v3971_v45  ;;  %v3231_v21 = vadd.f32 %v3970_v19, %v5532_v0  ;;  %v6839_v45 = vld [vmem:[#allocation83_spill] sm:$0xff] }
 0x72a   :  { %3166 = vmatpush1.bf16.msra.mxu1 %v6828_v44 }
 0x72b   :  { %3167 = vmatprep.subr.bf16.mxu1 %v6829_v61  ;;  %v3234_v8 = vadd.f32 %v3973_v59, %v5532_v0  ;;  %v4818_v0 = vld [vmem:[%s6388_s5] ss:$0 sm:$0xff]  ;;  %v6841_v59 = vld [vmem:[#allocation84_spill] sm:$0xff]  ;;  %s4996_s5 = smov [#allocation13]  }
 0x72c   :  { %s3415_s4 = sshll.u32 %s4996_s5, 4  ;;  %s3416_s4 = int_to_ptr.vmem [resolvable:$true] %s3415_s4 }
 0x72d   :  { %s4951_s16 = scalar_lea.vmem %s3416_s4, 256  ;;  %p4956_p7 = scmp.lt.s32.totalorder %s3416_s4, %s3416_s4 }
 0x72e   :  { %3168 = vmatpush1.bf16.msra.mxu1 %v6830_v42  ;;  %p4952_p6 = scmp.ne.s32.totalorder %s3416_s4, %s4951_s16  ;;  %p4957_p8 = scmp.lt.s32.totalorder %s4951_s16, %s4951_s16 }
 0x72f   :  { %4234 = vmatprep.subr.bf16.mxu1 %v6616_v62 }
 0x730   :  { %p4958_p9 = por %p4957_p8, %p4956_p7 }
 0x731   :  { %3186 = vmatmul.mubr.bf16.vlgmr.msra.gmra.mrb[52].mxu1 %v6189_v10  ;;  %v6835_v10 = vld [vmem:[#allocation52_spill] sm:$0xff] }
 0x732   :  { %4235 = vmatpush3.bf16.msra.mxu1 %v6831_v37  ;;  %4250 = vmatprep.mubr.msk.bf16.mxu1 %vm4994_vm0, %v6616_v62  ;;  %p4959_p10 = pnand %p4958_p9, %p4952_p6 }
 0x733   :  { %4236 = vmatprep.subr.bf16.mxu1 %v6616_v62 }
 0x736   :  { %4237 = vmatpush3.bf16.msra.mxu1 %v6832_v48 }
 0x737   :  { %4238 = vmatprep.subr.bf16.mxu1 %v6616_v62 }
 0x73a   :  { %4239 = vmatpush3.bf16.msra.mxu1 %v6833_v49 }
 0x73b   :  { %4240 = vmatprep.subr.bf16.mxu1 %v6616_v62 }
 0x73e   :  { %4241 = vmatpush3.bf16.msra.mxu1 %v6834_v47 }
 0x73f   :  { %4242 = vmatprep.subr.bf16.mxu1 %v6616_v62 }
 0x742   :  { %4243 = vmatpush3.bf16.msra.mxu1 %v6835_v10 }
 0x743   :  { %4244 = vmatprep.subr.bf16.mxu1 %v6616_v62 }
 0x745   :  { %v3271_v29 = vpop.f32.mrb[52].mxu0 }
 0x746   :  { %4245 = vmatpush3.bf16.msra.mxu1 %v6836_v32  ;;  %v3272_v36 = vadd.f32 %v3271_v29, %v3231_v21  ;;  %v4232_v41 = vpop.f32.mrb[53].mxu0  ;;  %v6842_v21 = vld [vmem:[#allocation70_spill] sm:$0xff]  ;;  %v6843_v29 = vld [vmem:[#allocation71_spill] sm:$0xff] }
 0x747   :  { %4246 = vmatprep.subr.bf16.mxu1 %v6616_v62  ;;  %v3274_v13 = vpop.f32.mrb[54].mxu0  ;;  %v6844_v41 = vld [vmem:[#allocation73_spill] sm:$0xff] }
 0x748   :  { %4658 = vtanh.f32 %v3272_v36  ;;  %v3275_v58 = vadd.f32 %v3274_v13, %v3234_v8  ;;  %v4233_v23 = vpop.f32.mrb[55].mxu0  ;;  %v2096_v8 = vmul.f32 %v6842_v21, %v6841_v59  ;;  %v2414_v36 = vmul.f32 %v6843_v29, %v6839_v45 }
 0x749   :  { %v2415_v13 = vmul.f32 %v6844_v41, %v6841_v59  ;;  %v2734_v23 = vmul.f32 %v6159_v51, %v6841_v59 }
 0x74a   :  { %4247 = vmatpush3.bf16.msra.mxu1 %v6837_v2  ;;  %4660 = vtanh.f32 %v3275_v58  ;;  %v2733_v58 = vmul.f32 %v6154_v31, %v6839_v45  ;;  %v2104_v31 = vpop.xlane.xlu1 %2103 }
 0x74b   :  { %4248 = vmatprep.subr.bf16.mxu1 %v6616_v62  ;;  %vm2109_vm5 = vcmp.eq.f32.partialorder %v2104_v31, inf  ;;  %vm2111_vm9 = vcmp.eq.f32.partialorder %v2104_v31, 0.0 }
 0x74e   :  { %4249 = vmatpush3.bf16.msra.mxu1 %v6838_v30  ;;  %v6840_v30 = vld [vmem:[#allocation68_spill] sm:$0xff] }
 0x74f   :  { %v2095_v35 = vmul.f32 %v6840_v30, %v6839_v45 }
 0x752   :  { %v4659_v62 = vpop.eup %4658 }
 0x754   :  { %v4661_v15 = vpop.eup %4660 }
 0x755   :  { %v3286_v55 = vpack.c.bf16 %v4661_v15, %v4659_v62 }
 0x757   :  { %4251 = vmatmul.mubr.bf16.vlgmr.msra.gmra.mrb[56].mxu1 %v3286_v55 }
 0x7a4   :  { %v3937_v40 = vpop.f32.mrb[48].mxu1 }
 0x7a5   :  { %v3938_v54 = vpop.f32.mrb[49].mxu1 }
 0x7a6   :  { %v3939_v57 = vadd.f32 %v3938_v54, %v3937_v40  ;;  %v3940_v9 = vpop.f32.mrb[50].mxu1  ;;  %v6294_v54 = vpop.xlane.xlu0 %1244 }
 0x7a7   :  { %v3941_v5 = vpop.f32.mrb[51].mxu1  ;;  %vm1250_vm1 = vcmp.eq.f32.partialorder %v6294_v54, inf  ;;  %vm1252_vm2 = vcmp.eq.f32.partialorder %v6294_v54, 0.0 }
 0x7a8   :  { %v3942_v33 = vadd.f32 %v3941_v5, %v3940_v9  ;;  %v3003_v4 = vadd.f32 %v4818_v0, %v3939_v57  ;;  %v2106_v9 = vpop.xlane.xlu1 %2105 }
 0x7a9   :  { %vm2116_vm6 = vcmp.eq.f32.partialorder %v2106_v9, inf  ;;  %vm2118_vm10 = vcmp.eq.f32.partialorder %v2106_v9, 0.0 }
 0x7aa   :  { %v3044_v34 = vadd.f32 %v3043_v1, %v3003_v4  ;;  %v3006_v53 = vadd.f32 %v4818_v0, %v3942_v33  ;;  %v6296_v57 = vpop.xlane.xlu0 %1246 }
 0x7ab   :  { %vm1257_vm3 = vcmp.eq.f32.partialorder %v6296_v57, inf  ;;  %vm1259_vm4 = vcmp.eq.f32.partialorder %v6296_v57, 0.0 }
 0x7ac   :  { %4662 = vtanh.f32 %v3044_v34  ;;  %v3047_v25 = vadd.f32 %v3046_v50, %v3006_v53  ;;  %v2425_v5 = vpop.xlane.xlu1 %2424 }
 0x7ad   :  { %vm2435_vm8 = vcmp.eq.f32.partialorder %v2425_v5, inf  ;;  %vm2437_vm12 = vcmp.eq.f32.partialorder %v2425_v5, 0.0 }
 0x7ae   :  { %4664 = vtanh.f32 %v3047_v25  ;;  %v2423_v51 = vpop.xlane.xlu0 %2422 }
 0x7af   :  { %vm2428_vm7 = vcmp.eq.f32.partialorder %v2423_v51, inf  ;;  %vm2430_vm11 = vcmp.eq.f32.partialorder %v2423_v51, 0.0 }
 0x7b2   :  { %v6300_v33 = vpop.xlane.xlu0 %2741 }
 0x7b3   :  { %vm2747_vm13 = vcmp.eq.f32.partialorder %v6300_v33, inf  ;;  %vm2749_vm0 = vcmp.eq.f32.partialorder %v6300_v33, 0.0 }
 0x7b6   :  { %v4663_v16 = vpop.eup %4662 }
 0x7b7   :  { %v3058_v12 = vmul.f32 %v4663_v16, %v4663_v16  ;;  %v3052_v62 = vmul.f32 %v4663_v16, %v6839_v45 }
 0x7b8   :  { %v4665_v39 = vpop.eup %4664 }
 0x7b9   :  { %3060 = vadd.xlane.f32.xlu0 %v3058_v12  ;;  %v3059_v18 = vmul.f32 %v4665_v39, %v4665_v39  ;;  %v3053_v15 = vmul.f32 %v4665_v39, %v6841_v59 }
 0x7bb   :  { %3062 = vadd.xlane.f32.xlu1 %v3059_v18 }
 0x804   :  { %v3187_v26 = vpop.f32.mrb[52].mxu1 }
 0x805   :  { %v4274_v3 = vadd.f32 %v3187_v26, %v5553_v56  ;;  %v3189_v60 = vpop.f32.mrb[53].mxu1 }
 0x806   :  { %v4275_v43 = vadd.f32 %v3189_v60, %v5560_v38  ;;  %v3191_v28 = vpop.f32.mrb[54].mxu1 }
 0x807   :  { %4666 = vtanh.f32 %v4274_v3  ;;  %v4276_v22 = vadd.f32 %v3191_v28, %v5553_v56  ;;  %v3193_v24 = vpop.f32.mrb[55].mxu1  ;;  %v1253_v28 = vand.u32 2147483648, %v6294_v54 }
 0x808   :  { %4668 = vtanh.f32 %v4275_v43  ;;  %v4277_v46 = vadd.f32 %v3193_v24, %v5560_v38 }
 0x809   :  { %4670 = vtanh.f32 %v4276_v22 }
 0x80a   :  { %4672 = vtanh.f32 %v4277_v46  ;;  %v1260_v46 = vand.u32 2147483648, %v6296_v57 }
 0x811   :  { %v4667_v52 = vpop.eup %4666 }
 0x812   :  { %v4669_v63 = vpop.eup %4668 }
 0x813   :  { %v4671_v7 = vpop.eup %4670 }
 0x814   :  { %v4673_v11 = vpop.eup %4672  ;;  %v3284_v27 = vpack.c.bf16 %v4671_v7, %v4667_v52 }
 0x815   :  { %v3285_v44 = vpack.c.bf16 %v4673_v11, %v4669_v63 }
 0x817   :  { %3319 = vmatprep.mubr.bf16.mxu0 %v3285_v44 }
 0x818   :  { %3320 = vmatmul.mubr.bf16.vlgmr.msra.gmra.mrb[56].mxu0 %v3284_v27  ;;  %v2112_v27 = vand.u32 2147483648, %v2104_v31 }
 0x82a   :  { %v3362_v1 = vpop.f32.mrb[56].mxu1 }
 0x82b   :  { %v4252_v61 = vpop.f32.mrb[57].mxu1 }
 0x82c   :  { %v3365_v20 = vpop.f32.mrb[58].mxu1  ;;  %v2119_v61 = vand.u32 2147483648, %v2106_v9 }
 0x82d   :  { %v4253_v50 = vpop.f32.mrb[59].mxu1 }
 0x846   :  { %v6304_v4 = vpop.xlane.xlu0 %3060 }
 0x847   :  { %vm3066_vm14 = vcmp.eq.f32.partialorder %v6304_v4, inf }
 0x8eb   :  { %v3999_v6 = vpop.f32.mrb[56].mxu0 }
 0x8ec   :  { %v4000_v56 = vpop.f32.mrb[57].mxu0 }
 0x8ed   :  { %v4001_v42 = vadd.f32 %v4000_v56, %v3999_v6  ;;  %v4002_v37 = vpop.f32.mrb[58].mxu0  ;;  %v2431_v56 = vand.u32 2147483648, %v2423_v51 }
 0x8ee   :  { %v4003_v48 = vpop.f32.mrb[59].mxu0 }
 0x8ef   :  { %v3322_v38 = vadd.f32 %v4818_v0, %v4001_v42  ;;  %v4004_v49 = vadd.f32 %v4003_v48, %v4002_v37  ;;  %v2438_v42 = vand.u32 2147483648, %v2425_v5 }
 0x8f1   :  { %v3363_v47 = vadd.f32 %v3362_v1, %v3322_v38  ;;  %v3325_v10 = vadd.f32 %v4818_v0, %v4004_v49  ;;  %v6302_v0 = vpop.xlane.xlu1 %2743 }
 0x8f2   :  { %vm2754_vm15 = vcmp.eq.f32.partialorder %v6302_v0, inf }
 0x8f3   :  { %4674 = vtanh.f32 %v3363_v47  ;;  %v3366_v32 = vadd.f32 %v3365_v20, %v3325_v10 }
 0x8f5   :  { %4676 = vtanh.f32 %v3366_v32  ;;  %v6307_v25 = vpop.xlane.xlu1 %3062 }
 0x8f6   :  { %4678 = vrsqrt.f32 %v6294_v54 }
 0x8f7   :  { %4680 = vrsqrt.f32 %v6296_v57 }
 0x8f8   :  { %4682 = vrsqrt.f32 %v2104_v31 }
 0x8f9   :  { %4684 = vrsqrt.f32 %v2106_v9 }
 0x8fa   :  { %4686 = vrsqrt.f32 %v2423_v51 }
 0x8fb   :  { %4688 = vrsqrt.f32 %v2425_v5 }
 0x8fc   :  { %4690 = vrsqrt.f32 %v6300_v33 }
 0x8fd   :  { %v4675_v2 = vpop.eup %4674  ;;  %4692 = vrsqrt.f32 %v6304_v4 }
 0x8fe   :  { %v3377_v14 = vmul.f32 %v4675_v2, %v4675_v2  ;;  %v3371_v55 = vmul.f32 %v4675_v2, %v6839_v45  ;;  %4694 = vrsqrt.f32 %v6302_v0 }
 0x8ff   :  { %v4677_v17 = vpop.eup %4676  ;;  %4696 = vrsqrt.f32 %v6307_v25 }
 0x900   :  { %3379 = vadd.xlane.f32.xlu0 %v3377_v14  ;;  %v3378_v19 = vmul.f32 %v4677_v17, %v4677_v17  ;;  %v3372_v40 = vmul.f32 %v4677_v17, %v6841_v59  ;;  %v4679_v34 = vpop.eup %4678 }
 0x901   :  { %v4681_v53 = vpop.eup %4680  ;;  %v1249_v26 = vmul.f32 %v4679_v34, %v6294_v54 }
 0x902   :  { %3381 = vadd.xlane.f32.xlu1 %v3378_v19  ;;  %v4683_v16 = vpop.eup %4682  ;;  %v1256_v3 = vmul.f32 %v4681_v53, %v6296_v57 }
 0x903   :  { %v4685_v12 = vpop.eup %4684  ;;  %v2108_v60 = vmul.f32 %v4683_v16, %v2104_v31  ;;  %v1251_v52 = vsel %vm1250_vm1, %v6294_v54, %v1249_v26  ;;  %vm3073_vm1 = vcmp.eq.f32.partialorder %v6307_v25, inf }
 0x904   :  { %2097 = vadd.xlane.f32.xlu0 %v2095_v35  ;;  %v4687_v39 = vpop.eup %4686  ;;  %v2115_v43 = vmul.f32 %v4685_v12, %v2106_v9  ;;  %v1258_v63 = vsel %vm1257_vm3, %v6296_v57, %v1256_v3  ;;  %v6325_v47 = vsel %vm1252_vm2, %v1253_v28, %v1251_v52  ;;  %vm3068_vm2 = vcmp.eq.f32.partialorder %v6304_v4, 0.0 }
 0x905   :  { %v4689_v18 = vpop.eup %4688  ;;  %v2427_v22 = vmul.f32 %v4687_v39, %v2423_v51  ;;  %v2110_v7 = vsel %vm2109_vm5, %v2104_v31, %v2108_v60  ;;  %v6330_v14 = vsel %vm1259_vm4, %v1260_v46, %v1258_v63  ;;  %vm2756_vm3 = vcmp.eq.f32.partialorder %v6302_v0, 0.0 }
 0x906   :  { %2099 = vadd.xlane.f32.xlu1 %v2096_v8  ;;  %v2434_v24 = vmul.f32 %v4689_v18, %v2425_v5  ;;  %v4691_v11 = vpop.eup %4690  ;;  %v2117_v44 = vsel %vm2116_vm6, %v2106_v9, %v2115_v43  ;;  %v2113_v37 = vsel %vm2111_vm9, %v2112_v27, %v2110_v7  ;;  %vm3075_vm4 = vcmp.eq.f32.partialorder %v6307_v25, 0.0 }
 0x907   :  { %v4693_v1 = vpop.eup %4692  ;;  %v2429_v20 = vsel %vm2428_vm7, %v2423_v51, %v2427_v22  ;;  %v2746_v38 = vmul.f32 %v4691_v11, %v6300_v33  ;;  %v2120_v49 = vsel %vm2118_vm10, %v2119_v61, %v2117_v44  ;;  %v2121_v45 = vmul.f32 %v2113_v37, %v6325_v47 }
 0x908   :  { %2416 = vadd.xlane.f32.xlu0 %v2414_v36  ;;  %v2436_v50 = vsel %vm2435_vm8, %v2425_v5, %v2434_v24  ;;  %v4695_v6 = vpop.eup %4694  ;;  %v3065_v10 = vmul.f32 %v4693_v1, %v6304_v4  ;;  %v2432_v32 = vsel %vm2430_vm11, %v2431_v56, %v2429_v20  ;;  %v2122_v35 = vmul.f32 %v2120_v49, %v6330_v14 }
 0x909   :  { %v4697_v48 = vpop.eup %4696  ;;  %v2439_v2 = vsel %vm2437_vm12, %v2438_v42, %v2436_v50  ;;  %v2753_v17 = vmul.f32 %v4695_v6, %v6302_v0  ;;  %v2748_v59 = vsel %vm2747_vm13, %v6300_v33, %v2746_v38  ;;  %v2440_v8 = vmul.f32 %v2432_v32, %v6325_v47 }
 0x90a   :  { %2418 = vadd.xlane.f32.xlu1 %v2415_v13  ;;  %v3072_v30 = vmul.f32 %v4697_v48, %v6307_v25  ;;  %v2441_v29 = vmul.f32 %v2439_v2, %v6330_v14  ;;  %v2750_v36 = vand.u32 2147483648, %v6300_v33  ;;  %v3067_v41 = vsel %vm3066_vm14, %v6304_v4, %v3065_v10 }
 0x90b   :  { %v2755_v13 = vsel %vm2754_vm15, %v6302_v0, %v2753_v17  ;;  %v2124_v57 = vmax.f32 %v2122_v35, 1e-08  ;;  %v2442_v5 = vmax.f32 %v2440_v8, 1e-08  ;;  %v6845_v37 = vlaneseq }
 0x90c   :  { %2735 = vadd.xlane.f32.xlu0 %v2733_v58  ;;  %v3069_v58 = vand.u32 2147483648, %v6304_v4  ;;  %v2443_v4 = vmax.f32 %v2441_v29, 1e-08 }
 0x90d   :  { %v1263_v48 = vand.u32 127, %v6845_v37 }
 0x90e   :  { %2737 = vadd.xlane.f32.xlu1 %v2734_v23  ;;  %v2757_v23 = vand.u32 2147483648, %v6302_v0  ;;  %v3070_v31 = vsel %vm3068_vm2, %v3069_v58, %v3067_v41 }
 0x90f   :  { %v3078_v53 = vmul.f32 %v3070_v31, %v6325_v47  ;;  %vm2129_vm9 = vcmp.eq.s32.totalorder %v1263_v48, 0  ;;  %vm2448_vm10 = vcmp.eq.s32.totalorder %v1263_v48, 1  ;;  %vm2767_vm11 = vcmp.eq.s32.totalorder %v1263_v48, 2 }
 0x910   :  { %3054 = vadd.xlane.f32.xlu0 %v3052_v62  ;;  %v3074_v62 = vsel %vm3073_vm1, %v6307_v25, %v3072_v30  ;;  %v2758_v9 = vsel %vm2756_vm3, %v2757_v23, %v2755_v13  ;;  %vm3086_vm12 = vcmp.eq.s32.totalorder %v1263_v48, 3  ;;  %vm3405_vm13 = vcmp.eq.s32.totalorder %v1263_v48, 4 }
 0x911   :  { %v2760_v0 = vmul.f32 %v2758_v9, %v6330_v14  ;;  %v3080_v60 = vmax.f32 %v3078_v53, 1e-08 }
 0x912   :  { %3056 = vadd.xlane.f32.xlu1 %v3053_v15  ;;  %v2751_v15 = vsel %vm2749_vm0, %v2750_v36, %v2748_v59 }
 0x913   :  { %v2759_v33 = vmul.f32 %v2751_v15, %v6325_v47  ;;  %v2762_v24 = vmax.f32 %v2760_v0, 1e-08 }
 0x914   :  { %3373 = vadd.xlane.f32.xlu0 %v3371_v55  ;;  %v3076_v55 = vand.u32 2147483648, %v6307_v25 }
 0x915   :  { %v2761_v18 = vmax.f32 %v2759_v33, 1e-08 }
 0x916   :  { %3375 = vadd.xlane.f32.xlu1 %v3372_v40  ;;  %v2123_v40 = vmax.f32 %v2121_v45, 1e-08  ;;  %v3077_v34 = vsel %vm3075_vm4, %v3076_v55, %v3074_v62 }
 0x917   :  { %v3079_v12 = vmul.f32 %v3077_v34, %v6330_v14 }
 0x919   :  { %v3081_v52 = vmax.f32 %v3079_v12, 1e-08 }
 0x98d   :  { %v3380_v19 = vpop.xlane.xlu0 %3379 }
 0x98e   :  { %4698 = vrsqrt.f32 %v3380_v19  ;;  %vm3385_vm5 = vcmp.eq.f32.partialorder %v3380_v19, inf  ;;  %v3388_v3 = vand.u32 2147483648, %v3380_v19  ;;  %vm3387_vm6 = vcmp.eq.f32.partialorder %v3380_v19, 0.0 }
 0x98f   :  { %v3382_v21 = vpop.xlane.xlu1 %3381 }
 0x990   :  { %4700 = vrsqrt.f32 %v3382_v21  ;;  %vm3392_vm7 = vcmp.eq.f32.partialorder %v3382_v21, inf  ;;  %v3395_v46 = vand.u32 2147483648, %v3382_v21  ;;  %vm3394_vm8 = vcmp.eq.f32.partialorder %v3382_v21, 0.0 }
 0x991   :  { %v2098_v54 = vpop.xlane.xlu0 %2097  ;;  %4702 = vrcp.f32 %v2123_v40 }
 0x992   :  { %4704 = vrcp.f32 %v2124_v57 }
 0x993   :  { %v2100_v51 = vpop.xlane.xlu1 %2099  ;;  %4706 = vrcp.f32 %v2442_v5 }
 0x994   :  { %4708 = vrcp.f32 %v2443_v4 }
 0x995   :  { %v2417_v25 = vpop.xlane.xlu0 %2416  ;;  %4710 = vrcp.f32 %v2761_v18 }
 0x996   :  { %4712 = vrcp.f32 %v3080_v60 }
 0x997   :  { %v2419_v22 = vpop.xlane.xlu1 %2418  ;;  %4714 = vrcp.f32 %v2762_v24 }
 0x998   :  { %v4699_v16 = vpop.eup %4698  ;;  %4716 = vrcp.f32 %v3081_v52 }
 0x999   :  { %v3384_v39 = vmul.f32 %v4699_v16, %v3380_v19  ;;  %v2736_v44 = vpop.xlane.xlu0 %2735 }
 0x99a   :  { %v4701_v26 = vpop.eup %4700 }
 0x99b   :  { %v3386_v43 = vsel %vm3385_vm5, %v3380_v19, %v3384_v39  ;;  %v3391_v28 = vmul.f32 %v4701_v26, %v3382_v21  ;;  %v4703_v20 = vpop.eup %4702  ;;  %v2738_v50 = vpop.xlane.xlu1 %2737 }
 0x99c   :  { %v3389_v63 = vsel %vm3387_vm6, %v3388_v3, %v3386_v43  ;;  %v4705_v56 = vpop.eup %4704 }
 0x99d   :  { %v3393_v7 = vsel %vm3392_vm7, %v3382_v21, %v3391_v28  ;;  %v3397_v11 = vmul.f32 %v3389_v63, %v6325_v47  ;;  %v4707_v42 = vpop.eup %4706  ;;  %v3055_v49 = vpop.xlane.xlu0 %3054  ;;  %v2126_v47 = vmul.f32 %v4703_v20, %v2098_v54  ;;  %v2128_v19 = vmul.f32 %v4705_v56, %v2100_v51 }
 0x99e   :  { %v3396_v27 = vsel %vm3394_vm8, %v3395_v46, %v3393_v7  ;;  %v4709_v38 = vpop.eup %4708  ;;  %v2445_v32 = vmul.f32 %v4707_v42, %v2417_v25 }
 0x99f   :  { %v3399_v1 = vmax.f32 %v3397_v11, 1e-08  ;;  %v3398_v61 = vmul.f32 %v3396_v27, %v6330_v14  ;;  %v4711_v10 = vpop.eup %4710  ;;  %v3057_v2 = vpop.xlane.xlu1 %3056  ;;  %v2447_v30 = vmul.f32 %v4709_v38, %v2419_v22  ;;  %v2130_v21 = vsel %vm2129_vm9, %v2126_v47, 0.0 }
 0x9a0   :  { %v4713_v17 = vpop.eup %4712  ;;  %v2764_v14 = vmul.f32 %v4711_v10, %v2736_v44  ;;  %v2449_v36 = vsel %vm2448_vm10, %v2445_v32, %v2130_v21  ;;  %v2131_v58 = vsel %vm2129_vm9, %v2128_v19, 0.0 }
 0x9a1   :  { %4718 = vrcp.f32 %v3399_v1  ;;  %v3400_v6 = vmax.f32 %v3398_v61, 1e-08  ;;  %v4715_v45 = vpop.eup %4714  ;;  %v3083_v35 = vmul.f32 %v4713_v17, %v3055_v49  ;;  %v3374_v13 = vpop.xlane.xlu0 %3373  ;;  %v2450_v55 = vsel %vm2448_vm10, %v2447_v30, %v2131_v58 }
 0x9a2   :  { %v4717_v59 = vpop.eup %4716  ;;  %v2766_v8 = vmul.f32 %v4715_v45, %v2738_v50  ;;  %v2768_v23 = vsel %vm2767_vm11, %v2764_v14, %v2449_v36 }
 0x9a3   :  { %4720 = vrcp.f32 %v3400_v6  ;;  %v3085_v41 = vmul.f32 %v4717_v59, %v3057_v2  ;;  %v3087_v40 = vsel %vm3086_vm12, %v3083_v35, %v2768_v23  ;;  %v3376_v54 = vpop.xlane.xlu1 %3375 }
 0x9a4   :  { %v2769_v31 = vsel %vm2767_vm11, %v2766_v8, %v2450_v55 }
 0x9a5   :  { %v3088_v51 = vsel %vm3086_vm12, %v3085_v41, %v2769_v31 }
 0x9ab   :  { %v4719_v29 = vpop.eup %4718 }
 0x9ac   :  { %v3402_v62 = vmul.f32 %v4719_v29, %v3374_v13 }
 0x9ad   :  { %v4721_v15 = vpop.eup %4720 }
 0x9ae   :  { %v3406_v57 = vsel %vm3405_vm13, %v3402_v62, %v3087_v40  ;;  %v3404_v9 = vmul.f32 %v4721_v15, %v3376_v54 }
 0x9af   :  { %3408 = vst [vmem:[#allocation13] sm:$0xff] %v3406_v57 }
 0x9b0   :  { %v3407_v5 = vsel %vm3405_vm13, %v3404_v9, %v3088_v51 }
 0x9b1   :  { %3409 = vst [vmem:[#allocation13 + $0x8] sm:$0xff] %v3407_v5 }
 0x9b2   :  { %4962 = shalt.err (!%p4959_p10)
}
 0x9b3   :  { %s4963_s18 = scalar_lea.hbm %s6393_s10, 256 }
 0x9b4   :  { %p4964_p11 = scmp.ne.s32.totalorder %s6393_s10, %s4963_s18  ;;  %p4967_p12 = scmp.lt.u32.totalorder %s4963_s18, %s6393_s10 }
 0x9b6   :  { %p4969_p13 = pnand %p4967_p12, %p4964_p11 }
 0x9b8   :  { %4972 = shalt.err (!%p4969_p13)
}
 0x9b9   :  { %s4997_s21 = smov 128   ;;  %s4998_s23 = smov 8  }
 0x9ba   :  { %3421 = dma.vmem_to_hbm [thread:$0]  %s3416_s4, 256, %s6393_s10, [#allocation4], %s4997_s21, %s4997_s21, %s4998_s23  }
 0x9bb   :  { %4981 = dma.done.wait [#allocation4], 256  }
 0x9bc   :  { %4982 = vsyncadd [#allocation4], 4294967040 }
 0x9bd   :  { %3425 = vsyncpa [#allocation3], 1 }
 0x9be   :  { %3426 = vsyncpa [#allocation6], 1 }
 0x9bf   :  { %3427 = vsyncpa [#allocation9], 1 }
 0x9c0   :  { %3428 = vsyncpa [#allocation12], 1 }
 0x9c1   :  { %3429 = vsyncpa [#allocation4], 1 }

</bundles_post_ra>
